<compile_context>
chip_gen: v6e
topology: v6e:2x2x1
jax: 0.10.0
libtpu: 0.0.40
codegen_flags: <defaults>
</compile_context>

<pallas_src>
import jax
import jax.numpy as jnp
from jax import lax
from jax.experimental import pallas as pl
from jax.experimental.pallas import tpu as pltpu


# ---------------------------------------------------------------------------
# Layer-norm helpers matching the PyTorch cell semantics (eps = 0).
#   _ln_x: gain * (v - mean) / std_unbiased + bias
#          (one-pass variance + rsqrt; numerically ~1e-7 from the reference)
#   _ln_h: gain * (v - mean) + bias  (mean subtraction only)
# NOTE: eps == 0 exactly as in the PyTorch module, so a zero-variance row
#       produces inf/NaN there and here alike.
# ---------------------------------------------------------------------------
def _ln_x(v, g, b):
    ncols = v.shape[-1]
    mean = jnp.mean(v, axis=-1, keepdims=True)
    sumsq = jnp.sum(v * v, axis=-1, keepdims=True)
    var = jnp.maximum(sumsq - ncols * mean * mean, 0.0) / (ncols - 1)
    return g * ((v - mean) * lax.rsqrt(var)) + b


def _ln_h(v, g, b):
    mean = jnp.mean(v, axis=-1, keepdims=True)
    return g * (v - mean) + b


def _pick_chunk(seq_len, max_chunk=32):
    """Largest divisor of seq_len that is <= max_chunk (timestep chunk T)."""
    best = 1
    for c in range(1, min(seq_len, max_chunk) + 1):
        if seq_len % c == 0:
            best = c
    return best


def _nbytes(shape, dtype):
    n = 1
    for d in shape:
        n *= int(d)
    return n * jnp.dtype(dtype).itemsize


def _layer0_projection(xs, p0, matmul_dtype):
    """Hoisted (non-recurrent) layer-0 input projection + its layer norm.

    Only the h-side matmuls are truly recurrent, so the layer-0 x-side GEMM
    is done once with M = S*B (saturates the MXU) instead of per-timestep.
    Returns (S, B, 3H) float32 pre-activations (already LN'd + gain + bias).
    """
    S, B, D = xs.shape
    H = p0["w_ih_t"].shape[1] // 3
    x2 = xs.reshape(S * B, D)
    w = p0["w_ih_t"]
    if matmul_dtype is not None:
        x2 = x2.astype(matmul_dtype)
        w = w.astype(matmul_dtype)
    ih = jnp.dot(x2, w, preferred_element_type=jnp.float32)       # (S*B, 3H)
    gi, bi = p0["g_ih"], p0["b_ih"]
    ih_rz = _ln_x(ih[:, :2 * H], gi[:, :2 * H], bi[:, :2 * H])
    ih_n = _ln_x(ih[:, 2 * H:], gi[:, 2 * H:], bi[:, 2 * H:])
    return jnp.concatenate([ih_rz, ih_n], axis=-1).reshape(S, B, 3 * H)


def _make_kernel(num_layers, hid_dim, batch, chunk, matmul_dtype):
    L, H, B, T = num_layers, hid_dim, batch, chunk
    n_params = 3 + 6 * (L - 1)     # layer 0: (w_hh, b_hh, g_hh); rest: 6 each

    def cast_act(x):
        return x if matmul_dtype is None else x.astype(matmul_dtype)

    def kernel(ih0_ref, h0_ref, *refs):
        # refs = [n_params param refs] + [out_ref, h_t_ref]
        param_refs = refs[:n_params]
        out_ref = refs[n_params]
        hstate_ref = refs[n_params + 1]   # (L, B, H) f32 output, carried state

        @pl.when(pl.program_id(0) == 0)
        def _():
            hstate_ref[...] = h0_ref[...].astype(jnp.float32)

        def bc(v):  # hoist (1, W) -> (B, W) broadcasts out of the time loop
            return jnp.broadcast_to(v, (B, v.shape[-1]))

        # Load + slice + broadcast all params once per grid chunk.
        layers = []
        wh0 = param_refs[0][...]
        bh0 = param_refs[1][...]
        gh0 = param_refs[2][...]
        layers.append(dict(
            wh=wh0,
            gh_rz=bc(gh0[:, :2 * H]), bh_rz=bc(bh0[:, :2 * H]),
            gh_n=bc(gh0[:, 2 * H:]), bh_n=bc(bh0[:, 2 * H:]),
        ))
        for l in range(1, L):
            wi_r, wh_r, bi_r, bh_r, gi_r, gh_r = \
                param_refs[3 + 6 * (l - 1): 3 + 6 * l]
            wi, wh = wi_r[...], wh_r[...]
            bi, bh, gi, gh = bi_r[...], bh_r[...], gi_r[...], gh_r[...]
            layers.append(dict(
                wi=wi, wh=wh,
                gi_rz=bc(gi[:, :2 * H]), bi_rz=bc(bi[:, :2 * H]),
                gi_n=bc(gi[:, 2 * H:]), bi_n=bc(bi[:, 2 * H:]),
                gh_rz=bc(gh[:, :2 * H]), bh_rz=bc(bh[:, :2 * H]),
                gh_n=bc(gh[:, 2 * H:]), bh_n=bc(bh[:, 2 * H:]),
            ))

        # Carry the hidden state in registers across the T timesteps of this
        # chunk; the VMEM-resident hstate_ref is only touched at chunk edges.
        h_init = tuple(hstate_ref[l] for l in range(L))

        def step(t, h_carry):
            ih0 = ih0_ref[t]           # (B, 3H) precomputed layer-0 ih (LN'd)
            new_h = []
            inp = None
            for l in range(L):
                p = layers[l]
                h_prev = h_carry[l]
                if l == 0:
                    ih_rz = ih0[:, :2 * H]
                    ih_n = ih0[:, 2 * H:]
                else:
                    # Fused full-width (3H) x-side matmul, then per-slice LN.
                    ih = jnp.dot(cast_act(inp), p["wi"],
                                 preferred_element_type=jnp.float32)
                    ih_rz = _ln_x(ih[:, :2 * H], p["gi_rz"], p["bi_rz"])
                    ih_n = _ln_x(ih[:, 2 * H:], p["gi_n"], p["bi_n"])
                # Fused full-width (3H) h-side matmul, then per-slice LN.
                hh = jnp.dot(cast_act(h_prev), p["wh"],
                             preferred_element_type=jnp.float32)
                hh_rz = _ln_h(hh[:, :2 * H], p["gh_rz"], p["bh_rz"])
                hh_n = _ln_h(hh[:, 2 * H:], p["gh_n"], p["bh_n"])

                rz = jax.nn.sigmoid(ih_rz + hh_rz)
                r = rz[:, :H]
                z = rz[:, H:]
                n = jnp.tanh(ih_n + r * hh_n)
                h_new = (1.0 - z) * n + z * h_prev
                new_h.append(h_new)
                inp = h_new            # dropout == 0.0 -> identity
            out_ref[t] = inp.astype(out_ref.dtype)
            return tuple(new_h)

        h_final = lax.fori_loop(0, T, step, h_init, unroll=(T <= 8))
        for l in range(L):
            hstate_ref[l] = h_final[l]

    return kernel, n_params


def normalized_gru_forward(xs, h0, params, *, matmul_dtype=None, max_chunk=32):
    """xs: (S, B, D), h0: (L, B, H) -> (outputs (S, B, H), h_t (L, B, H)).

    matmul_dtype=None keeps f32 matmuls; jnp.bfloat16 stores weights in bf16
    and casts activations before the dots (accumulate/LN/gates stay f32).
    """
    S, B0, D = xs.shape
    L, _, H = h0.shape
    out_dtype = xs.dtype

    # Pad batch to a multiple of 8 (sublane) so vector work is less masked;
    # edge-replicate to keep padded rows finite. Sliced back below.
    B = ((B0 + 7) // 8) * 8
    if B != B0:
        xs = jnp.pad(xs, ((0, 0), (0, B - B0), (0, 0)), mode="edge")
        h0 = jnp.pad(h0, ((0, 0), (0, B - B0), (0, 0)), mode="edge")

    # Hoisted layer-0 input projection (one big GEMM, outside the recurrence).
    ih0 = _layer0_projection(xs, params[0], matmul_dtype)      # (S, B, 3H) f32

    T = _pick_chunk(S, max_chunk)

    def wcast(w):
        return w if matmul_dtype is None else w.astype(matmul_dtype)

    # Resident parameter list. Layer 0 only needs its h-side params here
    # (its x-side was consumed by the hoisted projection).
    p0 = params[0]
    flat = [wcast(p0["w_hh_t"]), p0["b_hh"], p0["g_hh"]]
    for p in params[1:]:
        flat += [wcast(p["w_ih_t"]), wcast(p["w_hh_t"]),
                 p["b_ih"], p["b_hh"], p["g_ih"], p["g_hh"]]

    kernel, n_params = _make_kernel(L, H, B, T, matmul_dtype)

    in_specs = [
        pl.BlockSpec((T, B, 3 * H), lambda c: (c, 0, 0)),   # layer-0 ih chunk
        pl.BlockSpec((L, B, H), lambda c: (0, 0, 0)),       # h0 (resident)
    ]
    # TODO(synk): on v7x (64 MiB VMEM), large resident f32 weights should be
    # single-buffered (pl.Buffered(1)) or streamed per layer via pl.ANY +
    # make_async_copy; at these shapes (and with bf16 weights) they fit easily.
    for w in flat:
        in_specs.append(pl.BlockSpec(w.shape, lambda c: (0, 0)))

    out_specs = [
        pl.BlockSpec((T, B, H), lambda c: (c, 0, 0)),       # per-chunk outputs
        pl.BlockSpec((L, B, H), lambda c: (0, 0, 0)),       # h_t / carried state
    ]
    out_shape = [
        jax.ShapeDtypeStruct((S, B, H), out_dtype),
        jax.ShapeDtypeStruct((L, B, H), jnp.float32),
    ]

    # Explicit VMEM budget with headroom (default scoped limit is well below
    # physical VMEM).
    resident = (sum(_nbytes(w.shape, w.dtype) for w in flat)
                + _nbytes((L, B, H), h0.dtype)
                + _nbytes((L, B, H), jnp.float32))
    streamed = _nbytes((T, B, 3 * H), ih0.dtype) + _nbytes((T, B, H), out_dtype)
    vmem_limit = int(min(120 * 2**20,
                         max(32 * 2**20, 2 * (resident + streamed) + (4 << 20))))

    grid_spec = pltpu.PrefetchScalarGridSpec(
        num_scalar_prefetch=0,
        grid=(pl.cdiv(S, T),),
        in_specs=in_specs,
        out_specs=out_specs,
        scratch_shapes=[],
    )

    outs, h_t = pl.pallas_call(
        kernel,
        grid_spec=grid_spec,
        out_shape=out_shape,
        compiler_params=pltpu.CompilerParams(
            # Recurrence -> sequential grid. (On v7x with large B, a leading
            # "parallel" batch axis would shard the batch across the 2 TCs.)
            dimension_semantics=("arbitrary",),
            vmem_limit_bytes=vmem_limit,
        ),
    )(ih0, h0, *flat)

    return outs[:, :B0], h_t[:, :B0].astype(out_dtype)


# ---------------------------------------------------------------------------
# Deterministic parameter init (shapes from nn.GRUCell + the two gamma vectors)
# ---------------------------------------------------------------------------
def init_params(key, input_size, hid_dim, num_layers):
    params = []
    in_dim = input_size
    bound = 1.0 / (hid_dim ** 0.5)
    for _ in range(num_layers):
        key, k1, k2, k3, k4 = jax.random.split(key, 5)
        w_ih = jax.random.uniform(k1, (3 * hid_dim, in_dim), jnp.float32, -bound, bound)
        w_hh = jax.random.uniform(k2, (3 * hid_dim, hid_dim), jnp.float32, -bound, bound)
        b_ih = jax.random.uniform(k3, (3 * hid_dim,), jnp.float32, -bound, bound)
        b_hh = jax.random.uniform(k4, (3 * hid_dim,), jnp.float32, -bound, bound)
        g_ih = jnp.ones((3 * hid_dim,), jnp.float32)
        g_hh = jnp.ones((3 * hid_dim,), jnp.float32)
        params.append(dict(
            w_ih_t=w_ih.T,                    # (in_dim, 3H): kernel does x @ w
            w_hh_t=w_hh.T,                    # (H, 3H)
            b_ih=b_ih.reshape(1, -1),
            b_hh=b_hh.reshape(1, -1),
            g_ih=g_ih.reshape(1, -1),
            g_hh=g_hh.reshape(1, -1),
        ))
        in_dim = hid_dim
    return params


# ---------------------------------------------------------------------------
# Pure-JAX reference mirroring the PyTorch code line-by-line (per-slice
# matmuls, two-pass unbiased std, divide) for verification.
# ---------------------------------------------------------------------------
def reference_forward(xs, h0, params, matmul_dtype=None):
    L, _, H = h0.shape

    def mm(a, b):
        if matmul_dtype is not None:
            a = a.astype(matmul_dtype)
            b = b.astype(matmul_dtype)
        return jnp.dot(a, b, preferred_element_type=jnp.float32)

    def ln_x(v, g, b):
        mean = jnp.mean(v, axis=1, keepdims=True)
        var = jnp.sum((v - mean) ** 2, axis=1, keepdims=True) / (v.shape[1] - 1)
        return g * ((v - mean) / jnp.sqrt(var)) + b

    def ln_h(v, g, b):
        mean = jnp.mean(v, axis=1, keepdims=True)
        return g * (v - mean) + b

    outputs = []
    h_t = [h0[l] for l in range(L)]
    for x_t in xs:
        inp = x_t
        new_h = []
        for l, p in enumerate(params):
            wi, wh = p["w_ih_t"], p["w_hh_t"]
            bi, bh, gi, gh = p["b_ih"], p["b_hh"], p["g_ih"], p["g_hh"]
            h_prev = h_t[l]
            ih_rz = ln_x(mm(inp, wi[:, :2 * H]), gi[:, :2 * H], bi[:, :2 * H])
            hh_rz = ln_h(mm(h_prev, wh[:, :2 * H]), gh[:, :2 * H], bh[:, :2 * H])
            rz = jax.nn.sigmoid(ih_rz + hh_rz)
            r, z = rz[:, :H], rz[:, H:]
            ih_n = ln_x(mm(inp, wi[:, 2 * H:]), gi[:, 2 * H:], bi[:, 2 * H:])
            hh_n = ln_h(mm(h_prev, wh[:, 2 * H:]), gh[:, 2 * H:], bh[:, 2 * H:])
            n = jnp.tanh(ih_n + r * hh_n)
            h_new = (1.0 - z) * n + z * h_prev
            new_h.append(h_new)
            inp = h_new
        h_t = new_h
        outputs.append(inp)
    return jnp.stack(outputs), jnp.stack(h_t)


if __name__ == "__main__":
    SEQ, BATCH, IN_DIM, HID, LAYERS = 8, 4, 16, 32, 2

    key = jax.random.PRNGKey(0)
    key, kx, kh, kp = jax.random.split(key, 4)
    xs = jax.random.normal(kx, (SEQ, BATCH, IN_DIM), jnp.float32)
    h0 = jax.random.normal(kh, (LAYERS, BATCH, HID), jnp.float32)
    params = init_params(kp, IN_DIM, HID, LAYERS)

    # --- f32 matmul path: tight check against the PyTorch-equivalent ref ---
    outs, h_t = normalized_gru_forward(xs, h0, params)
    outs = jax.block_until_ready(outs)
    h_t = jax.block_until_ready(h_t)

    ref_outs, ref_h_t = reference_forward(xs, h0, params)

    assert outs.shape == (SEQ, BATCH, HID)
    assert h_t.shape == (LAYERS, BATCH, HID)
    assert jnp.allclose(outs, ref_outs, atol=1e-4, rtol=1e-4)
    assert jnp.allclose(h_t, ref_h_t, atol=1e-4, rtol=1e-4)

    # --- bf16 matmul path (MXU throughput): check vs a bf16-matmul ref ---
    outs_bf, h_t_bf = normalized_gru_forward(xs, h0, params,
                                             matmul_dtype=jnp.bfloat16)
    outs_bf = jax.block_until_ready(outs_bf)
    ref_outs_bf, ref_h_t_bf = reference_forward(xs, h0, params,
                                                matmul_dtype=jnp.bfloat16)
    assert jnp.allclose(outs_bf, ref_outs_bf, atol=5e-2, rtol=5e-2)
    assert jnp.allclose(h_t_bf, ref_h_t_bf, atol=5e-2, rtol=5e-2)

    print("KERNEL_OK")
</pallas_src>

<mosaic_0001>
module attributes {stable_mosaic.version = 11 : i64} {
  func.func @kernel(%arg0: i32, %arg1: memref<8x8x96xf32, #tpu.memory_space<vmem>>, %arg2: memref<2x8x32xf32, #tpu.memory_space<vmem>>, %arg3: memref<32x96xf32, #tpu.memory_space<vmem>>, %arg4: memref<1x96xf32, #tpu.memory_space<vmem>>, %arg5: memref<1x96xf32, #tpu.memory_space<vmem>>, %arg6: memref<32x96xf32, #tpu.memory_space<vmem>>, %arg7: memref<32x96xf32, #tpu.memory_space<vmem>>, %arg8: memref<1x96xf32, #tpu.memory_space<vmem>>, %arg9: memref<1x96xf32, #tpu.memory_space<vmem>>, %arg10: memref<1x96xf32, #tpu.memory_space<vmem>>, %arg11: memref<1x96xf32, #tpu.memory_space<vmem>>, %arg12: memref<8x8x32xf32, #tpu.memory_space<vmem>>, %arg13: memref<2x8x32xf32, #tpu.memory_space<vmem>>) attributes {dimension_semantics = [#tpu.dimension_semantics<arbitrary>], iteration_bounds = array<i64: 1>, scalar_prefetch = 0 : i64, scratch_operands = 0 : i64, tpu.core_type = #tpu.core_type<tc>, window_params = [{transform_indices = @transform_0, window_bounds = array<i64: 8, 8, 96>}, {pipeline_mode = #tpu.pipeline_mode<synchronous>, transform_indices = @transform_1, window_bounds = array<i64: 2, 8, 32>}, {pipeline_mode = #tpu.pipeline_mode<synchronous>, transform_indices = @transform_2, window_bounds = array<i64: 32, 96>}, {pipeline_mode = #tpu.pipeline_mode<synchronous>, transform_indices = @transform_3, window_bounds = array<i64: 1, 96>}, {pipeline_mode = #tpu.pipeline_mode<synchronous>, transform_indices = @transform_4, window_bounds = array<i64: 1, 96>}, {pipeline_mode = #tpu.pipeline_mode<synchronous>, transform_indices = @transform_5, window_bounds = array<i64: 32, 96>}, {pipeline_mode = #tpu.pipeline_mode<synchronous>, transform_indices = @transform_6, window_bounds = array<i64: 32, 96>}, {pipeline_mode = #tpu.pipeline_mode<synchronous>, transform_indices = @transform_7, window_bounds = array<i64: 1, 96>}, {pipeline_mode = #tpu.pipeline_mode<synchronous>, transform_indices = @transform_8, window_bounds = array<i64: 1, 96>}, {pipeline_mode = #tpu.pipeline_mode<synchronous>, transform_indices = @transform_9, window_bounds = array<i64: 1, 96>}, {pipeline_mode = #tpu.pipeline_mode<synchronous>, transform_indices = @transform_10, window_bounds = array<i64: 1, 96>}, {transform_indices = @transform_11, window_bounds = array<i64: 8, 8, 32>}, {pipeline_mode = #tpu.pipeline_mode<synchronous>, transform_indices = @transform_12, window_bounds = array<i64: 2, 8, 32>}]} {
    %c0_i32 = arith.constant 0 : i32
    %0 = arith.cmpi eq, %arg0, %c0_i32 : i32
    %1 = arith.extui %0 : i1 to i32
    %c0_i32_0 = arith.constant 0 : i32
    %2 = arith.cmpi ne, %1, %c0_i32_0 : i32
    scf.if %2 {
      %c0_277 = arith.constant 0 : index
      %c0_278 = arith.constant 0 : index
      %c0_279 = arith.constant 0 : index
      %1066 = vector.load %arg2[%c0_277, %c0_278, %c0_279] : memref<2x8x32xf32, #tpu.memory_space<vmem>>, vector<2x8x32xf32>
      %c0_280 = arith.constant 0 : index
      %c0_281 = arith.constant 0 : index
      %c0_282 = arith.constant 0 : index
      %1067 = vector.load %arg13[%c0_280, %c0_281, %c0_282] : memref<2x8x32xf32, #tpu.memory_space<vmem>>, vector<2x8x32xf32>
      tpu.vector_store %arg13[%c0_280, %c0_281, %c0_282], %1066 {strides = array<i32>} : memref<2x8x32xf32, #tpu.memory_space<vmem>>, vector<2x8x32xf32>,
    } else {
    }
    %c0 = arith.constant 0 : index
    %c0_1 = arith.constant 0 : index
    %3 = vector.load %arg3[%c0, %c0_1] : memref<32x96xf32, #tpu.memory_space<vmem>>, vector<32x96xf32>
    %c0_2 = arith.constant 0 : index
    %c0_3 = arith.constant 0 : index
    %4 = vector.load %arg4[%c0_2, %c0_3] : memref<1x96xf32, #tpu.memory_space<vmem>>, vector<1x96xf32>
    %c0_4 = arith.constant 0 : index
    %c0_5 = arith.constant 0 : index
    %5 = vector.load %arg5[%c0_4, %c0_5] : memref<1x96xf32, #tpu.memory_space<vmem>>, vector<1x96xf32>
    %6 = vector.extract_strided_slice %5 {offsets = [0, 0], sizes = [1, 64], strides = [1, 1]} : vector<1x96xf32> to vector<1x64xf32>
    %7 = vector.shape_cast %6 : vector<1x64xf32> to vector<1x64xf32>
    %8 = vector.broadcast %7 : vector<1x64xf32> to vector<8x64xf32>
    %9 = vector.extract_strided_slice %4 {offsets = [0, 0], sizes = [1, 64], strides = [1, 1]} : vector<1x96xf32> to vector<1x64xf32>
    %10 = vector.shape_cast %9 : vector<1x64xf32> to vector<1x64xf32>
    %11 = vector.broadcast %10 : vector<1x64xf32> to vector<8x64xf32>
    %12 = vector.extract_strided_slice %5 {offsets = [0, 64], sizes = [1, 32], strides = [1, 1]} : vector<1x96xf32> to vector<1x32xf32>
    %13 = vector.shape_cast %12 : vector<1x32xf32> to vector<1x32xf32>
    %14 = vector.broadcast %13 : vector<1x32xf32> to vector<8x32xf32>
    %15 = vector.extract_strided_slice %4 {offsets = [0, 64], sizes = [1, 32], strides = [1, 1]} : vector<1x96xf32> to vector<1x32xf32>
    %16 = vector.shape_cast %15 : vector<1x32xf32> to vector<1x32xf32>
    %17 = vector.broadcast %16 : vector<1x32xf32> to vector<8x32xf32>
    %c0_6 = arith.constant 0 : index
    %c0_7 = arith.constant 0 : index
    %18 = vector.load %arg6[%c0_6, %c0_7] : memref<32x96xf32, #tpu.memory_space<vmem>>, vector<32x96xf32>
    %c0_8 = arith.constant 0 : index
    %c0_9 = arith.constant 0 : index
    %19 = vector.load %arg7[%c0_8, %c0_9] : memref<32x96xf32, #tpu.memory_space<vmem>>, vector<32x96xf32>
    %c0_10 = arith.constant 0 : index
    %c0_11 = arith.constant 0 : index
    %20 = vector.load %arg8[%c0_10, %c0_11] : memref<1x96xf32, #tpu.memory_space<vmem>>, vector<1x96xf32>
    %c0_12 = arith.constant 0 : index
    %c0_13 = arith.constant 0 : index
    %21 = vector.load %arg9[%c0_12, %c0_13] : memref<1x96xf32, #tpu.memory_space<vmem>>, vector<1x96xf32>
    %c0_14 = arith.constant 0 : index
    %c0_15 = arith.constant 0 : index
    %22 = vector.load %arg10[%c0_14, %c0_15] : memref<1x96xf32, #tpu.memory_space<vmem>>, vector<1x96xf32>
    %c0_16 = arith.constant 0 : index
    %c0_17 = arith.constant 0 : index
    %23 = vector.load %arg11[%c0_16, %c0_17] : memref<1x96xf32, #tpu.memory_space<vmem>>, vector<1x96xf32>
    %24 = vector.extract_strided_slice %22 {offsets = [0, 0], sizes = [1, 64], strides = [1, 1]} : vector<1x96xf32> to vector<1x64xf32>
    %25 = vector.shape_cast %24 : vector<1x64xf32> to vector<1x64xf32>
    %26 = vector.broadcast %25 : vector<1x64xf32> to vector<8x64xf32>
    %27 = vector.extract_strided_slice %20 {offsets = [0, 0], sizes = [1, 64], strides = [1, 1]} : vector<1x96xf32> to vector<1x64xf32>
    %28 = vector.shape_cast %27 : vector<1x64xf32> to vector<1x64xf32>
    %29 = vector.broadcast %28 : vector<1x64xf32> to vector<8x64xf32>
    %30 = vector.extract_strided_slice %22 {offsets = [0, 64], sizes = [1, 32], strides = [1, 1]} : vector<1x96xf32> to vector<1x32xf32>
    %31 = vector.shape_cast %30 : vector<1x32xf32> to vector<1x32xf32>
    %32 = vector.broadcast %31 : vector<1x32xf32> to vector<8x32xf32>
    %33 = vector.extract_strided_slice %20 {offsets = [0, 64], sizes = [1, 32], strides = [1, 1]} : vector<1x96xf32> to vector<1x32xf32>
    %34 = vector.shape_cast %33 : vector<1x32xf32> to vector<1x32xf32>
    %35 = vector.broadcast %34 : vector<1x32xf32> to vector<8x32xf32>
    %36 = vector.extract_strided_slice %23 {offsets = [0, 0], sizes = [1, 64], strides = [1, 1]} : vector<1x96xf32> to vector<1x64xf32>
    %37 = vector.shape_cast %36 : vector<1x64xf32> to vector<1x64xf32>
    %38 = vector.broadcast %37 : vector<1x64xf32> to vector<8x64xf32>
    %39 = vector.extract_strided_slice %21 {offsets = [0, 0], sizes = [1, 64], strides = [1, 1]} : vector<1x96xf32> to vector<1x64xf32>
    %40 = vector.shape_cast %39 : vector<1x64xf32> to vector<1x64xf32>
    %41 = vector.broadcast %40 : vector<1x64xf32> to vector<8x64xf32>
    %42 = vector.extract_strided_slice %23 {offsets = [0, 64], sizes = [1, 32], strides = [1, 1]} : vector<1x96xf32> to vector<1x32xf32>
    %43 = vector.shape_cast %42 : vector<1x32xf32> to vector<1x32xf32>
    %44 = vector.broadcast %43 : vector<1x32xf32> to vector<8x32xf32>
    %45 = vector.extract_strided_slice %21 {offsets = [0, 64], sizes = [1, 32], strides = [1, 1]} : vector<1x96xf32> to vector<1x32xf32>
    %46 = vector.shape_cast %45 : vector<1x32xf32> to vector<1x32xf32>
    %47 = vector.broadcast %46 : vector<1x32xf32> to vector<8x32xf32>
    %c0_18 = arith.constant 0 : index
    %c0_19 = arith.constant 0 : index
    %c0_20 = arith.constant 0 : index
    %48 = vector.load %arg13[%c0_18, %c0_19, %c0_20] : memref<2x8x32xf32, #tpu.memory_space<vmem>>, vector<1x8x32xf32>
    %49 = vector.shape_cast %48 : vector<1x8x32xf32> to vector<8x32xf32>
    %c1 = arith.constant 1 : index
    %c0_21 = arith.constant 0 : index
    %c0_22 = arith.constant 0 : index
    %50 = vector.load %arg13[%c1, %c0_21, %c0_22] : memref<2x8x32xf32, #tpu.memory_space<vmem>>, vector<1x8x32xf32>
    %51 = vector.shape_cast %50 : vector<1x8x32xf32> to vector<8x32xf32>
    %c0_i32_23 = arith.constant 0 : i32
    %52 = arith.index_cast %c0_i32_23 : i32 to index
    %c0_24 = arith.constant 0 : index
    %c0_25 = arith.constant 0 : index
    %53 = vector.load %arg1[%52, %c0_24, %c0_25] : memref<8x8x96xf32, #tpu.memory_space<vmem>>, vector<1x8x96xf32>
    %54 = vector.shape_cast %53 : vector<1x8x96xf32> to vector<8x96xf32>
    %55 = vector.extract_strided_slice %54 {offsets = [0, 0], sizes = [8, 64], strides = [1, 1]} : vector<8x96xf32> to vector<8x64xf32>
    %56 = vector.extract_strided_slice %54 {offsets = [0, 64], sizes = [8, 32], strides = [1, 1]} : vector<8x96xf32> to vector<8x32xf32>
    %cst = arith.constant dense<0.000000e+00> : vector<8x96xf32>
    %57 = tpu.matmul %49, %3, %cst {dimension_numbers = #tpu.dot_dimension_numbers<[1], [0], [0], [1], [0, 0, 1, 1], [], []>} : vector<8x32xf32>, vector<32x96xf32>, vector<8x96xf32> -> vector<8x96xf32>
    %58 = vector.extract_strided_slice %57 {offsets = [0, 0], sizes = [8, 64], strides = [1, 1]} : vector<8x96xf32> to vector<8x64xf32>
    %cst_26 = arith.constant dense<0.000000e+00> : vector<8xf32>
    %59 = vector.multi_reduction <add>, %58, %cst_26 [1] : vector<8x64xf32> to vector<8xf32>
    %60 = vector.shape_cast %59 : vector<8xf32> to vector<8x1xf32>
    %cst_27 = arith.constant 6.400000e+01 : f32
    %61 = vector.broadcast %cst_27 : f32 to vector<8x1xf32>
    %62 = arith.divf %60, %61 : vector<8x1xf32>
    %63 = vector.broadcast %62 : vector<8x1xf32> to vector<8x64xf32>
    %64 = arith.subf %58, %63 : vector<8x64xf32>
    %65 = arith.mulf %8, %64 : vector<8x64xf32>
    %66 = arith.addf %65, %11 : vector<8x64xf32>
    %67 = vector.extract_strided_slice %57 {offsets = [0, 64], sizes = [8, 32], strides = [1, 1]} : vector<8x96xf32> to vector<8x32xf32>
    %cst_28 = arith.constant dense<0.000000e+00> : vector<8xf32>
    %68 = vector.multi_reduction <add>, %67, %cst_28 [1] : vector<8x32xf32> to vector<8xf32>
    %69 = vector.shape_cast %68 : vector<8xf32> to vector<8x1xf32>
    %cst_29 = arith.constant 3.200000e+01 : f32
    %70 = vector.broadcast %cst_29 : f32 to vector<8x1xf32>
    %71 = arith.divf %69, %70 : vector<8x1xf32>
    %72 = vector.broadcast %71 : vector<8x1xf32> to vector<8x32xf32>
    %73 = arith.subf %67, %72 : vector<8x32xf32>
    %74 = arith.mulf %14, %73 : vector<8x32xf32>
    %75 = arith.addf %74, %17 : vector<8x32xf32>
    %76 = arith.addf %55, %66 : vector<8x64xf32>
    %77 = arith.negf %76 : vector<8x64xf32>
    %78 = math.exp %77 : vector<8x64xf32>
    %cst_30 = arith.constant 1.000000e+00 : f32
    %79 = vector.broadcast %cst_30 : f32 to vector<8x64xf32>
    %80 = arith.addf %79, %78 : vector<8x64xf32>
    %81 = arith.divf %79, %80 : vector<8x64xf32>
    %82 = vector.extract_strided_slice %81 {offsets = [0, 0], sizes = [8, 32], strides = [1, 1]} : vector<8x64xf32> to vector<8x32xf32>
    %83 = vector.extract_strided_slice %81 {offsets = [0, 32], sizes = [8, 32], strides = [1, 1]} : vector<8x64xf32> to vector<8x32xf32>
    %84 = arith.mulf %82, %75 : vector<8x32xf32>
    %85 = arith.addf %56, %84 : vector<8x32xf32>
    %86 = math.tanh %85 : vector<8x32xf32>
    %cst_31 = arith.constant 1.000000e+00 : f32
    %87 = vector.broadcast %cst_31 : f32 to vector<8x32xf32>
    %88 = arith.subf %87, %83 : vector<8x32xf32>
    %89 = arith.mulf %88, %86 : vector<8x32xf32>
    %90 = arith.mulf %83, %49 : vector<8x32xf32>
    %91 = arith.addf %89, %90 : vector<8x32xf32>
    %cst_32 = arith.constant dense<0.000000e+00> : vector<8x96xf32>
    %92 = tpu.matmul %91, %18, %cst_32 {dimension_numbers = #tpu.dot_dimension_numbers<[1], [0], [0], [1], [0, 0, 1, 1], [], []>} : vector<8x32xf32>, vector<32x96xf32>, vector<8x96xf32> -> vector<8x96xf32>
    %93 = vector.extract_strided_slice %92 {offsets = [0, 0], sizes = [8, 64], strides = [1, 1]} : vector<8x96xf32> to vector<8x64xf32>
    %cst_33 = arith.constant dense<0.000000e+00> : vector<8xf32>
    %94 = vector.multi_reduction <add>, %93, %cst_33 [1] : vector<8x64xf32> to vector<8xf32>
    %95 = vector.shape_cast %94 : vector<8xf32> to vector<8x1xf32>
    %cst_34 = arith.constant 6.400000e+01 : f32
    %96 = vector.broadcast %cst_34 : f32 to vector<8x1xf32>
    %97 = arith.divf %95, %96 : vector<8x1xf32>
    %98 = arith.mulf %93, %93 : vector<8x64xf32>
    %cst_35 = arith.constant dense<0.000000e+00> : vector<8xf32>
    %99 = vector.multi_reduction <add>, %98, %cst_35 [1] : vector<8x64xf32> to vector<8xf32>
    %100 = vector.shape_cast %99 : vector<8xf32> to vector<8x1xf32>
    %cst_36 = arith.constant 6.400000e+01 : f32
    %101 = vector.broadcast %cst_36 : f32 to vector<8x1xf32>
    %102 = arith.mulf %101, %97 : vector<8x1xf32>
    %103 = arith.mulf %102, %97 : vector<8x1xf32>
    %104 = arith.subf %100, %103 : vector<8x1xf32>
    %cst_37 = arith.constant 0.000000e+00 : f32
    %105 = vector.broadcast %cst_37 : f32 to vector<8x1xf32>
    %106 = arith.maximumf %104, %105 : vector<8x1xf32>
    %cst_38 = arith.constant 6.300000e+01 : f32
    %107 = vector.broadcast %cst_38 : f32 to vector<8x1xf32>
    %108 = arith.divf %106, %107 : vector<8x1xf32>
    %109 = vector.broadcast %97 : vector<8x1xf32> to vector<8x64xf32>
    %110 = arith.subf %93, %109 : vector<8x64xf32>
    %111 = math.rsqrt %108 : vector<8x1xf32>
    %112 = vector.broadcast %111 : vector<8x1xf32> to vector<8x64xf32>
    %113 = arith.mulf %110, %112 : vector<8x64xf32>
    %114 = arith.mulf %26, %113 : vector<8x64xf32>
    %115 = arith.addf %114, %29 : vector<8x64xf32>
    %116 = vector.extract_strided_slice %92 {offsets = [0, 64], sizes = [8, 32], strides = [1, 1]} : vector<8x96xf32> to vector<8x32xf32>
    %cst_39 = arith.constant dense<0.000000e+00> : vector<8xf32>
    %117 = vector.multi_reduction <add>, %116, %cst_39 [1] : vector<8x32xf32> to vector<8xf32>
    %118 = vector.shape_cast %117 : vector<8xf32> to vector<8x1xf32>
    %cst_40 = arith.constant 3.200000e+01 : f32
    %119 = vector.broadcast %cst_40 : f32 to vector<8x1xf32>
    %120 = arith.divf %118, %119 : vector<8x1xf32>
    %121 = arith.mulf %116, %116 : vector<8x32xf32>
    %cst_41 = arith.constant dense<0.000000e+00> : vector<8xf32>
    %122 = vector.multi_reduction <add>, %121, %cst_41 [1] : vector<8x32xf32> to vector<8xf32>
    %123 = vector.shape_cast %122 : vector<8xf32> to vector<8x1xf32>
    %cst_42 = arith.constant 3.200000e+01 : f32
    %124 = vector.broadcast %cst_42 : f32 to vector<8x1xf32>
    %125 = arith.mulf %124, %120 : vector<8x1xf32>
    %126 = arith.mulf %125, %120 : vector<8x1xf32>
    %127 = arith.subf %123, %126 : vector<8x1xf32>
    %cst_43 = arith.constant 0.000000e+00 : f32
    %128 = vector.broadcast %cst_43 : f32 to vector<8x1xf32>
    %129 = arith.maximumf %127, %128 : vector<8x1xf32>
    %cst_44 = arith.constant 3.100000e+01 : f32
    %130 = vector.broadcast %cst_44 : f32 to vector<8x1xf32>
    %131 = arith.divf %129, %130 : vector<8x1xf32>
    %132 = vector.broadcast %120 : vector<8x1xf32> to vector<8x32xf32>
    %133 = arith.subf %116, %132 : vector<8x32xf32>
    %134 = math.rsqrt %131 : vector<8x1xf32>
    %135 = vector.broadcast %134 : vector<8x1xf32> to vector<8x32xf32>
    %136 = arith.mulf %133, %135 : vector<8x32xf32>
    %137 = arith.mulf %32, %136 : vector<8x32xf32>
    %138 = arith.addf %137, %35 : vector<8x32xf32>
    %cst_45 = arith.constant dense<0.000000e+00> : vector<8x96xf32>
    %139 = tpu.matmul %51, %19, %cst_45 {dimension_numbers = #tpu.dot_dimension_numbers<[1], [0], [0], [1], [0, 0, 1, 1], [], []>} : vector<8x32xf32>, vector<32x96xf32>, vector<8x96xf32> -> vector<8x96xf32>
    %140 = vector.extract_strided_slice %139 {offsets = [0, 0], sizes = [8, 64], strides = [1, 1]} : vector<8x96xf32> to vector<8x64xf32>
    %cst_46 = arith.constant dense<0.000000e+00> : vector<8xf32>
    %141 = vector.multi_reduction <add>, %140, %cst_46 [1] : vector<8x64xf32> to vector<8xf32>
    %142 = vector.shape_cast %141 : vector<8xf32> to vector<8x1xf32>
    %cst_47 = arith.constant 6.400000e+01 : f32
    %143 = vector.broadcast %cst_47 : f32 to vector<8x1xf32>
    %144 = arith.divf %142, %143 : vector<8x1xf32>
    %145 = vector.broadcast %144 : vector<8x1xf32> to vector<8x64xf32>
    %146 = arith.subf %140, %145 : vector<8x64xf32>
    %147 = arith.mulf %38, %146 : vector<8x64xf32>
    %148 = arith.addf %147, %41 : vector<8x64xf32>
    %149 = vector.extract_strided_slice %139 {offsets = [0, 64], sizes = [8, 32], strides = [1, 1]} : vector<8x96xf32> to vector<8x32xf32>
    %cst_48 = arith.constant dense<0.000000e+00> : vector<8xf32>
    %150 = vector.multi_reduction <add>, %149, %cst_48 [1] : vector<8x32xf32> to vector<8xf32>
    %151 = vector.shape_cast %150 : vector<8xf32> to vector<8x1xf32>
    %cst_49 = arith.constant 3.200000e+01 : f32
    %152 = vector.broadcast %cst_49 : f32 to vector<8x1xf32>
    %153 = arith.divf %151, %152 : vector<8x1xf32>
    %154 = vector.broadcast %153 : vector<8x1xf32> to vector<8x32xf32>
    %155 = arith.subf %149, %154 : vector<8x32xf32>
    %156 = arith.mulf %44, %155 : vector<8x32xf32>
    %157 = arith.addf %156, %47 : vector<8x32xf32>
    %158 = arith.addf %115, %148 : vector<8x64xf32>
    %159 = arith.negf %158 : vector<8x64xf32>
    %160 = math.exp %159 : vector<8x64xf32>
    %cst_50 = arith.constant 1.000000e+00 : f32
    %161 = vector.broadcast %cst_50 : f32 to vector<8x64xf32>
    %162 = arith.addf %161, %160 : vector<8x64xf32>
    %163 = arith.divf %161, %162 : vector<8x64xf32>
    %164 = vector.extract_strided_slice %163 {offsets = [0, 0], sizes = [8, 32], strides = [1, 1]} : vector<8x64xf32> to vector<8x32xf32>
    %165 = vector.extract_strided_slice %163 {offsets = [0, 32], sizes = [8, 32], strides = [1, 1]} : vector<8x64xf32> to vector<8x32xf32>
    %166 = arith.mulf %164, %157 : vector<8x32xf32>
    %167 = arith.addf %138, %166 : vector<8x32xf32>
    %168 = math.tanh %167 : vector<8x32xf32>
    %cst_51 = arith.constant 1.000000e+00 : f32
    %169 = vector.broadcast %cst_51 : f32 to vector<8x32xf32>
    %170 = arith.subf %169, %165 : vector<8x32xf32>
    %171 = arith.mulf %170, %168 : vector<8x32xf32>
    %172 = arith.mulf %165, %51 : vector<8x32xf32>
    %173 = arith.addf %171, %172 : vector<8x32xf32>
    %174 = arith.index_cast %c0_i32_23 : i32 to index
    %c0_52 = arith.constant 0 : index
    %c0_53 = arith.constant 0 : index
    %175 = vector.load %arg12[%174, %c0_52, %c0_53] : memref<8x8x32xf32, #tpu.memory_space<vmem>>, vector<1x8x32xf32>
    %176 = vector.shape_cast %175 : vector<1x8x32xf32> to vector<8x32xf32>
    %177 = vector.shape_cast %173 : vector<8x32xf32> to vector<1x8x32xf32>
    tpu.vector_store %arg12[%174, %c0_52, %c0_53], %177 {strides = array<i32>} : memref<8x8x32xf32, #tpu.memory_space<vmem>>, vector<1x8x32xf32>,
    %c1_i32 = arith.constant 1 : i32
    %178 = arith.index_cast %c1_i32 : i32 to index
    %c0_54 = arith.constant 0 : index
    %c0_55 = arith.constant 0 : index
    %179 = vector.load %arg1[%178, %c0_54, %c0_55] : memref<8x8x96xf32, #tpu.memory_space<vmem>>, vector<1x8x96xf32>
    %180 = vector.shape_cast %179 : vector<1x8x96xf32> to vector<8x96xf32>
    %181 = vector.extract_strided_slice %180 {offsets = [0, 0], sizes = [8, 64], strides = [1, 1]} : vector<8x96xf32> to vector<8x64xf32>
    %182 = vector.extract_strided_slice %180 {offsets = [0, 64], sizes = [8, 32], strides = [1, 1]} : vector<8x96xf32> to vector<8x32xf32>
    %cst_56 = arith.constant dense<0.000000e+00> : vector<8x96xf32>
    %183 = tpu.matmul %91, %3, %cst_56 {dimension_numbers = #tpu.dot_dimension_numbers<[1], [0], [0], [1], [0, 0, 1, 1], [], []>} : vector<8x32xf32>, vector<32x96xf32>, vector<8x96xf32> -> vector<8x96xf32>
    %184 = vector.extract_strided_slice %183 {offsets = [0, 0], sizes = [8, 64], strides = [1, 1]} : vector<8x96xf32> to vector<8x64xf32>
    %cst_57 = arith.constant dense<0.000000e+00> : vector<8xf32>
    %185 = vector.multi_reduction <add>, %184, %cst_57 [1] : vector<8x64xf32> to vector<8xf32>
    %186 = vector.shape_cast %185 : vector<8xf32> to vector<8x1xf32>
    %cst_58 = arith.constant 6.400000e+01 : f32
    %187 = vector.broadcast %cst_58 : f32 to vector<8x1xf32>
    %188 = arith.divf %186, %187 : vector<8x1xf32>
    %189 = vector.broadcast %188 : vector<8x1xf32> to vector<8x64xf32>
    %190 = arith.subf %184, %189 : vector<8x64xf32>
    %191 = arith.mulf %8, %190 : vector<8x64xf32>
    %192 = arith.addf %191, %11 : vector<8x64xf32>
    %193 = vector.extract_strided_slice %183 {offsets = [0, 64], sizes = [8, 32], strides = [1, 1]} : vector<8x96xf32> to vector<8x32xf32>
    %cst_59 = arith.constant dense<0.000000e+00> : vector<8xf32>
    %194 = vector.multi_reduction <add>, %193, %cst_59 [1] : vector<8x32xf32> to vector<8xf32>
    %195 = vector.shape_cast %194 : vector<8xf32> to vector<8x1xf32>
    %cst_60 = arith.constant 3.200000e+01 : f32
    %196 = vector.broadcast %cst_60 : f32 to vector<8x1xf32>
    %197 = arith.divf %195, %196 : vector<8x1xf32>
    %198 = vector.broadcast %197 : vector<8x1xf32> to vector<8x32xf32>
    %199 = arith.subf %193, %198 : vector<8x32xf32>
    %200 = arith.mulf %14, %199 : vector<8x32xf32>
    %201 = arith.addf %200, %17 : vector<8x32xf32>
    %202 = arith.addf %181, %192 : vector<8x64xf32>
    %203 = arith.negf %202 : vector<8x64xf32>
    %204 = math.exp %203 : vector<8x64xf32>
    %cst_61 = arith.constant 1.000000e+00 : f32
    %205 = vector.broadcast %cst_61 : f32 to vector<8x64xf32>
    %206 = arith.addf %205, %204 : vector<8x64xf32>
    %207 = arith.divf %205, %206 : vector<8x64xf32>
    %208 = vector.extract_strided_slice %207 {offsets = [0, 0], sizes = [8, 32], strides = [1, 1]} : vector<8x64xf32> to vector<8x32xf32>
    %209 = vector.extract_strided_slice %207 {offsets = [0, 32], sizes = [8, 32], strides = [1, 1]} : vector<8x64xf32> to vector<8x32xf32>
    %210 = arith.mulf %208, %201 : vector<8x32xf32>
    %211 = arith.addf %182, %210 : vector<8x32xf32>
    %212 = math.tanh %211 : vector<8x32xf32>
    %cst_62 = arith.constant 1.000000e+00 : f32
    %213 = vector.broadcast %cst_62 : f32 to vector<8x32xf32>
    %214 = arith.subf %213, %209 : vector<8x32xf32>
    %215 = arith.mulf %214, %212 : vector<8x32xf32>
    %216 = arith.mulf %209, %91 : vector<8x32xf32>
    %217 = arith.addf %215, %216 : vector<8x32xf32>
    %cst_63 = arith.constant dense<0.000000e+00> : vector<8x96xf32>
    %218 = tpu.matmul %217, %18, %cst_63 {dimension_numbers = #tpu.dot_dimension_numbers<[1], [0], [0], [1], [0, 0, 1, 1], [], []>} : vector<8x32xf32>, vector<32x96xf32>, vector<8x96xf32> -> vector<8x96xf32>
    %219 = vector.extract_strided_slice %218 {offsets = [0, 0], sizes = [8, 64], strides = [1, 1]} : vector<8x96xf32> to vector<8x64xf32>
    %cst_64 = arith.constant dense<0.000000e+00> : vector<8xf32>
    %220 = vector.multi_reduction <add>, %219, %cst_64 [1] : vector<8x64xf32> to vector<8xf32>
    %221 = vector.shape_cast %220 : vector<8xf32> to vector<8x1xf32>
    %cst_65 = arith.constant 6.400000e+01 : f32
    %222 = vector.broadcast %cst_65 : f32 to vector<8x1xf32>
    %223 = arith.divf %221, %222 : vector<8x1xf32>
    %224 = arith.mulf %219, %219 : vector<8x64xf32>
    %cst_66 = arith.constant dense<0.000000e+00> : vector<8xf32>
    %225 = vector.multi_reduction <add>, %224, %cst_66 [1] : vector<8x64xf32> to vector<8xf32>
    %226 = vector.shape_cast %225 : vector<8xf32> to vector<8x1xf32>
    %cst_67 = arith.constant 6.400000e+01 : f32
    %227 = vector.broadcast %cst_67 : f32 to vector<8x1xf32>
    %228 = arith.mulf %227, %223 : vector<8x1xf32>
    %229 = arith.mulf %228, %223 : vector<8x1xf32>
    %230 = arith.subf %226, %229 : vector<8x1xf32>
    %cst_68 = arith.constant 0.000000e+00 : f32
    %231 = vector.broadcast %cst_68 : f32 to vector<8x1xf32>
    %232 = arith.maximumf %230, %231 : vector<8x1xf32>
    %cst_69 = arith.constant 6.300000e+01 : f32
    %233 = vector.broadcast %cst_69 : f32 to vector<8x1xf32>
    %234 = arith.divf %232, %233 : vector<8x1xf32>
    %235 = vector.broadcast %223 : vector<8x1xf32> to vector<8x64xf32>
    %236 = arith.subf %219, %235 : vector<8x64xf32>
    %237 = math.rsqrt %234 : vector<8x1xf32>
    %238 = vector.broadcast %237 : vector<8x1xf32> to vector<8x64xf32>
    %239 = arith.mulf %236, %238 : vector<8x64xf32>
    %240 = arith.mulf %26, %239 : vector<8x64xf32>
    %241 = arith.addf %240, %29 : vector<8x64xf32>
    %242 = vector.extract_strided_slice %218 {offsets = [0, 64], sizes = [8, 32], strides = [1, 1]} : vector<8x96xf32> to vector<8x32xf32>
    %cst_70 = arith.constant dense<0.000000e+00> : vector<8xf32>
    %243 = vector.multi_reduction <add>, %242, %cst_70 [1] : vector<8x32xf32> to vector<8xf32>
    %244 = vector.shape_cast %243 : vector<8xf32> to vector<8x1xf32>
    %cst_71 = arith.constant 3.200000e+01 : f32
    %245 = vector.broadcast %cst_71 : f32 to vector<8x1xf32>
    %246 = arith.divf %244, %245 : vector<8x1xf32>
    %247 = arith.mulf %242, %242 : vector<8x32xf32>
    %cst_72 = arith.constant dense<0.000000e+00> : vector<8xf32>
    %248 = vector.multi_reduction <add>, %247, %cst_72 [1] : vector<8x32xf32> to vector<8xf32>
    %249 = vector.shape_cast %248 : vector<8xf32> to vector<8x1xf32>
    %cst_73 = arith.constant 3.200000e+01 : f32
    %250 = vector.broadcast %cst_73 : f32 to vector<8x1xf32>
    %251 = arith.mulf %250, %246 : vector<8x1xf32>
    %252 = arith.mulf %251, %246 : vector<8x1xf32>
    %253 = arith.subf %249, %252 : vector<8x1xf32>
    %cst_74 = arith.constant 0.000000e+00 : f32
    %254 = vector.broadcast %cst_74 : f32 to vector<8x1xf32>
    %255 = arith.maximumf %253, %254 : vector<8x1xf32>
    %cst_75 = arith.constant 3.100000e+01 : f32
    %256 = vector.broadcast %cst_75 : f32 to vector<8x1xf32>
    %257 = arith.divf %255, %256 : vector<8x1xf32>
    %258 = vector.broadcast %246 : vector<8x1xf32> to vector<8x32xf32>
    %259 = arith.subf %242, %258 : vector<8x32xf32>
    %260 = math.rsqrt %257 : vector<8x1xf32>
    %261 = vector.broadcast %260 : vector<8x1xf32> to vector<8x32xf32>
    %262 = arith.mulf %259, %261 : vector<8x32xf32>
    %263 = arith.mulf %32, %262 : vector<8x32xf32>
    %264 = arith.addf %263, %35 : vector<8x32xf32>
    %cst_76 = arith.constant dense<0.000000e+00> : vector<8x96xf32>
    %265 = tpu.matmul %173, %19, %cst_76 {dimension_numbers = #tpu.dot_dimension_numbers<[1], [0], [0], [1], [0, 0, 1, 1], [], []>} : vector<8x32xf32>, vector<32x96xf32>, vector<8x96xf32> -> vector<8x96xf32>
    %266 = vector.extract_strided_slice %265 {offsets = [0, 0], sizes = [8, 64], strides = [1, 1]} : vector<8x96xf32> to vector<8x64xf32>
    %cst_77 = arith.constant dense<0.000000e+00> : vector<8xf32>
    %267 = vector.multi_reduction <add>, %266, %cst_77 [1] : vector<8x64xf32> to vector<8xf32>
    %268 = vector.shape_cast %267 : vector<8xf32> to vector<8x1xf32>
    %cst_78 = arith.constant 6.400000e+01 : f32
    %269 = vector.broadcast %cst_78 : f32 to vector<8x1xf32>
    %270 = arith.divf %268, %269 : vector<8x1xf32>
    %271 = vector.broadcast %270 : vector<8x1xf32> to vector<8x64xf32>
    %272 = arith.subf %266, %271 : vector<8x64xf32>
    %273 = arith.mulf %38, %272 : vector<8x64xf32>
    %274 = arith.addf %273, %41 : vector<8x64xf32>
    %275 = vector.extract_strided_slice %265 {offsets = [0, 64], sizes = [8, 32], strides = [1, 1]} : vector<8x96xf32> to vector<8x32xf32>
    %cst_79 = arith.constant dense<0.000000e+00> : vector<8xf32>
    %276 = vector.multi_reduction <add>, %275, %cst_79 [1] : vector<8x32xf32> to vector<8xf32>
    %277 = vector.shape_cast %276 : vector<8xf32> to vector<8x1xf32>
    %cst_80 = arith.constant 3.200000e+01 : f32
    %278 = vector.broadcast %cst_80 : f32 to vector<8x1xf32>
    %279 = arith.divf %277, %278 : vector<8x1xf32>
    %280 = vector.broadcast %279 : vector<8x1xf32> to vector<8x32xf32>
    %281 = arith.subf %275, %280 : vector<8x32xf32>
    %282 = arith.mulf %44, %281 : vector<8x32xf32>
    %283 = arith.addf %282, %47 : vector<8x32xf32>
    %284 = arith.addf %241, %274 : vector<8x64xf32>
    %285 = arith.negf %284 : vector<8x64xf32>
    %286 = math.exp %285 : vector<8x64xf32>
    %cst_81 = arith.constant 1.000000e+00 : f32
    %287 = vector.broadcast %cst_81 : f32 to vector<8x64xf32>
    %288 = arith.addf %287, %286 : vector<8x64xf32>
    %289 = arith.divf %287, %288 : vector<8x64xf32>
    %290 = vector.extract_strided_slice %289 {offsets = [0, 0], sizes = [8, 32], strides = [1, 1]} : vector<8x64xf32> to vector<8x32xf32>
    %291 = vector.extract_strided_slice %289 {offsets = [0, 32], sizes = [8, 32], strides = [1, 1]} : vector<8x64xf32> to vector<8x32xf32>
    %292 = arith.mulf %290, %283 : vector<8x32xf32>
    %293 = arith.addf %264, %292 : vector<8x32xf32>
    %294 = math.tanh %293 : vector<8x32xf32>
    %cst_82 = arith.constant 1.000000e+00 : f32
    %295 = vector.broadcast %cst_82 : f32 to vector<8x32xf32>
    %296 = arith.subf %295, %291 : vector<8x32xf32>
    %297 = arith.mulf %296, %294 : vector<8x32xf32>
    %298 = arith.mulf %291, %173 : vector<8x32xf32>
    %299 = arith.addf %297, %298 : vector<8x32xf32>
    %300 = arith.index_cast %c1_i32 : i32 to index
    %c0_83 = arith.constant 0 : index
    %c0_84 = arith.constant 0 : index
    %301 = vector.load %arg12[%300, %c0_83, %c0_84] : memref<8x8x32xf32, #tpu.memory_space<vmem>>, vector<1x8x32xf32>
    %302 = vector.shape_cast %301 : vector<1x8x32xf32> to vector<8x32xf32>
    %303 = vector.shape_cast %299 : vector<8x32xf32> to vector<1x8x32xf32>
    tpu.vector_store %arg12[%300, %c0_83, %c0_84], %303 {strides = array<i32>} : memref<8x8x32xf32, #tpu.memory_space<vmem>>, vector<1x8x32xf32>,
    %c2_i32 = arith.constant 2 : i32
    %304 = arith.index_cast %c2_i32 : i32 to index
    %c0_85 = arith.constant 0 : index
    %c0_86 = arith.constant 0 : index
    %305 = vector.load %arg1[%304, %c0_85, %c0_86] : memref<8x8x96xf32, #tpu.memory_space<vmem>>, vector<1x8x96xf32>
    %306 = vector.shape_cast %305 : vector<1x8x96xf32> to vector<8x96xf32>
    %307 = vector.extract_strided_slice %306 {offsets = [0, 0], sizes = [8, 64], strides = [1, 1]} : vector<8x96xf32> to vector<8x64xf32>
    %308 = vector.extract_strided_slice %306 {offsets = [0, 64], sizes = [8, 32], strides = [1, 1]} : vector<8x96xf32> to vector<8x32xf32>
    %cst_87 = arith.constant dense<0.000000e+00> : vector<8x96xf32>
    %309 = tpu.matmul %217, %3, %cst_87 {dimension_numbers = #tpu.dot_dimension_numbers<[1], [0], [0], [1], [0, 0, 1, 1], [], []>} : vector<8x32xf32>, vector<32x96xf32>, vector<8x96xf32> -> vector<8x96xf32>
    %310 = vector.extract_strided_slice %309 {offsets = [0, 0], sizes = [8, 64], strides = [1, 1]} : vector<8x96xf32> to vector<8x64xf32>
    %cst_88 = arith.constant dense<0.000000e+00> : vector<8xf32>
    %311 = vector.multi_reduction <add>, %310, %cst_88 [1] : vector<8x64xf32> to vector<8xf32>
    %312 = vector.shape_cast %311 : vector<8xf32> to vector<8x1xf32>
    %cst_89 = arith.constant 6.400000e+01 : f32
    %313 = vector.broadcast %cst_89 : f32 to vector<8x1xf32>
    %314 = arith.divf %312, %313 : vector<8x1xf32>
    %315 = vector.broadcast %314 : vector<8x1xf32> to vector<8x64xf32>
    %316 = arith.subf %310, %315 : vector<8x64xf32>
    %317 = arith.mulf %8, %316 : vector<8x64xf32>
    %318 = arith.addf %317, %11 : vector<8x64xf32>
    %319 = vector.extract_strided_slice %309 {offsets = [0, 64], sizes = [8, 32], strides = [1, 1]} : vector<8x96xf32> to vector<8x32xf32>
    %cst_90 = arith.constant dense<0.000000e+00> : vector<8xf32>
    %320 = vector.multi_reduction <add>, %319, %cst_90 [1] : vector<8x32xf32> to vector<8xf32>
    %321 = vector.shape_cast %320 : vector<8xf32> to vector<8x1xf32>
    %cst_91 = arith.constant 3.200000e+01 : f32
    %322 = vector.broadcast %cst_91 : f32 to vector<8x1xf32>
    %323 = arith.divf %321, %322 : vector<8x1xf32>
    %324 = vector.broadcast %323 : vector<8x1xf32> to vector<8x32xf32>
    %325 = arith.subf %319, %324 : vector<8x32xf32>
    %326 = arith.mulf %14, %325 : vector<8x32xf32>
    %327 = arith.addf %326, %17 : vector<8x32xf32>
    %328 = arith.addf %307, %318 : vector<8x64xf32>
    %329 = arith.negf %328 : vector<8x64xf32>
    %330 = math.exp %329 : vector<8x64xf32>
    %cst_92 = arith.constant 1.000000e+00 : f32
    %331 = vector.broadcast %cst_92 : f32 to vector<8x64xf32>
    %332 = arith.addf %331, %330 : vector<8x64xf32>
    %333 = arith.divf %331, %332 : vector<8x64xf32>
    %334 = vector.extract_strided_slice %333 {offsets = [0, 0], sizes = [8, 32], strides = [1, 1]} : vector<8x64xf32> to vector<8x32xf32>
    %335 = vector.extract_strided_slice %333 {offsets = [0, 32], sizes = [8, 32], strides = [1, 1]} : vector<8x64xf32> to vector<8x32xf32>
    %336 = arith.mulf %334, %327 : vector<8x32xf32>
    %337 = arith.addf %308, %336 : vector<8x32xf32>
    %338 = math.tanh %337 : vector<8x32xf32>
    %cst_93 = arith.constant 1.000000e+00 : f32
    %339 = vector.broadcast %cst_93 : f32 to vector<8x32xf32>
    %340 = arith.subf %339, %335 : vector<8x32xf32>
    %341 = arith.mulf %340, %338 : vector<8x32xf32>
    %342 = arith.mulf %335, %217 : vector<8x32xf32>
    %343 = arith.addf %341, %342 : vector<8x32xf32>
    %cst_94 = arith.constant dense<0.000000e+00> : vector<8x96xf32>
    %344 = tpu.matmul %343, %18, %cst_94 {dimension_numbers = #tpu.dot_dimension_numbers<[1], [0], [0], [1], [0, 0, 1, 1], [], []>} : vector<8x32xf32>, vector<32x96xf32>, vector<8x96xf32> -> vector<8x96xf32>
    %345 = vector.extract_strided_slice %344 {offsets = [0, 0], sizes = [8, 64], strides = [1, 1]} : vector<8x96xf32> to vector<8x64xf32>
    %cst_95 = arith.constant dense<0.000000e+00> : vector<8xf32>
    %346 = vector.multi_reduction <add>, %345, %cst_95 [1] : vector<8x64xf32> to vector<8xf32>
    %347 = vector.shape_cast %346 : vector<8xf32> to vector<8x1xf32>
    %cst_96 = arith.constant 6.400000e+01 : f32
    %348 = vector.broadcast %cst_96 : f32 to vector<8x1xf32>
    %349 = arith.divf %347, %348 : vector<8x1xf32>
    %350 = arith.mulf %345, %345 : vector<8x64xf32>
    %cst_97 = arith.constant dense<0.000000e+00> : vector<8xf32>
    %351 = vector.multi_reduction <add>, %350, %cst_97 [1] : vector<8x64xf32> to vector<8xf32>
    %352 = vector.shape_cast %351 : vector<8xf32> to vector<8x1xf32>
    %cst_98 = arith.constant 6.400000e+01 : f32
    %353 = vector.broadcast %cst_98 : f32 to vector<8x1xf32>
    %354 = arith.mulf %353, %349 : vector<8x1xf32>
    %355 = arith.mulf %354, %349 : vector<8x1xf32>
    %356 = arith.subf %352, %355 : vector<8x1xf32>
    %cst_99 = arith.constant 0.000000e+00 : f32
    %357 = vector.broadcast %cst_99 : f32 to vector<8x1xf32>
    %358 = arith.maximumf %356, %357 : vector<8x1xf32>
    %cst_100 = arith.constant 6.300000e+01 : f32
    %359 = vector.broadcast %cst_100 : f32 to vector<8x1xf32>
    %360 = arith.divf %358, %359 : vector<8x1xf32>
    %361 = vector.broadcast %349 : vector<8x1xf32> to vector<8x64xf32>
    %362 = arith.subf %345, %361 : vector<8x64xf32>
    %363 = math.rsqrt %360 : vector<8x1xf32>
    %364 = vector.broadcast %363 : vector<8x1xf32> to vector<8x64xf32>
    %365 = arith.mulf %362, %364 : vector<8x64xf32>
    %366 = arith.mulf %26, %365 : vector<8x64xf32>
    %367 = arith.addf %366, %29 : vector<8x64xf32>
    %368 = vector.extract_strided_slice %344 {offsets = [0, 64], sizes = [8, 32], strides = [1, 1]} : vector<8x96xf32> to vector<8x32xf32>
    %cst_101 = arith.constant dense<0.000000e+00> : vector<8xf32>
    %369 = vector.multi_reduction <add>, %368, %cst_101 [1] : vector<8x32xf32> to vector<8xf32>
    %370 = vector.shape_cast %369 : vector<8xf32> to vector<8x1xf32>
    %cst_102 = arith.constant 3.200000e+01 : f32
    %371 = vector.broadcast %cst_102 : f32 to vector<8x1xf32>
    %372 = arith.divf %370, %371 : vector<8x1xf32>
    %373 = arith.mulf %368, %368 : vector<8x32xf32>
    %cst_103 = arith.constant dense<0.000000e+00> : vector<8xf32>
    %374 = vector.multi_reduction <add>, %373, %cst_103 [1] : vector<8x32xf32> to vector<8xf32>
    %375 = vector.shape_cast %374 : vector<8xf32> to vector<8x1xf32>
    %cst_104 = arith.constant 3.200000e+01 : f32
    %376 = vector.broadcast %cst_104 : f32 to vector<8x1xf32>
    %377 = arith.mulf %376, %372 : vector<8x1xf32>
    %378 = arith.mulf %377, %372 : vector<8x1xf32>
    %379 = arith.subf %375, %378 : vector<8x1xf32>
    %cst_105 = arith.constant 0.000000e+00 : f32
    %380 = vector.broadcast %cst_105 : f32 to vector<8x1xf32>
    %381 = arith.maximumf %379, %380 : vector<8x1xf32>
    %cst_106 = arith.constant 3.100000e+01 : f32
    %382 = vector.broadcast %cst_106 : f32 to vector<8x1xf32>
    %383 = arith.divf %381, %382 : vector<8x1xf32>
    %384 = vector.broadcast %372 : vector<8x1xf32> to vector<8x32xf32>
    %385 = arith.subf %368, %384 : vector<8x32xf32>
    %386 = math.rsqrt %383 : vector<8x1xf32>
    %387 = vector.broadcast %386 : vector<8x1xf32> to vector<8x32xf32>
    %388 = arith.mulf %385, %387 : vector<8x32xf32>
    %389 = arith.mulf %32, %388 : vector<8x32xf32>
    %390 = arith.addf %389, %35 : vector<8x32xf32>
    %cst_107 = arith.constant dense<0.000000e+00> : vector<8x96xf32>
    %391 = tpu.matmul %299, %19, %cst_107 {dimension_numbers = #tpu.dot_dimension_numbers<[1], [0], [0], [1], [0, 0, 1, 1], [], []>} : vector<8x32xf32>, vector<32x96xf32>, vector<8x96xf32> -> vector<8x96xf32>
    %392 = vector.extract_strided_slice %391 {offsets = [0, 0], sizes = [8, 64], strides = [1, 1]} : vector<8x96xf32> to vector<8x64xf32>
    %cst_108 = arith.constant dense<0.000000e+00> : vector<8xf32>
    %393 = vector.multi_reduction <add>, %392, %cst_108 [1] : vector<8x64xf32> to vector<8xf32>
    %394 = vector.shape_cast %393 : vector<8xf32> to vector<8x1xf32>
    %cst_109 = arith.constant 6.400000e+01 : f32
    %395 = vector.broadcast %cst_109 : f32 to vector<8x1xf32>
    %396 = arith.divf %394, %395 : vector<8x1xf32>
    %397 = vector.broadcast %396 : vector<8x1xf32> to vector<8x64xf32>
    %398 = arith.subf %392, %397 : vector<8x64xf32>
    %399 = arith.mulf %38, %398 : vector<8x64xf32>
    %400 = arith.addf %399, %41 : vector<8x64xf32>
    %401 = vector.extract_strided_slice %391 {offsets = [0, 64], sizes = [8, 32], strides = [1, 1]} : vector<8x96xf32> to vector<8x32xf32>
    %cst_110 = arith.constant dense<0.000000e+00> : vector<8xf32>
    %402 = vector.multi_reduction <add>, %401, %cst_110 [1] : vector<8x32xf32> to vector<8xf32>
    %403 = vector.shape_cast %402 : vector<8xf32> to vector<8x1xf32>
    %cst_111 = arith.constant 3.200000e+01 : f32
    %404 = vector.broadcast %cst_111 : f32 to vector<8x1xf32>
    %405 = arith.divf %403, %404 : vector<8x1xf32>
    %406 = vector.broadcast %405 : vector<8x1xf32> to vector<8x32xf32>
    %407 = arith.subf %401, %406 : vector<8x32xf32>
    %408 = arith.mulf %44, %407 : vector<8x32xf32>
    %409 = arith.addf %408, %47 : vector<8x32xf32>
    %410 = arith.addf %367, %400 : vector<8x64xf32>
    %411 = arith.negf %410 : vector<8x64xf32>
    %412 = math.exp %411 : vector<8x64xf32>
    %cst_112 = arith.constant 1.000000e+00 : f32
    %413 = vector.broadcast %cst_112 : f32 to vector<8x64xf32>
    %414 = arith.addf %413, %412 : vector<8x64xf32>
    %415 = arith.divf %413, %414 : vector<8x64xf32>
    %416 = vector.extract_strided_slice %415 {offsets = [0, 0], sizes = [8, 32], strides = [1, 1]} : vector<8x64xf32> to vector<8x32xf32>
    %417 = vector.extract_strided_slice %415 {offsets = [0, 32], sizes = [8, 32], strides = [1, 1]} : vector<8x64xf32> to vector<8x32xf32>
    %418 = arith.mulf %416, %409 : vector<8x32xf32>
    %419 = arith.addf %390, %418 : vector<8x32xf32>
    %420 = math.tanh %419 : vector<8x32xf32>
    %cst_113 = arith.constant 1.000000e+00 : f32
    %421 = vector.broadcast %cst_113 : f32 to vector<8x32xf32>
    %422 = arith.subf %421, %417 : vector<8x32xf32>
    %423 = arith.mulf %422, %420 : vector<8x32xf32>
    %424 = arith.mulf %417, %299 : vector<8x32xf32>
    %425 = arith.addf %423, %424 : vector<8x32xf32>
    %426 = arith.index_cast %c2_i32 : i32 to index
    %c0_114 = arith.constant 0 : index
    %c0_115 = arith.constant 0 : index
    %427 = vector.load %arg12[%426, %c0_114, %c0_115] : memref<8x8x32xf32, #tpu.memory_space<vmem>>, vector<1x8x32xf32>
    %428 = vector.shape_cast %427 : vector<1x8x32xf32> to vector<8x32xf32>
    %429 = vector.shape_cast %425 : vector<8x32xf32> to vector<1x8x32xf32>
    tpu.vector_store %arg12[%426, %c0_114, %c0_115], %429 {strides = array<i32>} : memref<8x8x32xf32, #tpu.memory_space<vmem>>, vector<1x8x32xf32>,
    %c3_i32 = arith.constant 3 : i32
    %430 = arith.index_cast %c3_i32 : i32 to index
    %c0_116 = arith.constant 0 : index
    %c0_117 = arith.constant 0 : index
    %431 = vector.load %arg1[%430, %c0_116, %c0_117] : memref<8x8x96xf32, #tpu.memory_space<vmem>>, vector<1x8x96xf32>
    %432 = vector.shape_cast %431 : vector<1x8x96xf32> to vector<8x96xf32>
    %433 = vector.extract_strided_slice %432 {offsets = [0, 0], sizes = [8, 64], strides = [1, 1]} : vector<8x96xf32> to vector<8x64xf32>
    %434 = vector.extract_strided_slice %432 {offsets = [0, 64], sizes = [8, 32], strides = [1, 1]} : vector<8x96xf32> to vector<8x32xf32>
    %cst_118 = arith.constant dense<0.000000e+00> : vector<8x96xf32>
    %435 = tpu.matmul %343, %3, %cst_118 {dimension_numbers = #tpu.dot_dimension_numbers<[1], [0], [0], [1], [0, 0, 1, 1], [], []>} : vector<8x32xf32>, vector<32x96xf32>, vector<8x96xf32> -> vector<8x96xf32>
    %436 = vector.extract_strided_slice %435 {offsets = [0, 0], sizes = [8, 64], strides = [1, 1]} : vector<8x96xf32> to vector<8x64xf32>
    %cst_119 = arith.constant dense<0.000000e+00> : vector<8xf32>
    %437 = vector.multi_reduction <add>, %436, %cst_119 [1] : vector<8x64xf32> to vector<8xf32>
    %438 = vector.shape_cast %437 : vector<8xf32> to vector<8x1xf32>
    %cst_120 = arith.constant 6.400000e+01 : f32
    %439 = vector.broadcast %cst_120 : f32 to vector<8x1xf32>
    %440 = arith.divf %438, %439 : vector<8x1xf32>
    %441 = vector.broadcast %440 : vector<8x1xf32> to vector<8x64xf32>
    %442 = arith.subf %436, %441 : vector<8x64xf32>
    %443 = arith.mulf %8, %442 : vector<8x64xf32>
    %444 = arith.addf %443, %11 : vector<8x64xf32>
    %445 = vector.extract_strided_slice %435 {offsets = [0, 64], sizes = [8, 32], strides = [1, 1]} : vector<8x96xf32> to vector<8x32xf32>
    %cst_121 = arith.constant dense<0.000000e+00> : vector<8xf32>
    %446 = vector.multi_reduction <add>, %445, %cst_121 [1] : vector<8x32xf32> to vector<8xf32>
    %447 = vector.shape_cast %446 : vector<8xf32> to vector<8x1xf32>
    %cst_122 = arith.constant 3.200000e+01 : f32
    %448 = vector.broadcast %cst_122 : f32 to vector<8x1xf32>
    %449 = arith.divf %447, %448 : vector<8x1xf32>
    %450 = vector.broadcast %449 : vector<8x1xf32> to vector<8x32xf32>
    %451 = arith.subf %445, %450 : vector<8x32xf32>
    %452 = arith.mulf %14, %451 : vector<8x32xf32>
    %453 = arith.addf %452, %17 : vector<8x32xf32>
    %454 = arith.addf %433, %444 : vector<8x64xf32>
    %455 = arith.negf %454 : vector<8x64xf32>
    %456 = math.exp %455 : vector<8x64xf32>
    %cst_123 = arith.constant 1.000000e+00 : f32
    %457 = vector.broadcast %cst_123 : f32 to vector<8x64xf32>
    %458 = arith.addf %457, %456 : vector<8x64xf32>
    %459 = arith.divf %457, %458 : vector<8x64xf32>
    %460 = vector.extract_strided_slice %459 {offsets = [0, 0], sizes = [8, 32], strides = [1, 1]} : vector<8x64xf32> to vector<8x32xf32>
    %461 = vector.extract_strided_slice %459 {offsets = [0, 32], sizes = [8, 32], strides = [1, 1]} : vector<8x64xf32> to vector<8x32xf32>
    %462 = arith.mulf %460, %453 : vector<8x32xf32>
    %463 = arith.addf %434, %462 : vector<8x32xf32>
    %464 = math.tanh %463 : vector<8x32xf32>
    %cst_124 = arith.constant 1.000000e+00 : f32
    %465 = vector.broadcast %cst_124 : f32 to vector<8x32xf32>
    %466 = arith.subf %465, %461 : vector<8x32xf32>
    %467 = arith.mulf %466, %464 : vector<8x32xf32>
    %468 = arith.mulf %461, %343 : vector<8x32xf32>
    %469 = arith.addf %467, %468 : vector<8x32xf32>
    %cst_125 = arith.constant dense<0.000000e+00> : vector<8x96xf32>
    %470 = tpu.matmul %469, %18, %cst_125 {dimension_numbers = #tpu.dot_dimension_numbers<[1], [0], [0], [1], [0, 0, 1, 1], [], []>} : vector<8x32xf32>, vector<32x96xf32>, vector<8x96xf32> -> vector<8x96xf32>
    %471 = vector.extract_strided_slice %470 {offsets = [0, 0], sizes = [8, 64], strides = [1, 1]} : vector<8x96xf32> to vector<8x64xf32>
    %cst_126 = arith.constant dense<0.000000e+00> : vector<8xf32>
    %472 = vector.multi_reduction <add>, %471, %cst_126 [1] : vector<8x64xf32> to vector<8xf32>
    %473 = vector.shape_cast %472 : vector<8xf32> to vector<8x1xf32>
    %cst_127 = arith.constant 6.400000e+01 : f32
    %474 = vector.broadcast %cst_127 : f32 to vector<8x1xf32>
    %475 = arith.divf %473, %474 : vector<8x1xf32>
    %476 = arith.mulf %471, %471 : vector<8x64xf32>
    %cst_128 = arith.constant dense<0.000000e+00> : vector<8xf32>
    %477 = vector.multi_reduction <add>, %476, %cst_128 [1] : vector<8x64xf32> to vector<8xf32>
    %478 = vector.shape_cast %477 : vector<8xf32> to vector<8x1xf32>
    %cst_129 = arith.constant 6.400000e+01 : f32
    %479 = vector.broadcast %cst_129 : f32 to vector<8x1xf32>
    %480 = arith.mulf %479, %475 : vector<8x1xf32>
    %481 = arith.mulf %480, %475 : vector<8x1xf32>
    %482 = arith.subf %478, %481 : vector<8x1xf32>
    %cst_130 = arith.constant 0.000000e+00 : f32
    %483 = vector.broadcast %cst_130 : f32 to vector<8x1xf32>
    %484 = arith.maximumf %482, %483 : vector<8x1xf32>
    %cst_131 = arith.constant 6.300000e+01 : f32
    %485 = vector.broadcast %cst_131 : f32 to vector<8x1xf32>
    %486 = arith.divf %484, %485 : vector<8x1xf32>
    %487 = vector.broadcast %475 : vector<8x1xf32> to vector<8x64xf32>
    %488 = arith.subf %471, %487 : vector<8x64xf32>
    %489 = math.rsqrt %486 : vector<8x1xf32>
    %490 = vector.broadcast %489 : vector<8x1xf32> to vector<8x64xf32>
    %491 = arith.mulf %488, %490 : vector<8x64xf32>
    %492 = arith.mulf %26, %491 : vector<8x64xf32>
    %493 = arith.addf %492, %29 : vector<8x64xf32>
    %494 = vector.extract_strided_slice %470 {offsets = [0, 64], sizes = [8, 32], strides = [1, 1]} : vector<8x96xf32> to vector<8x32xf32>
    %cst_132 = arith.constant dense<0.000000e+00> : vector<8xf32>
    %495 = vector.multi_reduction <add>, %494, %cst_132 [1] : vector<8x32xf32> to vector<8xf32>
    %496 = vector.shape_cast %495 : vector<8xf32> to vector<8x1xf32>
    %cst_133 = arith.constant 3.200000e+01 : f32
    %497 = vector.broadcast %cst_133 : f32 to vector<8x1xf32>
    %498 = arith.divf %496, %497 : vector<8x1xf32>
    %499 = arith.mulf %494, %494 : vector<8x32xf32>
    %cst_134 = arith.constant dense<0.000000e+00> : vector<8xf32>
    %500 = vector.multi_reduction <add>, %499, %cst_134 [1] : vector<8x32xf32> to vector<8xf32>
    %501 = vector.shape_cast %500 : vector<8xf32> to vector<8x1xf32>
    %cst_135 = arith.constant 3.200000e+01 : f32
    %502 = vector.broadcast %cst_135 : f32 to vector<8x1xf32>
    %503 = arith.mulf %502, %498 : vector<8x1xf32>
    %504 = arith.mulf %503, %498 : vector<8x1xf32>
    %505 = arith.subf %501, %504 : vector<8x1xf32>
    %cst_136 = arith.constant 0.000000e+00 : f32
    %506 = vector.broadcast %cst_136 : f32 to vector<8x1xf32>
    %507 = arith.maximumf %505, %506 : vector<8x1xf32>
    %cst_137 = arith.constant 3.100000e+01 : f32
    %508 = vector.broadcast %cst_137 : f32 to vector<8x1xf32>
    %509 = arith.divf %507, %508 : vector<8x1xf32>
    %510 = vector.broadcast %498 : vector<8x1xf32> to vector<8x32xf32>
    %511 = arith.subf %494, %510 : vector<8x32xf32>
    %512 = math.rsqrt %509 : vector<8x1xf32>
    %513 = vector.broadcast %512 : vector<8x1xf32> to vector<8x32xf32>
    %514 = arith.mulf %511, %513 : vector<8x32xf32>
    %515 = arith.mulf %32, %514 : vector<8x32xf32>
    %516 = arith.addf %515, %35 : vector<8x32xf32>
    %cst_138 = arith.constant dense<0.000000e+00> : vector<8x96xf32>
    %517 = tpu.matmul %425, %19, %cst_138 {dimension_numbers = #tpu.dot_dimension_numbers<[1], [0], [0], [1], [0, 0, 1, 1], [], []>} : vector<8x32xf32>, vector<32x96xf32>, vector<8x96xf32> -> vector<8x96xf32>
    %518 = vector.extract_strided_slice %517 {offsets = [0, 0], sizes = [8, 64], strides = [1, 1]} : vector<8x96xf32> to vector<8x64xf32>
    %cst_139 = arith.constant dense<0.000000e+00> : vector<8xf32>
    %519 = vector.multi_reduction <add>, %518, %cst_139 [1] : vector<8x64xf32> to vector<8xf32>
    %520 = vector.shape_cast %519 : vector<8xf32> to vector<8x1xf32>
    %cst_140 = arith.constant 6.400000e+01 : f32
    %521 = vector.broadcast %cst_140 : f32 to vector<8x1xf32>
    %522 = arith.divf %520, %521 : vector<8x1xf32>
    %523 = vector.broadcast %522 : vector<8x1xf32> to vector<8x64xf32>
    %524 = arith.subf %518, %523 : vector<8x64xf32>
    %525 = arith.mulf %38, %524 : vector<8x64xf32>
    %526 = arith.addf %525, %41 : vector<8x64xf32>
    %527 = vector.extract_strided_slice %517 {offsets = [0, 64], sizes = [8, 32], strides = [1, 1]} : vector<8x96xf32> to vector<8x32xf32>
    %cst_141 = arith.constant dense<0.000000e+00> : vector<8xf32>
    %528 = vector.multi_reduction <add>, %527, %cst_141 [1] : vector<8x32xf32> to vector<8xf32>
    %529 = vector.shape_cast %528 : vector<8xf32> to vector<8x1xf32>
    %cst_142 = arith.constant 3.200000e+01 : f32
    %530 = vector.broadcast %cst_142 : f32 to vector<8x1xf32>
    %531 = arith.divf %529, %530 : vector<8x1xf32>
    %532 = vector.broadcast %531 : vector<8x1xf32> to vector<8x32xf32>
    %533 = arith.subf %527, %532 : vector<8x32xf32>
    %534 = arith.mulf %44, %533 : vector<8x32xf32>
    %535 = arith.addf %534, %47 : vector<8x32xf32>
    %536 = arith.addf %493, %526 : vector<8x64xf32>
    %537 = arith.negf %536 : vector<8x64xf32>
    %538 = math.exp %537 : vector<8x64xf32>
    %cst_143 = arith.constant 1.000000e+00 : f32
    %539 = vector.broadcast %cst_143 : f32 to vector<8x64xf32>
    %540 = arith.addf %539, %538 : vector<8x64xf32>
    %541 = arith.divf %539, %540 : vector<8x64xf32>
    %542 = vector.extract_strided_slice %541 {offsets = [0, 0], sizes = [8, 32], strides = [1, 1]} : vector<8x64xf32> to vector<8x32xf32>
    %543 = vector.extract_strided_slice %541 {offsets = [0, 32], sizes = [8, 32], strides = [1, 1]} : vector<8x64xf32> to vector<8x32xf32>
    %544 = arith.mulf %542, %535 : vector<8x32xf32>
    %545 = arith.addf %516, %544 : vector<8x32xf32>
    %546 = math.tanh %545 : vector<8x32xf32>
    %cst_144 = arith.constant 1.000000e+00 : f32
    %547 = vector.broadcast %cst_144 : f32 to vector<8x32xf32>
    %548 = arith.subf %547, %543 : vector<8x32xf32>
    %549 = arith.mulf %548, %546 : vector<8x32xf32>
    %550 = arith.mulf %543, %425 : vector<8x32xf32>
    %551 = arith.addf %549, %550 : vector<8x32xf32>
    %552 = arith.index_cast %c3_i32 : i32 to index
    %c0_145 = arith.constant 0 : index
    %c0_146 = arith.constant 0 : index
    %553 = vector.load %arg12[%552, %c0_145, %c0_146] : memref<8x8x32xf32, #tpu.memory_space<vmem>>, vector<1x8x32xf32>
    %554 = vector.shape_cast %553 : vector<1x8x32xf32> to vector<8x32xf32>
    %555 = vector.shape_cast %551 : vector<8x32xf32> to vector<1x8x32xf32>
    tpu.vector_store %arg12[%552, %c0_145, %c0_146], %555 {strides = array<i32>} : memref<8x8x32xf32, #tpu.memory_space<vmem>>, vector<1x8x32xf32>,
    %c4_i32 = arith.constant 4 : i32
    %556 = arith.index_cast %c4_i32 : i32 to index
    %c0_147 = arith.constant 0 : index
    %c0_148 = arith.constant 0 : index
    %557 = vector.load %arg1[%556, %c0_147, %c0_148] : memref<8x8x96xf32, #tpu.memory_space<vmem>>, vector<1x8x96xf32>
    %558 = vector.shape_cast %557 : vector<1x8x96xf32> to vector<8x96xf32>
    %559 = vector.extract_strided_slice %558 {offsets = [0, 0], sizes = [8, 64], strides = [1, 1]} : vector<8x96xf32> to vector<8x64xf32>
    %560 = vector.extract_strided_slice %558 {offsets = [0, 64], sizes = [8, 32], strides = [1, 1]} : vector<8x96xf32> to vector<8x32xf32>
    %cst_149 = arith.constant dense<0.000000e+00> : vector<8x96xf32>
    %561 = tpu.matmul %469, %3, %cst_149 {dimension_numbers = #tpu.dot_dimension_numbers<[1], [0], [0], [1], [0, 0, 1, 1], [], []>} : vector<8x32xf32>, vector<32x96xf32>, vector<8x96xf32> -> vector<8x96xf32>
    %562 = vector.extract_strided_slice %561 {offsets = [0, 0], sizes = [8, 64], strides = [1, 1]} : vector<8x96xf32> to vector<8x64xf32>
    %cst_150 = arith.constant dense<0.000000e+00> : vector<8xf32>
    %563 = vector.multi_reduction <add>, %562, %cst_150 [1] : vector<8x64xf32> to vector<8xf32>
    %564 = vector.shape_cast %563 : vector<8xf32> to vector<8x1xf32>
    %cst_151 = arith.constant 6.400000e+01 : f32
    %565 = vector.broadcast %cst_151 : f32 to vector<8x1xf32>
    %566 = arith.divf %564, %565 : vector<8x1xf32>
    %567 = vector.broadcast %566 : vector<8x1xf32> to vector<8x64xf32>
    %568 = arith.subf %562, %567 : vector<8x64xf32>
    %569 = arith.mulf %8, %568 : vector<8x64xf32>
    %570 = arith.addf %569, %11 : vector<8x64xf32>
    %571 = vector.extract_strided_slice %561 {offsets = [0, 64], sizes = [8, 32], strides = [1, 1]} : vector<8x96xf32> to vector<8x32xf32>
    %cst_152 = arith.constant dense<0.000000e+00> : vector<8xf32>
    %572 = vector.multi_reduction <add>, %571, %cst_152 [1] : vector<8x32xf32> to vector<8xf32>
    %573 = vector.shape_cast %572 : vector<8xf32> to vector<8x1xf32>
    %cst_153 = arith.constant 3.200000e+01 : f32
    %574 = vector.broadcast %cst_153 : f32 to vector<8x1xf32>
    %575 = arith.divf %573, %574 : vector<8x1xf32>
    %576 = vector.broadcast %575 : vector<8x1xf32> to vector<8x32xf32>
    %577 = arith.subf %571, %576 : vector<8x32xf32>
    %578 = arith.mulf %14, %577 : vector<8x32xf32>
    %579 = arith.addf %578, %17 : vector<8x32xf32>
    %580 = arith.addf %559, %570 : vector<8x64xf32>
    %581 = arith.negf %580 : vector<8x64xf32>
    %582 = math.exp %581 : vector<8x64xf32>
    %cst_154 = arith.constant 1.000000e+00 : f32
    %583 = vector.broadcast %cst_154 : f32 to vector<8x64xf32>
    %584 = arith.addf %583, %582 : vector<8x64xf32>
    %585 = arith.divf %583, %584 : vector<8x64xf32>
    %586 = vector.extract_strided_slice %585 {offsets = [0, 0], sizes = [8, 32], strides = [1, 1]} : vector<8x64xf32> to vector<8x32xf32>
    %587 = vector.extract_strided_slice %585 {offsets = [0, 32], sizes = [8, 32], strides = [1, 1]} : vector<8x64xf32> to vector<8x32xf32>
    %588 = arith.mulf %586, %579 : vector<8x32xf32>
    %589 = arith.addf %560, %588 : vector<8x32xf32>
    %590 = math.tanh %589 : vector<8x32xf32>
    %cst_155 = arith.constant 1.000000e+00 : f32
    %591 = vector.broadcast %cst_155 : f32 to vector<8x32xf32>
    %592 = arith.subf %591, %587 : vector<8x32xf32>
    %593 = arith.mulf %592, %590 : vector<8x32xf32>
    %594 = arith.mulf %587, %469 : vector<8x32xf32>
    %595 = arith.addf %593, %594 : vector<8x32xf32>
    %cst_156 = arith.constant dense<0.000000e+00> : vector<8x96xf32>
    %596 = tpu.matmul %595, %18, %cst_156 {dimension_numbers = #tpu.dot_dimension_numbers<[1], [0], [0], [1], [0, 0, 1, 1], [], []>} : vector<8x32xf32>, vector<32x96xf32>, vector<8x96xf32> -> vector<8x96xf32>
    %597 = vector.extract_strided_slice %596 {offsets = [0, 0], sizes = [8, 64], strides = [1, 1]} : vector<8x96xf32> to vector<8x64xf32>
    %cst_157 = arith.constant dense<0.000000e+00> : vector<8xf32>
    %598 = vector.multi_reduction <add>, %597, %cst_157 [1] : vector<8x64xf32> to vector<8xf32>
    %599 = vector.shape_cast %598 : vector<8xf32> to vector<8x1xf32>
    %cst_158 = arith.constant 6.400000e+01 : f32
    %600 = vector.broadcast %cst_158 : f32 to vector<8x1xf32>
    %601 = arith.divf %599, %600 : vector<8x1xf32>
    %602 = arith.mulf %597, %597 : vector<8x64xf32>
    %cst_159 = arith.constant dense<0.000000e+00> : vector<8xf32>
    %603 = vector.multi_reduction <add>, %602, %cst_159 [1] : vector<8x64xf32> to vector<8xf32>
    %604 = vector.shape_cast %603 : vector<8xf32> to vector<8x1xf32>
    %cst_160 = arith.constant 6.400000e+01 : f32
    %605 = vector.broadcast %cst_160 : f32 to vector<8x1xf32>
    %606 = arith.mulf %605, %601 : vector<8x1xf32>
    %607 = arith.mulf %606, %601 : vector<8x1xf32>
    %608 = arith.subf %604, %607 : vector<8x1xf32>
    %cst_161 = arith.constant 0.000000e+00 : f32
    %609 = vector.broadcast %cst_161 : f32 to vector<8x1xf32>
    %610 = arith.maximumf %608, %609 : vector<8x1xf32>
    %cst_162 = arith.constant 6.300000e+01 : f32
    %611 = vector.broadcast %cst_162 : f32 to vector<8x1xf32>
    %612 = arith.divf %610, %611 : vector<8x1xf32>
    %613 = vector.broadcast %601 : vector<8x1xf32> to vector<8x64xf32>
    %614 = arith.subf %597, %613 : vector<8x64xf32>
    %615 = math.rsqrt %612 : vector<8x1xf32>
    %616 = vector.broadcast %615 : vector<8x1xf32> to vector<8x64xf32>
    %617 = arith.mulf %614, %616 : vector<8x64xf32>
    %618 = arith.mulf %26, %617 : vector<8x64xf32>
    %619 = arith.addf %618, %29 : vector<8x64xf32>
    %620 = vector.extract_strided_slice %596 {offsets = [0, 64], sizes = [8, 32], strides = [1, 1]} : vector<8x96xf32> to vector<8x32xf32>
    %cst_163 = arith.constant dense<0.000000e+00> : vector<8xf32>
    %621 = vector.multi_reduction <add>, %620, %cst_163 [1] : vector<8x32xf32> to vector<8xf32>
    %622 = vector.shape_cast %621 : vector<8xf32> to vector<8x1xf32>
    %cst_164 = arith.constant 3.200000e+01 : f32
    %623 = vector.broadcast %cst_164 : f32 to vector<8x1xf32>
    %624 = arith.divf %622, %623 : vector<8x1xf32>
    %625 = arith.mulf %620, %620 : vector<8x32xf32>
    %cst_165 = arith.constant dense<0.000000e+00> : vector<8xf32>
    %626 = vector.multi_reduction <add>, %625, %cst_165 [1] : vector<8x32xf32> to vector<8xf32>
    %627 = vector.shape_cast %626 : vector<8xf32> to vector<8x1xf32>
    %cst_166 = arith.constant 3.200000e+01 : f32
    %628 = vector.broadcast %cst_166 : f32 to vector<8x1xf32>
    %629 = arith.mulf %628, %624 : vector<8x1xf32>
    %630 = arith.mulf %629, %624 : vector<8x1xf32>
    %631 = arith.subf %627, %630 : vector<8x1xf32>
    %cst_167 = arith.constant 0.000000e+00 : f32
    %632 = vector.broadcast %cst_167 : f32 to vector<8x1xf32>
    %633 = arith.maximumf %631, %632 : vector<8x1xf32>
    %cst_168 = arith.constant 3.100000e+01 : f32
    %634 = vector.broadcast %cst_168 : f32 to vector<8x1xf32>
    %635 = arith.divf %633, %634 : vector<8x1xf32>
    %636 = vector.broadcast %624 : vector<8x1xf32> to vector<8x32xf32>
    %637 = arith.subf %620, %636 : vector<8x32xf32>
    %638 = math.rsqrt %635 : vector<8x1xf32>
    %639 = vector.broadcast %638 : vector<8x1xf32> to vector<8x32xf32>
    %640 = arith.mulf %637, %639 : vector<8x32xf32>
    %641 = arith.mulf %32, %640 : vector<8x32xf32>
    %642 = arith.addf %641, %35 : vector<8x32xf32>
    %cst_169 = arith.constant dense<0.000000e+00> : vector<8x96xf32>
    %643 = tpu.matmul %551, %19, %cst_169 {dimension_numbers = #tpu.dot_dimension_numbers<[1], [0], [0], [1], [0, 0, 1, 1], [], []>} : vector<8x32xf32>, vector<32x96xf32>, vector<8x96xf32> -> vector<8x96xf32>
    %644 = vector.extract_strided_slice %643 {offsets = [0, 0], sizes = [8, 64], strides = [1, 1]} : vector<8x96xf32> to vector<8x64xf32>
    %cst_170 = arith.constant dense<0.000000e+00> : vector<8xf32>
    %645 = vector.multi_reduction <add>, %644, %cst_170 [1] : vector<8x64xf32> to vector<8xf32>
    %646 = vector.shape_cast %645 : vector<8xf32> to vector<8x1xf32>
    %cst_171 = arith.constant 6.400000e+01 : f32
    %647 = vector.broadcast %cst_171 : f32 to vector<8x1xf32>
    %648 = arith.divf %646, %647 : vector<8x1xf32>
    %649 = vector.broadcast %648 : vector<8x1xf32> to vector<8x64xf32>
    %650 = arith.subf %644, %649 : vector<8x64xf32>
    %651 = arith.mulf %38, %650 : vector<8x64xf32>
    %652 = arith.addf %651, %41 : vector<8x64xf32>
    %653 = vector.extract_strided_slice %643 {offsets = [0, 64], sizes = [8, 32], strides = [1, 1]} : vector<8x96xf32> to vector<8x32xf32>
    %cst_172 = arith.constant dense<0.000000e+00> : vector<8xf32>
    %654 = vector.multi_reduction <add>, %653, %cst_172 [1] : vector<8x32xf32> to vector<8xf32>
    %655 = vector.shape_cast %654 : vector<8xf32> to vector<8x1xf32>
    %cst_173 = arith.constant 3.200000e+01 : f32
    %656 = vector.broadcast %cst_173 : f32 to vector<8x1xf32>
    %657 = arith.divf %655, %656 : vector<8x1xf32>
    %658 = vector.broadcast %657 : vector<8x1xf32> to vector<8x32xf32>
    %659 = arith.subf %653, %658 : vector<8x32xf32>
    %660 = arith.mulf %44, %659 : vector<8x32xf32>
    %661 = arith.addf %660, %47 : vector<8x32xf32>
    %662 = arith.addf %619, %652 : vector<8x64xf32>
    %663 = arith.negf %662 : vector<8x64xf32>
    %664 = math.exp %663 : vector<8x64xf32>
    %cst_174 = arith.constant 1.000000e+00 : f32
    %665 = vector.broadcast %cst_174 : f32 to vector<8x64xf32>
    %666 = arith.addf %665, %664 : vector<8x64xf32>
    %667 = arith.divf %665, %666 : vector<8x64xf32>
    %668 = vector.extract_strided_slice %667 {offsets = [0, 0], sizes = [8, 32], strides = [1, 1]} : vector<8x64xf32> to vector<8x32xf32>
    %669 = vector.extract_strided_slice %667 {offsets = [0, 32], sizes = [8, 32], strides = [1, 1]} : vector<8x64xf32> to vector<8x32xf32>
    %670 = arith.mulf %668, %661 : vector<8x32xf32>
    %671 = arith.addf %642, %670 : vector<8x32xf32>
    %672 = math.tanh %671 : vector<8x32xf32>
    %cst_175 = arith.constant 1.000000e+00 : f32
    %673 = vector.broadcast %cst_175 : f32 to vector<8x32xf32>
    %674 = arith.subf %673, %669 : vector<8x32xf32>
    %675 = arith.mulf %674, %672 : vector<8x32xf32>
    %676 = arith.mulf %669, %551 : vector<8x32xf32>
    %677 = arith.addf %675, %676 : vector<8x32xf32>
    %678 = arith.index_cast %c4_i32 : i32 to index
    %c0_176 = arith.constant 0 : index
    %c0_177 = arith.constant 0 : index
    %679 = vector.load %arg12[%678, %c0_176, %c0_177] : memref<8x8x32xf32, #tpu.memory_space<vmem>>, vector<1x8x32xf32>
    %680 = vector.shape_cast %679 : vector<1x8x32xf32> to vector<8x32xf32>
    %681 = vector.shape_cast %677 : vector<8x32xf32> to vector<1x8x32xf32>
    tpu.vector_store %arg12[%678, %c0_176, %c0_177], %681 {strides = array<i32>} : memref<8x8x32xf32, #tpu.memory_space<vmem>>, vector<1x8x32xf32>,
    %c5_i32 = arith.constant 5 : i32
    %682 = arith.index_cast %c5_i32 : i32 to index
    %c0_178 = arith.constant 0 : index
    %c0_179 = arith.constant 0 : index
    %683 = vector.load %arg1[%682, %c0_178, %c0_179] : memref<8x8x96xf32, #tpu.memory_space<vmem>>, vector<1x8x96xf32>
    %684 = vector.shape_cast %683 : vector<1x8x96xf32> to vector<8x96xf32>
    %685 = vector.extract_strided_slice %684 {offsets = [0, 0], sizes = [8, 64], strides = [1, 1]} : vector<8x96xf32> to vector<8x64xf32>
    %686 = vector.extract_strided_slice %684 {offsets = [0, 64], sizes = [8, 32], strides = [1, 1]} : vector<8x96xf32> to vector<8x32xf32>
    %cst_180 = arith.constant dense<0.000000e+00> : vector<8x96xf32>
    %687 = tpu.matmul %595, %3, %cst_180 {dimension_numbers = #tpu.dot_dimension_numbers<[1], [0], [0], [1], [0, 0, 1, 1], [], []>} : vector<8x32xf32>, vector<32x96xf32>, vector<8x96xf32> -> vector<8x96xf32>
    %688 = vector.extract_strided_slice %687 {offsets = [0, 0], sizes = [8, 64], strides = [1, 1]} : vector<8x96xf32> to vector<8x64xf32>
    %cst_181 = arith.constant dense<0.000000e+00> : vector<8xf32>
    %689 = vector.multi_reduction <add>, %688, %cst_181 [1] : vector<8x64xf32> to vector<8xf32>
    %690 = vector.shape_cast %689 : vector<8xf32> to vector<8x1xf32>
    %cst_182 = arith.constant 6.400000e+01 : f32
    %691 = vector.broadcast %cst_182 : f32 to vector<8x1xf32>
    %692 = arith.divf %690, %691 : vector<8x1xf32>
    %693 = vector.broadcast %692 : vector<8x1xf32> to vector<8x64xf32>
    %694 = arith.subf %688, %693 : vector<8x64xf32>
    %695 = arith.mulf %8, %694 : vector<8x64xf32>
    %696 = arith.addf %695, %11 : vector<8x64xf32>
    %697 = vector.extract_strided_slice %687 {offsets = [0, 64], sizes = [8, 32], strides = [1, 1]} : vector<8x96xf32> to vector<8x32xf32>
    %cst_183 = arith.constant dense<0.000000e+00> : vector<8xf32>
    %698 = vector.multi_reduction <add>, %697, %cst_183 [1] : vector<8x32xf32> to vector<8xf32>
    %699 = vector.shape_cast %698 : vector<8xf32> to vector<8x1xf32>
    %cst_184 = arith.constant 3.200000e+01 : f32
    %700 = vector.broadcast %cst_184 : f32 to vector<8x1xf32>
    %701 = arith.divf %699, %700 : vector<8x1xf32>
    %702 = vector.broadcast %701 : vector<8x1xf32> to vector<8x32xf32>
    %703 = arith.subf %697, %702 : vector<8x32xf32>
    %704 = arith.mulf %14, %703 : vector<8x32xf32>
    %705 = arith.addf %704, %17 : vector<8x32xf32>
    %706 = arith.addf %685, %696 : vector<8x64xf32>
    %707 = arith.negf %706 : vector<8x64xf32>
    %708 = math.exp %707 : vector<8x64xf32>
    %cst_185 = arith.constant 1.000000e+00 : f32
    %709 = vector.broadcast %cst_185 : f32 to vector<8x64xf32>
    %710 = arith.addf %709, %708 : vector<8x64xf32>
    %711 = arith.divf %709, %710 : vector<8x64xf32>
    %712 = vector.extract_strided_slice %711 {offsets = [0, 0], sizes = [8, 32], strides = [1, 1]} : vector<8x64xf32> to vector<8x32xf32>
    %713 = vector.extract_strided_slice %711 {offsets = [0, 32], sizes = [8, 32], strides = [1, 1]} : vector<8x64xf32> to vector<8x32xf32>
    %714 = arith.mulf %712, %705 : vector<8x32xf32>
    %715 = arith.addf %686, %714 : vector<8x32xf32>
    %716 = math.tanh %715 : vector<8x32xf32>
    %cst_186 = arith.constant 1.000000e+00 : f32
    %717 = vector.broadcast %cst_186 : f32 to vector<8x32xf32>
    %718 = arith.subf %717, %713 : vector<8x32xf32>
    %719 = arith.mulf %718, %716 : vector<8x32xf32>
    %720 = arith.mulf %713, %595 : vector<8x32xf32>
    %721 = arith.addf %719, %720 : vector<8x32xf32>
    %cst_187 = arith.constant dense<0.000000e+00> : vector<8x96xf32>
    %722 = tpu.matmul %721, %18, %cst_187 {dimension_numbers = #tpu.dot_dimension_numbers<[1], [0], [0], [1], [0, 0, 1, 1], [], []>} : vector<8x32xf32>, vector<32x96xf32>, vector<8x96xf32> -> vector<8x96xf32>
    %723 = vector.extract_strided_slice %722 {offsets = [0, 0], sizes = [8, 64], strides = [1, 1]} : vector<8x96xf32> to vector<8x64xf32>
    %cst_188 = arith.constant dense<0.000000e+00> : vector<8xf32>
    %724 = vector.multi_reduction <add>, %723, %cst_188 [1] : vector<8x64xf32> to vector<8xf32>
    %725 = vector.shape_cast %724 : vector<8xf32> to vector<8x1xf32>
    %cst_189 = arith.constant 6.400000e+01 : f32
    %726 = vector.broadcast %cst_189 : f32 to vector<8x1xf32>
    %727 = arith.divf %725, %726 : vector<8x1xf32>
    %728 = arith.mulf %723, %723 : vector<8x64xf32>
    %cst_190 = arith.constant dense<0.000000e+00> : vector<8xf32>
    %729 = vector.multi_reduction <add>, %728, %cst_190 [1] : vector<8x64xf32> to vector<8xf32>
    %730 = vector.shape_cast %729 : vector<8xf32> to vector<8x1xf32>
    %cst_191 = arith.constant 6.400000e+01 : f32
    %731 = vector.broadcast %cst_191 : f32 to vector<8x1xf32>
    %732 = arith.mulf %731, %727 : vector<8x1xf32>
    %733 = arith.mulf %732, %727 : vector<8x1xf32>
    %734 = arith.subf %730, %733 : vector<8x1xf32>
    %cst_192 = arith.constant 0.000000e+00 : f32
    %735 = vector.broadcast %cst_192 : f32 to vector<8x1xf32>
    %736 = arith.maximumf %734, %735 : vector<8x1xf32>
    %cst_193 = arith.constant 6.300000e+01 : f32
    %737 = vector.broadcast %cst_193 : f32 to vector<8x1xf32>
    %738 = arith.divf %736, %737 : vector<8x1xf32>
    %739 = vector.broadcast %727 : vector<8x1xf32> to vector<8x64xf32>
    %740 = arith.subf %723, %739 : vector<8x64xf32>
    %741 = math.rsqrt %738 : vector<8x1xf32>
    %742 = vector.broadcast %741 : vector<8x1xf32> to vector<8x64xf32>
    %743 = arith.mulf %740, %742 : vector<8x64xf32>
    %744 = arith.mulf %26, %743 : vector<8x64xf32>
    %745 = arith.addf %744, %29 : vector<8x64xf32>
    %746 = vector.extract_strided_slice %722 {offsets = [0, 64], sizes = [8, 32], strides = [1, 1]} : vector<8x96xf32> to vector<8x32xf32>
    %cst_194 = arith.constant dense<0.000000e+00> : vector<8xf32>
    %747 = vector.multi_reduction <add>, %746, %cst_194 [1] : vector<8x32xf32> to vector<8xf32>
    %748 = vector.shape_cast %747 : vector<8xf32> to vector<8x1xf32>
    %cst_195 = arith.constant 3.200000e+01 : f32
    %749 = vector.broadcast %cst_195 : f32 to vector<8x1xf32>
    %750 = arith.divf %748, %749 : vector<8x1xf32>
    %751 = arith.mulf %746, %746 : vector<8x32xf32>
    %cst_196 = arith.constant dense<0.000000e+00> : vector<8xf32>
    %752 = vector.multi_reduction <add>, %751, %cst_196 [1] : vector<8x32xf32> to vector<8xf32>
    %753 = vector.shape_cast %752 : vector<8xf32> to vector<8x1xf32>
    %cst_197 = arith.constant 3.200000e+01 : f32
    %754 = vector.broadcast %cst_197 : f32 to vector<8x1xf32>
    %755 = arith.mulf %754, %750 : vector<8x1xf32>
    %756 = arith.mulf %755, %750 : vector<8x1xf32>
    %757 = arith.subf %753, %756 : vector<8x1xf32>
    %cst_198 = arith.constant 0.000000e+00 : f32
    %758 = vector.broadcast %cst_198 : f32 to vector<8x1xf32>
    %759 = arith.maximumf %757, %758 : vector<8x1xf32>
    %cst_199 = arith.constant 3.100000e+01 : f32
    %760 = vector.broadcast %cst_199 : f32 to vector<8x1xf32>
    %761 = arith.divf %759, %760 : vector<8x1xf32>
    %762 = vector.broadcast %750 : vector<8x1xf32> to vector<8x32xf32>
    %763 = arith.subf %746, %762 : vector<8x32xf32>
    %764 = math.rsqrt %761 : vector<8x1xf32>
    %765 = vector.broadcast %764 : vector<8x1xf32> to vector<8x32xf32>
    %766 = arith.mulf %763, %765 : vector<8x32xf32>
    %767 = arith.mulf %32, %766 : vector<8x32xf32>
    %768 = arith.addf %767, %35 : vector<8x32xf32>
    %cst_200 = arith.constant dense<0.000000e+00> : vector<8x96xf32>
    %769 = tpu.matmul %677, %19, %cst_200 {dimension_numbers = #tpu.dot_dimension_numbers<[1], [0], [0], [1], [0, 0, 1, 1], [], []>} : vector<8x32xf32>, vector<32x96xf32>, vector<8x96xf32> -> vector<8x96xf32>
    %770 = vector.extract_strided_slice %769 {offsets = [0, 0], sizes = [8, 64], strides = [1, 1]} : vector<8x96xf32> to vector<8x64xf32>
    %cst_201 = arith.constant dense<0.000000e+00> : vector<8xf32>
    %771 = vector.multi_reduction <add>, %770, %cst_201 [1] : vector<8x64xf32> to vector<8xf32>
    %772 = vector.shape_cast %771 : vector<8xf32> to vector<8x1xf32>
    %cst_202 = arith.constant 6.400000e+01 : f32
    %773 = vector.broadcast %cst_202 : f32 to vector<8x1xf32>
    %774 = arith.divf %772, %773 : vector<8x1xf32>
    %775 = vector.broadcast %774 : vector<8x1xf32> to vector<8x64xf32>
    %776 = arith.subf %770, %775 : vector<8x64xf32>
    %777 = arith.mulf %38, %776 : vector<8x64xf32>
    %778 = arith.addf %777, %41 : vector<8x64xf32>
    %779 = vector.extract_strided_slice %769 {offsets = [0, 64], sizes = [8, 32], strides = [1, 1]} : vector<8x96xf32> to vector<8x32xf32>
    %cst_203 = arith.constant dense<0.000000e+00> : vector<8xf32>
    %780 = vector.multi_reduction <add>, %779, %cst_203 [1] : vector<8x32xf32> to vector<8xf32>
    %781 = vector.shape_cast %780 : vector<8xf32> to vector<8x1xf32>
    %cst_204 = arith.constant 3.200000e+01 : f32
    %782 = vector.broadcast %cst_204 : f32 to vector<8x1xf32>
    %783 = arith.divf %781, %782 : vector<8x1xf32>
    %784 = vector.broadcast %783 : vector<8x1xf32> to vector<8x32xf32>
    %785 = arith.subf %779, %784 : vector<8x32xf32>
    %786 = arith.mulf %44, %785 : vector<8x32xf32>
    %787 = arith.addf %786, %47 : vector<8x32xf32>
    %788 = arith.addf %745, %778 : vector<8x64xf32>
    %789 = arith.negf %788 : vector<8x64xf32>
    %790 = math.exp %789 : vector<8x64xf32>
    %cst_205 = arith.constant 1.000000e+00 : f32
    %791 = vector.broadcast %cst_205 : f32 to vector<8x64xf32>
    %792 = arith.addf %791, %790 : vector<8x64xf32>
    %793 = arith.divf %791, %792 : vector<8x64xf32>
    %794 = vector.extract_strided_slice %793 {offsets = [0, 0], sizes = [8, 32], strides = [1, 1]} : vector<8x64xf32> to vector<8x32xf32>
    %795 = vector.extract_strided_slice %793 {offsets = [0, 32], sizes = [8, 32], strides = [1, 1]} : vector<8x64xf32> to vector<8x32xf32>
    %796 = arith.mulf %794, %787 : vector<8x32xf32>
    %797 = arith.addf %768, %796 : vector<8x32xf32>
    %798 = math.tanh %797 : vector<8x32xf32>
    %cst_206 = arith.constant 1.000000e+00 : f32
    %799 = vector.broadcast %cst_206 : f32 to vector<8x32xf32>
    %800 = arith.subf %799, %795 : vector<8x32xf32>
    %801 = arith.mulf %800, %798 : vector<8x32xf32>
    %802 = arith.mulf %795, %677 : vector<8x32xf32>
    %803 = arith.addf %801, %802 : vector<8x32xf32>
    %804 = arith.index_cast %c5_i32 : i32 to index
    %c0_207 = arith.constant 0 : index
    %c0_208 = arith.constant 0 : index
    %805 = vector.load %arg12[%804, %c0_207, %c0_208] : memref<8x8x32xf32, #tpu.memory_space<vmem>>, vector<1x8x32xf32>
    %806 = vector.shape_cast %805 : vector<1x8x32xf32> to vector<8x32xf32>
    %807 = vector.shape_cast %803 : vector<8x32xf32> to vector<1x8x32xf32>
    tpu.vector_store %arg12[%804, %c0_207, %c0_208], %807 {strides = array<i32>} : memref<8x8x32xf32, #tpu.memory_space<vmem>>, vector<1x8x32xf32>,
    %c6_i32 = arith.constant 6 : i32
    %808 = arith.index_cast %c6_i32 : i32 to index
    %c0_209 = arith.constant 0 : index
    %c0_210 = arith.constant 0 : index
    %809 = vector.load %arg1[%808, %c0_209, %c0_210] : memref<8x8x96xf32, #tpu.memory_space<vmem>>, vector<1x8x96xf32>
    %810 = vector.shape_cast %809 : vector<1x8x96xf32> to vector<8x96xf32>
    %811 = vector.extract_strided_slice %810 {offsets = [0, 0], sizes = [8, 64], strides = [1, 1]} : vector<8x96xf32> to vector<8x64xf32>
    %812 = vector.extract_strided_slice %810 {offsets = [0, 64], sizes = [8, 32], strides = [1, 1]} : vector<8x96xf32> to vector<8x32xf32>
    %cst_211 = arith.constant dense<0.000000e+00> : vector<8x96xf32>
    %813 = tpu.matmul %721, %3, %cst_211 {dimension_numbers = #tpu.dot_dimension_numbers<[1], [0], [0], [1], [0, 0, 1, 1], [], []>} : vector<8x32xf32>, vector<32x96xf32>, vector<8x96xf32> -> vector<8x96xf32>
    %814 = vector.extract_strided_slice %813 {offsets = [0, 0], sizes = [8, 64], strides = [1, 1]} : vector<8x96xf32> to vector<8x64xf32>
    %cst_212 = arith.constant dense<0.000000e+00> : vector<8xf32>
    %815 = vector.multi_reduction <add>, %814, %cst_212 [1] : vector<8x64xf32> to vector<8xf32>
    %816 = vector.shape_cast %815 : vector<8xf32> to vector<8x1xf32>
    %cst_213 = arith.constant 6.400000e+01 : f32
    %817 = vector.broadcast %cst_213 : f32 to vector<8x1xf32>
    %818 = arith.divf %816, %817 : vector<8x1xf32>
    %819 = vector.broadcast %818 : vector<8x1xf32> to vector<8x64xf32>
    %820 = arith.subf %814, %819 : vector<8x64xf32>
    %821 = arith.mulf %8, %820 : vector<8x64xf32>
    %822 = arith.addf %821, %11 : vector<8x64xf32>
    %823 = vector.extract_strided_slice %813 {offsets = [0, 64], sizes = [8, 32], strides = [1, 1]} : vector<8x96xf32> to vector<8x32xf32>
    %cst_214 = arith.constant dense<0.000000e+00> : vector<8xf32>
    %824 = vector.multi_reduction <add>, %823, %cst_214 [1] : vector<8x32xf32> to vector<8xf32>
    %825 = vector.shape_cast %824 : vector<8xf32> to vector<8x1xf32>
    %cst_215 = arith.constant 3.200000e+01 : f32
    %826 = vector.broadcast %cst_215 : f32 to vector<8x1xf32>
    %827 = arith.divf %825, %826 : vector<8x1xf32>
    %828 = vector.broadcast %827 : vector<8x1xf32> to vector<8x32xf32>
    %829 = arith.subf %823, %828 : vector<8x32xf32>
    %830 = arith.mulf %14, %829 : vector<8x32xf32>
    %831 = arith.addf %830, %17 : vector<8x32xf32>
    %832 = arith.addf %811, %822 : vector<8x64xf32>
    %833 = arith.negf %832 : vector<8x64xf32>
    %834 = math.exp %833 : vector<8x64xf32>
    %cst_216 = arith.constant 1.000000e+00 : f32
    %835 = vector.broadcast %cst_216 : f32 to vector<8x64xf32>
    %836 = arith.addf %835, %834 : vector<8x64xf32>
    %837 = arith.divf %835, %836 : vector<8x64xf32>
    %838 = vector.extract_strided_slice %837 {offsets = [0, 0], sizes = [8, 32], strides = [1, 1]} : vector<8x64xf32> to vector<8x32xf32>
    %839 = vector.extract_strided_slice %837 {offsets = [0, 32], sizes = [8, 32], strides = [1, 1]} : vector<8x64xf32> to vector<8x32xf32>
    %840 = arith.mulf %838, %831 : vector<8x32xf32>
    %841 = arith.addf %812, %840 : vector<8x32xf32>
    %842 = math.tanh %841 : vector<8x32xf32>
    %cst_217 = arith.constant 1.000000e+00 : f32
    %843 = vector.broadcast %cst_217 : f32 to vector<8x32xf32>
    %844 = arith.subf %843, %839 : vector<8x32xf32>
    %845 = arith.mulf %844, %842 : vector<8x32xf32>
    %846 = arith.mulf %839, %721 : vector<8x32xf32>
    %847 = arith.addf %845, %846 : vector<8x32xf32>
    %cst_218 = arith.constant dense<0.000000e+00> : vector<8x96xf32>
    %848 = tpu.matmul %847, %18, %cst_218 {dimension_numbers = #tpu.dot_dimension_numbers<[1], [0], [0], [1], [0, 0, 1, 1], [], []>} : vector<8x32xf32>, vector<32x96xf32>, vector<8x96xf32> -> vector<8x96xf32>
    %849 = vector.extract_strided_slice %848 {offsets = [0, 0], sizes = [8, 64], strides = [1, 1]} : vector<8x96xf32> to vector<8x64xf32>
    %cst_219 = arith.constant dense<0.000000e+00> : vector<8xf32>
    %850 = vector.multi_reduction <add>, %849, %cst_219 [1] : vector<8x64xf32> to vector<8xf32>
    %851 = vector.shape_cast %850 : vector<8xf32> to vector<8x1xf32>
    %cst_220 = arith.constant 6.400000e+01 : f32
    %852 = vector.broadcast %cst_220 : f32 to vector<8x1xf32>
    %853 = arith.divf %851, %852 : vector<8x1xf32>
    %854 = arith.mulf %849, %849 : vector<8x64xf32>
    %cst_221 = arith.constant dense<0.000000e+00> : vector<8xf32>
    %855 = vector.multi_reduction <add>, %854, %cst_221 [1] : vector<8x64xf32> to vector<8xf32>
    %856 = vector.shape_cast %855 : vector<8xf32> to vector<8x1xf32>
    %cst_222 = arith.constant 6.400000e+01 : f32
    %857 = vector.broadcast %cst_222 : f32 to vector<8x1xf32>
    %858 = arith.mulf %857, %853 : vector<8x1xf32>
    %859 = arith.mulf %858, %853 : vector<8x1xf32>
    %860 = arith.subf %856, %859 : vector<8x1xf32>
    %cst_223 = arith.constant 0.000000e+00 : f32
    %861 = vector.broadcast %cst_223 : f32 to vector<8x1xf32>
    %862 = arith.maximumf %860, %861 : vector<8x1xf32>
    %cst_224 = arith.constant 6.300000e+01 : f32
    %863 = vector.broadcast %cst_224 : f32 to vector<8x1xf32>
    %864 = arith.divf %862, %863 : vector<8x1xf32>
    %865 = vector.broadcast %853 : vector<8x1xf32> to vector<8x64xf32>
    %866 = arith.subf %849, %865 : vector<8x64xf32>
    %867 = math.rsqrt %864 : vector<8x1xf32>
    %868 = vector.broadcast %867 : vector<8x1xf32> to vector<8x64xf32>
    %869 = arith.mulf %866, %868 : vector<8x64xf32>
    %870 = arith.mulf %26, %869 : vector<8x64xf32>
    %871 = arith.addf %870, %29 : vector<8x64xf32>
    %872 = vector.extract_strided_slice %848 {offsets = [0, 64], sizes = [8, 32], strides = [1, 1]} : vector<8x96xf32> to vector<8x32xf32>
    %cst_225 = arith.constant dense<0.000000e+00> : vector<8xf32>
    %873 = vector.multi_reduction <add>, %872, %cst_225 [1] : vector<8x32xf32> to vector<8xf32>
    %874 = vector.shape_cast %873 : vector<8xf32> to vector<8x1xf32>
    %cst_226 = arith.constant 3.200000e+01 : f32
    %875 = vector.broadcast %cst_226 : f32 to vector<8x1xf32>
    %876 = arith.divf %874, %875 : vector<8x1xf32>
    %877 = arith.mulf %872, %872 : vector<8x32xf32>
    %cst_227 = arith.constant dense<0.000000e+00> : vector<8xf32>
    %878 = vector.multi_reduction <add>, %877, %cst_227 [1] : vector<8x32xf32> to vector<8xf32>
    %879 = vector.shape_cast %878 : vector<8xf32> to vector<8x1xf32>
    %cst_228 = arith.constant 3.200000e+01 : f32
    %880 = vector.broadcast %cst_228 : f32 to vector<8x1xf32>
    %881 = arith.mulf %880, %876 : vector<8x1xf32>
    %882 = arith.mulf %881, %876 : vector<8x1xf32>
    %883 = arith.subf %879, %882 : vector<8x1xf32>
    %cst_229 = arith.constant 0.000000e+00 : f32
    %884 = vector.broadcast %cst_229 : f32 to vector<8x1xf32>
    %885 = arith.maximumf %883, %884 : vector<8x1xf32>
    %cst_230 = arith.constant 3.100000e+01 : f32
    %886 = vector.broadcast %cst_230 : f32 to vector<8x1xf32>
    %887 = arith.divf %885, %886 : vector<8x1xf32>
    %888 = vector.broadcast %876 : vector<8x1xf32> to vector<8x32xf32>
    %889 = arith.subf %872, %888 : vector<8x32xf32>
    %890 = math.rsqrt %887 : vector<8x1xf32>
    %891 = vector.broadcast %890 : vector<8x1xf32> to vector<8x32xf32>
    %892 = arith.mulf %889, %891 : vector<8x32xf32>
    %893 = arith.mulf %32, %892 : vector<8x32xf32>
    %894 = arith.addf %893, %35 : vector<8x32xf32>
    %cst_231 = arith.constant dense<0.000000e+00> : vector<8x96xf32>
    %895 = tpu.matmul %803, %19, %cst_231 {dimension_numbers = #tpu.dot_dimension_numbers<[1], [0], [0], [1], [0, 0, 1, 1], [], []>} : vector<8x32xf32>, vector<32x96xf32>, vector<8x96xf32> -> vector<8x96xf32>
    %896 = vector.extract_strided_slice %895 {offsets = [0, 0], sizes = [8, 64], strides = [1, 1]} : vector<8x96xf32> to vector<8x64xf32>
    %cst_232 = arith.constant dense<0.000000e+00> : vector<8xf32>
    %897 = vector.multi_reduction <add>, %896, %cst_232 [1] : vector<8x64xf32> to vector<8xf32>
    %898 = vector.shape_cast %897 : vector<8xf32> to vector<8x1xf32>
    %cst_233 = arith.constant 6.400000e+01 : f32
    %899 = vector.broadcast %cst_233 : f32 to vector<8x1xf32>
    %900 = arith.divf %898, %899 : vector<8x1xf32>
    %901 = vector.broadcast %900 : vector<8x1xf32> to vector<8x64xf32>
    %902 = arith.subf %896, %901 : vector<8x64xf32>
    %903 = arith.mulf %38, %902 : vector<8x64xf32>
    %904 = arith.addf %903, %41 : vector<8x64xf32>
    %905 = vector.extract_strided_slice %895 {offsets = [0, 64], sizes = [8, 32], strides = [1, 1]} : vector<8x96xf32> to vector<8x32xf32>
    %cst_234 = arith.constant dense<0.000000e+00> : vector<8xf32>
    %906 = vector.multi_reduction <add>, %905, %cst_234 [1] : vector<8x32xf32> to vector<8xf32>
    %907 = vector.shape_cast %906 : vector<8xf32> to vector<8x1xf32>
    %cst_235 = arith.constant 3.200000e+01 : f32
    %908 = vector.broadcast %cst_235 : f32 to vector<8x1xf32>
    %909 = arith.divf %907, %908 : vector<8x1xf32>
    %910 = vector.broadcast %909 : vector<8x1xf32> to vector<8x32xf32>
    %911 = arith.subf %905, %910 : vector<8x32xf32>
    %912 = arith.mulf %44, %911 : vector<8x32xf32>
    %913 = arith.addf %912, %47 : vector<8x32xf32>
    %914 = arith.addf %871, %904 : vector<8x64xf32>
    %915 = arith.negf %914 : vector<8x64xf32>
    %916 = math.exp %915 : vector<8x64xf32>
    %cst_236 = arith.constant 1.000000e+00 : f32
    %917 = vector.broadcast %cst_236 : f32 to vector<8x64xf32>
    %918 = arith.addf %917, %916 : vector<8x64xf32>
    %919 = arith.divf %917, %918 : vector<8x64xf32>
    %920 = vector.extract_strided_slice %919 {offsets = [0, 0], sizes = [8, 32], strides = [1, 1]} : vector<8x64xf32> to vector<8x32xf32>
    %921 = vector.extract_strided_slice %919 {offsets = [0, 32], sizes = [8, 32], strides = [1, 1]} : vector<8x64xf32> to vector<8x32xf32>
    %922 = arith.mulf %920, %913 : vector<8x32xf32>
    %923 = arith.addf %894, %922 : vector<8x32xf32>
    %924 = math.tanh %923 : vector<8x32xf32>
    %cst_237 = arith.constant 1.000000e+00 : f32
    %925 = vector.broadcast %cst_237 : f32 to vector<8x32xf32>
    %926 = arith.subf %925, %921 : vector<8x32xf32>
    %927 = arith.mulf %926, %924 : vector<8x32xf32>
    %928 = arith.mulf %921, %803 : vector<8x32xf32>
    %929 = arith.addf %927, %928 : vector<8x32xf32>
    %930 = arith.index_cast %c6_i32 : i32 to index
    %c0_238 = arith.constant 0 : index
    %c0_239 = arith.constant 0 : index
    %931 = vector.load %arg12[%930, %c0_238, %c0_239] : memref<8x8x32xf32, #tpu.memory_space<vmem>>, vector<1x8x32xf32>
    %932 = vector.shape_cast %931 : vector<1x8x32xf32> to vector<8x32xf32>
    %933 = vector.shape_cast %929 : vector<8x32xf32> to vector<1x8x32xf32>
    tpu.vector_store %arg12[%930, %c0_238, %c0_239], %933 {strides = array<i32>} : memref<8x8x32xf32, #tpu.memory_space<vmem>>, vector<1x8x32xf32>,
    %c7_i32 = arith.constant 7 : i32
    %934 = arith.index_cast %c7_i32 : i32 to index
    %c0_240 = arith.constant 0 : index
    %c0_241 = arith.constant 0 : index
    %935 = vector.load %arg1[%934, %c0_240, %c0_241] : memref<8x8x96xf32, #tpu.memory_space<vmem>>, vector<1x8x96xf32>
    %936 = vector.shape_cast %935 : vector<1x8x96xf32> to vector<8x96xf32>
    %937 = vector.extract_strided_slice %936 {offsets = [0, 0], sizes = [8, 64], strides = [1, 1]} : vector<8x96xf32> to vector<8x64xf32>
    %938 = vector.extract_strided_slice %936 {offsets = [0, 64], sizes = [8, 32], strides = [1, 1]} : vector<8x96xf32> to vector<8x32xf32>
    %cst_242 = arith.constant dense<0.000000e+00> : vector<8x96xf32>
    %939 = tpu.matmul %847, %3, %cst_242 {dimension_numbers = #tpu.dot_dimension_numbers<[1], [0], [0], [1], [0, 0, 1, 1], [], []>} : vector<8x32xf32>, vector<32x96xf32>, vector<8x96xf32> -> vector<8x96xf32>
    %940 = vector.extract_strided_slice %939 {offsets = [0, 0], sizes = [8, 64], strides = [1, 1]} : vector<8x96xf32> to vector<8x64xf32>
    %cst_243 = arith.constant dense<0.000000e+00> : vector<8xf32>
    %941 = vector.multi_reduction <add>, %940, %cst_243 [1] : vector<8x64xf32> to vector<8xf32>
    %942 = vector.shape_cast %941 : vector<8xf32> to vector<8x1xf32>
    %cst_244 = arith.constant 6.400000e+01 : f32
    %943 = vector.broadcast %cst_244 : f32 to vector<8x1xf32>
    %944 = arith.divf %942, %943 : vector<8x1xf32>
    %945 = vector.broadcast %944 : vector<8x1xf32> to vector<8x64xf32>
    %946 = arith.subf %940, %945 : vector<8x64xf32>
    %947 = arith.mulf %8, %946 : vector<8x64xf32>
    %948 = arith.addf %947, %11 : vector<8x64xf32>
    %949 = vector.extract_strided_slice %939 {offsets = [0, 64], sizes = [8, 32], strides = [1, 1]} : vector<8x96xf32> to vector<8x32xf32>
    %cst_245 = arith.constant dense<0.000000e+00> : vector<8xf32>
    %950 = vector.multi_reduction <add>, %949, %cst_245 [1] : vector<8x32xf32> to vector<8xf32>
    %951 = vector.shape_cast %950 : vector<8xf32> to vector<8x1xf32>
    %cst_246 = arith.constant 3.200000e+01 : f32
    %952 = vector.broadcast %cst_246 : f32 to vector<8x1xf32>
    %953 = arith.divf %951, %952 : vector<8x1xf32>
    %954 = vector.broadcast %953 : vector<8x1xf32> to vector<8x32xf32>
    %955 = arith.subf %949, %954 : vector<8x32xf32>
    %956 = arith.mulf %14, %955 : vector<8x32xf32>
    %957 = arith.addf %956, %17 : vector<8x32xf32>
    %958 = arith.addf %937, %948 : vector<8x64xf32>
    %959 = arith.negf %958 : vector<8x64xf32>
    %960 = math.exp %959 : vector<8x64xf32>
    %cst_247 = arith.constant 1.000000e+00 : f32
    %961 = vector.broadcast %cst_247 : f32 to vector<8x64xf32>
    %962 = arith.addf %961, %960 : vector<8x64xf32>
    %963 = arith.divf %961, %962 : vector<8x64xf32>
    %964 = vector.extract_strided_slice %963 {offsets = [0, 0], sizes = [8, 32], strides = [1, 1]} : vector<8x64xf32> to vector<8x32xf32>
    %965 = vector.extract_strided_slice %963 {offsets = [0, 32], sizes = [8, 32], strides = [1, 1]} : vector<8x64xf32> to vector<8x32xf32>
    %966 = arith.mulf %964, %957 : vector<8x32xf32>
    %967 = arith.addf %938, %966 : vector<8x32xf32>
    %968 = math.tanh %967 : vector<8x32xf32>
    %cst_248 = arith.constant 1.000000e+00 : f32
    %969 = vector.broadcast %cst_248 : f32 to vector<8x32xf32>
    %970 = arith.subf %969, %965 : vector<8x32xf32>
    %971 = arith.mulf %970, %968 : vector<8x32xf32>
    %972 = arith.mulf %965, %847 : vector<8x32xf32>
    %973 = arith.addf %971, %972 : vector<8x32xf32>
    %cst_249 = arith.constant dense<0.000000e+00> : vector<8x96xf32>
    %974 = tpu.matmul %973, %18, %cst_249 {dimension_numbers = #tpu.dot_dimension_numbers<[1], [0], [0], [1], [0, 0, 1, 1], [], []>} : vector<8x32xf32>, vector<32x96xf32>, vector<8x96xf32> -> vector<8x96xf32>
    %975 = vector.extract_strided_slice %974 {offsets = [0, 0], sizes = [8, 64], strides = [1, 1]} : vector<8x96xf32> to vector<8x64xf32>
    %cst_250 = arith.constant dense<0.000000e+00> : vector<8xf32>
    %976 = vector.multi_reduction <add>, %975, %cst_250 [1] : vector<8x64xf32> to vector<8xf32>
    %977 = vector.shape_cast %976 : vector<8xf32> to vector<8x1xf32>
    %cst_251 = arith.constant 6.400000e+01 : f32
    %978 = vector.broadcast %cst_251 : f32 to vector<8x1xf32>
    %979 = arith.divf %977, %978 : vector<8x1xf32>
    %980 = arith.mulf %975, %975 : vector<8x64xf32>
    %cst_252 = arith.constant dense<0.000000e+00> : vector<8xf32>
    %981 = vector.multi_reduction <add>, %980, %cst_252 [1] : vector<8x64xf32> to vector<8xf32>
    %982 = vector.shape_cast %981 : vector<8xf32> to vector<8x1xf32>
    %cst_253 = arith.constant 6.400000e+01 : f32
    %983 = vector.broadcast %cst_253 : f32 to vector<8x1xf32>
    %984 = arith.mulf %983, %979 : vector<8x1xf32>
    %985 = arith.mulf %984, %979 : vector<8x1xf32>
    %986 = arith.subf %982, %985 : vector<8x1xf32>
    %cst_254 = arith.constant 0.000000e+00 : f32
    %987 = vector.broadcast %cst_254 : f32 to vector<8x1xf32>
    %988 = arith.maximumf %986, %987 : vector<8x1xf32>
    %cst_255 = arith.constant 6.300000e+01 : f32
    %989 = vector.broadcast %cst_255 : f32 to vector<8x1xf32>
    %990 = arith.divf %988, %989 : vector<8x1xf32>
    %991 = vector.broadcast %979 : vector<8x1xf32> to vector<8x64xf32>
    %992 = arith.subf %975, %991 : vector<8x64xf32>
    %993 = math.rsqrt %990 : vector<8x1xf32>
    %994 = vector.broadcast %993 : vector<8x1xf32> to vector<8x64xf32>
    %995 = arith.mulf %992, %994 : vector<8x64xf32>
    %996 = arith.mulf %26, %995 : vector<8x64xf32>
    %997 = arith.addf %996, %29 : vector<8x64xf32>
    %998 = vector.extract_strided_slice %974 {offsets = [0, 64], sizes = [8, 32], strides = [1, 1]} : vector<8x96xf32> to vector<8x32xf32>
    %cst_256 = arith.constant dense<0.000000e+00> : vector<8xf32>
    %999 = vector.multi_reduction <add>, %998, %cst_256 [1] : vector<8x32xf32> to vector<8xf32>
    %1000 = vector.shape_cast %999 : vector<8xf32> to vector<8x1xf32>
    %cst_257 = arith.constant 3.200000e+01 : f32
    %1001 = vector.broadcast %cst_257 : f32 to vector<8x1xf32>
    %1002 = arith.divf %1000, %1001 : vector<8x1xf32>
    %1003 = arith.mulf %998, %998 : vector<8x32xf32>
    %cst_258 = arith.constant dense<0.000000e+00> : vector<8xf32>
    %1004 = vector.multi_reduction <add>, %1003, %cst_258 [1] : vector<8x32xf32> to vector<8xf32>
    %1005 = vector.shape_cast %1004 : vector<8xf32> to vector<8x1xf32>
    %cst_259 = arith.constant 3.200000e+01 : f32
    %1006 = vector.broadcast %cst_259 : f32 to vector<8x1xf32>
    %1007 = arith.mulf %1006, %1002 : vector<8x1xf32>
    %1008 = arith.mulf %1007, %1002 : vector<8x1xf32>
    %1009 = arith.subf %1005, %1008 : vector<8x1xf32>
    %cst_260 = arith.constant 0.000000e+00 : f32
    %1010 = vector.broadcast %cst_260 : f32 to vector<8x1xf32>
    %1011 = arith.maximumf %1009, %1010 : vector<8x1xf32>
    %cst_261 = arith.constant 3.100000e+01 : f32
    %1012 = vector.broadcast %cst_261 : f32 to vector<8x1xf32>
    %1013 = arith.divf %1011, %1012 : vector<8x1xf32>
    %1014 = vector.broadcast %1002 : vector<8x1xf32> to vector<8x32xf32>
    %1015 = arith.subf %998, %1014 : vector<8x32xf32>
    %1016 = math.rsqrt %1013 : vector<8x1xf32>
    %1017 = vector.broadcast %1016 : vector<8x1xf32> to vector<8x32xf32>
    %1018 = arith.mulf %1015, %1017 : vector<8x32xf32>
    %1019 = arith.mulf %32, %1018 : vector<8x32xf32>
    %1020 = arith.addf %1019, %35 : vector<8x32xf32>
    %cst_262 = arith.constant dense<0.000000e+00> : vector<8x96xf32>
    %1021 = tpu.matmul %929, %19, %cst_262 {dimension_numbers = #tpu.dot_dimension_numbers<[1], [0], [0], [1], [0, 0, 1, 1], [], []>} : vector<8x32xf32>, vector<32x96xf32>, vector<8x96xf32> -> vector<8x96xf32>
    %1022 = vector.extract_strided_slice %1021 {offsets = [0, 0], sizes = [8, 64], strides = [1, 1]} : vector<8x96xf32> to vector<8x64xf32>
    %cst_263 = arith.constant dense<0.000000e+00> : vector<8xf32>
    %1023 = vector.multi_reduction <add>, %1022, %cst_263 [1] : vector<8x64xf32> to vector<8xf32>
    %1024 = vector.shape_cast %1023 : vector<8xf32> to vector<8x1xf32>
    %cst_264 = arith.constant 6.400000e+01 : f32
    %1025 = vector.broadcast %cst_264 : f32 to vector<8x1xf32>
    %1026 = arith.divf %1024, %1025 : vector<8x1xf32>
    %1027 = vector.broadcast %1026 : vector<8x1xf32> to vector<8x64xf32>
    %1028 = arith.subf %1022, %1027 : vector<8x64xf32>
    %1029 = arith.mulf %38, %1028 : vector<8x64xf32>
    %1030 = arith.addf %1029, %41 : vector<8x64xf32>
    %1031 = vector.extract_strided_slice %1021 {offsets = [0, 64], sizes = [8, 32], strides = [1, 1]} : vector<8x96xf32> to vector<8x32xf32>
    %cst_265 = arith.constant dense<0.000000e+00> : vector<8xf32>
    %1032 = vector.multi_reduction <add>, %1031, %cst_265 [1] : vector<8x32xf32> to vector<8xf32>
    %1033 = vector.shape_cast %1032 : vector<8xf32> to vector<8x1xf32>
    %cst_266 = arith.constant 3.200000e+01 : f32
    %1034 = vector.broadcast %cst_266 : f32 to vector<8x1xf32>
    %1035 = arith.divf %1033, %1034 : vector<8x1xf32>
    %1036 = vector.broadcast %1035 : vector<8x1xf32> to vector<8x32xf32>
    %1037 = arith.subf %1031, %1036 : vector<8x32xf32>
    %1038 = arith.mulf %44, %1037 : vector<8x32xf32>
    %1039 = arith.addf %1038, %47 : vector<8x32xf32>
    %1040 = arith.addf %997, %1030 : vector<8x64xf32>
    %1041 = arith.negf %1040 : vector<8x64xf32>
    %1042 = math.exp %1041 : vector<8x64xf32>
    %cst_267 = arith.constant 1.000000e+00 : f32
    %1043 = vector.broadcast %cst_267 : f32 to vector<8x64xf32>
    %1044 = arith.addf %1043, %1042 : vector<8x64xf32>
    %1045 = arith.divf %1043, %1044 : vector<8x64xf32>
    %1046 = vector.extract_strided_slice %1045 {offsets = [0, 0], sizes = [8, 32], strides = [1, 1]} : vector<8x64xf32> to vector<8x32xf32>
    %1047 = vector.extract_strided_slice %1045 {offsets = [0, 32], sizes = [8, 32], strides = [1, 1]} : vector<8x64xf32> to vector<8x32xf32>
    %1048 = arith.mulf %1046, %1039 : vector<8x32xf32>
    %1049 = arith.addf %1020, %1048 : vector<8x32xf32>
    %1050 = math.tanh %1049 : vector<8x32xf32>
    %cst_268 = arith.constant 1.000000e+00 : f32
    %1051 = vector.broadcast %cst_268 : f32 to vector<8x32xf32>
    %1052 = arith.subf %1051, %1047 : vector<8x32xf32>
    %1053 = arith.mulf %1052, %1050 : vector<8x32xf32>
    %1054 = arith.mulf %1047, %929 : vector<8x32xf32>
    %1055 = arith.addf %1053, %1054 : vector<8x32xf32>
    %1056 = arith.index_cast %c7_i32 : i32 to index
    %c0_269 = arith.constant 0 : index
    %c0_270 = arith.constant 0 : index
    %1057 = vector.load %arg12[%1056, %c0_269, %c0_270] : memref<8x8x32xf32, #tpu.memory_space<vmem>>, vector<1x8x32xf32>
    %1058 = vector.shape_cast %1057 : vector<1x8x32xf32> to vector<8x32xf32>
    %1059 = vector.shape_cast %1055 : vector<8x32xf32> to vector<1x8x32xf32>
    tpu.vector_store %arg12[%1056, %c0_269, %c0_270], %1059 {strides = array<i32>} : memref<8x8x32xf32, #tpu.memory_space<vmem>>, vector<1x8x32xf32>,
    %c8_i32 = arith.constant 8 : i32
    %c0_271 = arith.constant 0 : index
    %c0_272 = arith.constant 0 : index
    %c0_273 = arith.constant 0 : index
    %1060 = vector.load %arg13[%c0_271, %c0_272, %c0_273] : memref<2x8x32xf32, #tpu.memory_space<vmem>>, vector<1x8x32xf32>
    %1061 = vector.shape_cast %1060 : vector<1x8x32xf32> to vector<8x32xf32>
    %1062 = vector.shape_cast %973 : vector<8x32xf32> to vector<1x8x32xf32>
    tpu.vector_store %arg13[%c0_271, %c0_272, %c0_273], %1062 {strides = array<i32>} : memref<2x8x32xf32, #tpu.memory_space<vmem>>, vector<1x8x32xf32>,
    %c1_274 = arith.constant 1 : index
    %c0_275 = arith.constant 0 : index
    %c0_276 = arith.constant 0 : index
    %1063 = vector.load %arg13[%c1_274, %c0_275, %c0_276] : memref<2x8x32xf32, #tpu.memory_space<vmem>>, vector<1x8x32xf32>
    %1064 = vector.shape_cast %1063 : vector<1x8x32xf32> to vector<8x32xf32>
    %1065 = vector.shape_cast %1055 : vector<8x32xf32> to vector<1x8x32xf32>
    tpu.vector_store %arg13[%c1_274, %c0_275, %c0_276], %1065 {strides = array<i32>} : memref<2x8x32xf32, #tpu.memory_space<vmem>>, vector<1x8x32xf32>,
    return
  }
  func.func @transform_0(%arg0: i32) -> (i32, i32, i32) {
    %c0_i32 = arith.constant 0 : i32
    %c0_i32_0 = arith.constant 0 : i32
    %c0_i32_1 = arith.constant 0 : i32
    return %arg0, %c0_i32, %c0_i32_0 : i32, i32, i32
  }
  func.func @transform_1(%arg0: i32) -> (i32, i32, i32) {
    %c0_i32 = arith.constant 0 : i32
    %c0_i32_0 = arith.constant 0 : i32
    %c0_i32_1 = arith.constant 0 : i32
    %c0_i32_2 = arith.constant 0 : i32
    return %c0_i32, %c0_i32_0, %c0_i32_1 : i32, i32, i32
  }
  func.func @transform_2(%arg0: i32) -> (i32, i32) {
    %c0_i32 = arith.constant 0 : i32
    %c0_i32_0 = arith.constant 0 : i32
    %c0_i32_1 = arith.constant 0 : i32
    return %c0_i32, %c0_i32_0 : i32, i32
  }
  func.func @transform_3(%arg0: i32) -> (i32, i32) {
    %c0_i32 = arith.constant 0 : i32
    %c0_i32_0 = arith.constant 0 : i32
    %c0_i32_1 = arith.constant 0 : i32
    return %c0_i32, %c0_i32_0 : i32, i32
  }
  func.func @transform_4(%arg0: i32) -> (i32, i32) {
    %c0_i32 = arith.constant 0 : i32
    %c0_i32_0 = arith.constant 0 : i32
    %c0_i32_1 = arith.constant 0 : i32
    return %c0_i32, %c0_i32_0 : i32, i32
  }
  func.func @transform_5(%arg0: i32) -> (i32, i32) {
    %c0_i32 = arith.constant 0 : i32
    %c0_i32_0 = arith.constant 0 : i32
    %c0_i32_1 = arith.constant 0 : i32
    return %c0_i32, %c0_i32_0 : i32, i32
  }
  func.func @transform_6(%arg0: i32) -> (i32, i32) {
    %c0_i32 = arith.constant 0 : i32
    %c0_i32_0 = arith.constant 0 : i32
    %c0_i32_1 = arith.constant 0 : i32
    return %c0_i32, %c0_i32_0 : i32, i32
  }
  func.func @transform_7(%arg0: i32) -> (i32, i32) {
    %c0_i32 = arith.constant 0 : i32
    %c0_i32_0 = arith.constant 0 : i32
    %c0_i32_1 = arith.constant 0 : i32
    return %c0_i32, %c0_i32_0 : i32, i32
  }
  func.func @transform_8(%arg0: i32) -> (i32, i32) {
    %c0_i32 = arith.constant 0 : i32
    %c0_i32_0 = arith.constant 0 : i32
    %c0_i32_1 = arith.constant 0 : i32
    return %c0_i32, %c0_i32_0 : i32, i32
  }
  func.func @transform_9(%arg0: i32) -> (i32, i32) {
    %c0_i32 = arith.constant 0 : i32
    %c0_i32_0 = arith.constant 0 : i32
    %c0_i32_1 = arith.constant 0 : i32
    return %c0_i32, %c0_i32_0 : i32, i32
  }
  func.func @transform_10(%arg0: i32) -> (i32, i32) {
    %c0_i32 = arith.constant 0 : i32
    %c0_i32_0 = arith.constant 0 : i32
    %c0_i32_1 = arith.constant 0 : i32
    return %c0_i32, %c0_i32_0 : i32, i32
  }
  func.func @transform_11(%arg0: i32) -> (i32, i32, i32) {
    %c0_i32 = arith.constant 0 : i32
    %c0_i32_0 = arith.constant 0 : i32
    %c0_i32_1 = arith.constant 0 : i32
    return %arg0, %c0_i32, %c0_i32_0 : i32, i32, i32
  }
  func.func @transform_12(%arg0: i32) -> (i32, i32, i32) {
    %c0_i32 = arith.constant 0 : i32
    %c0_i32_0 = arith.constant 0 : i32
    %c0_i32_1 = arith.constant 0 : i32
    %c0_i32_2 = arith.constant 0 : i32
    return %c0_i32, %c0_i32_0, %c0_i32_1 : i32, i32, i32
  }
}

</mosaic_0001>

<bundles_post_ra>
// kernel: tpu_custom_call.1
= control target key start
LH: loop header
LB: loop body
LE: loop exit
PB: predicated region body
PF: predicated region fallthrough
CT: control target
= control target key end

     0   :  { %18 = vsyncpa [#allocation3], 0  ;;  %s4763_s0 = inlined_call_operand.hbm [shape: f32[8,8,96], index: 0, kind: input, shape index: {}]   ;;  %s4764_s1 = inlined_call_operand.hbm [shape: f32[2,8,32], index: 1, kind: input, shape index: {}]   ;;  %s4765_s2 = inlined_call_operand.hbm [shape: f32[32,96], index: 2, kind: input, shape index: {}]   ;;  %s4766_s3 = inlined_call_operand.vmem [shape: f32[1,96], index: 3, kind: input, shape index: {}]   ;;  %s4767_s4 = inlined_call_operand.vmem [shape: f32[1,96], index: 4, kind: input, shape index: {}]   ;;  %s4768_s5 = inlined_call_operand.hbm [shape: f32[32,96], index: 5, kind: input, shape index: {}]   ;;  %s4769_s6 = inlined_call_operand.hbm [shape: f32[32,96], index: 6, kind: input, shape index: {}]   ;;  %s4770_s7 = inlined_call_operand.vmem [shape: f32[1,96], index: 7, kind: input, shape index: {}]   ;;  %s4771_s8 = inlined_call_operand.vmem [shape: f32[1,96], index: 8, kind: input, shape index: {}]   ;;  %s4772_s9 = inlined_call_operand.vmem [shape: f32[1,96], index: 9, kind: input, shape index: {}]   ;;  %s4773_s10 = inlined_call_operand.vmem [shape: f32[1,96], index: 10, kind: input, shape index: {}]   ;;  %s4774_s11 = inlined_call_operand.hbm [shape: f32[8,8,32], index: 11, kind: output, shape index: {0}]   ;;  %s4775_s12 = inlined_call_operand.hbm [shape: f32[2,8,32], index: 12, kind: output, shape index: {1}]  }
   0x1   :  { %19 = vsyncpa [#allocation6], 0 }
   0x2   :  { %20 = vsyncpa [#allocation9], 0 }
   0x3   :  { %21 = vsyncpa [#allocation4], 0 }
   0x4   :  { %22 = vsyncpa [#allocation13], 0  ;;  %s3820_s21 = smov [#allocation5]   ;;  %s3821_s23 = smov [#allocation8]  }
   0x5   :  { %s40_s22 = sshll.u32 %s3820_s21, 4  ;;  %s68_s24 = sshll.u32 %s3821_s23, 4  ;;  %s41_s22 = int_to_ptr.vmem [resolvable:$true] %s40_s22  ;;  %s69_s24 = int_to_ptr.vmem [resolvable:$true] %s68_s24 }
   0x6   :  { %s3678_s25 = scalar_lea.vmem %s41_s22, 256  ;;  %p3683_p1 = scmp.lt.s32.totalorder %s41_s22, %s41_s22 }
   0x7   :  { %p3679_p0 = scmp.ne.s32.totalorder %s41_s22, %s3678_s25  ;;  %p3684_p2 = scmp.lt.s32.totalorder %s3678_s25, %s3678_s25 }
   0x9   :  { %p3685_p3 = por %p3684_p2, %p3683_p1 }
   0xb   :  { %p3686_p4 = pnand %p3685_p3, %p3679_p0 }
   0xd   :  { %3689 = shalt.err (!%p3686_p4)
}
   0xe   :  { %s3822_s26 = smov 128   ;;  %s3823_s27 = smov 8  }
   0xf   :  { %46 = dma.hbm_to_vmem [thread:$0]  %s4764_s1, 256, %s41_s22, [#allocation6], %s3822_s26, %s3822_s26, %s3823_s27  }
  0x10   :  { %s3698_s30 = scalar_lea.vmem %s69_s24, 512  ;;  %p3703_p6 = scmp.lt.s32.totalorder %s69_s24, %s69_s24 }
  0x11   :  { %p3699_p5 = scmp.ne.s32.totalorder %s69_s24, %s3698_s30  ;;  %p3704_p7 = scmp.lt.s32.totalorder %s3698_s30, %s3698_s30 }
  0x13   :  { %p3705_p8 = por %p3704_p7, %p3703_p6 }
  0x15   :  { %p3706_p9 = pnand %p3705_p8, %p3699_p5 }
  0x17   :  { %3709 = shalt.err (!%p3706_p9)
}
  0x18   :  { %74 = dma.hbm_to_vmem [thread:$0]  %s4768_s5, 512, %s69_s24, [#allocation9], %s3822_s26, %s3822_s26, %s3823_s27  }
  0x19   :  { %s3824_s15 = smov [#allocation2]   ;;  %s3825_s17 = smov [#allocation7]  }
  0x1a   :  { %s28_s16 = sshll.u32 %s3824_s15, 4  ;;  %s52_s18 = sshll.u32 %s3825_s17, 4  ;;  %s29_s16 = int_to_ptr.vmem [resolvable:$true] %s28_s16  ;;  %s53_s18 = int_to_ptr.vmem [resolvable:$true] %s52_s18 }
  0x1b   :  { %s3718_s1 = scalar_lea.vmem %s29_s16, 1024  ;;  %p3723_p11 = scmp.lt.s32.totalorder %s29_s16, %s29_s16 }
  0x1c   :  { %p3719_p10 = scmp.ne.s32.totalorder %s29_s16, %s3718_s1  ;;  %p3724_p12 = scmp.lt.s32.totalorder %s3718_s1, %s3718_s1 }
  0x1e   :  { %p3725_p13 = por %p3724_p12, %p3723_p11 }
  0x20   :  { %p3726_p0 = pnand %p3725_p13, %p3719_p10 }
  0x22   :  { %3729 = shalt.err (!%p3726_p0)
}
  0x23   :  { %34 = dma.hbm_to_vmem [thread:$0]  %s4763_s0, 1024, %s29_s16, [#allocation3], %s3822_s26, %s3822_s26, %s3823_s27  }
  0x24   :  { %s3738_s5 = scalar_lea.vmem %s53_s18, 512  ;;  %p3743_p2 = scmp.lt.s32.totalorder %s53_s18, %s53_s18 }
  0x25   :  { %p3739_p1 = scmp.ne.s32.totalorder %s53_s18, %s3738_s5  ;;  %p3744_p3 = scmp.lt.s32.totalorder %s3738_s5, %s3738_s5 }
  0x27   :  { %p3745_p4 = por %p3744_p3, %p3743_p2 }
  0x29   :  { %p3746_p5 = pnand %p3745_p4, %p3739_p1 }
  0x2b   :  { %3749 = shalt.err (!%p3746_p5)
}
  0x2c   :  { %58 = dma.hbm_to_vmem [thread:$0]  %s4765_s2, 512, %s53_s18, [#allocation6], %s3822_s26, %s3822_s26, %s3823_s27  }
  0x2d   :  { %s3826_s23 = smov [#allocation10]  }
  0x2e   :  { %s80_s24 = sshll.u32 %s3826_s23, 4  ;;  %s81_s24 = int_to_ptr.vmem [resolvable:$true] %s80_s24 }
  0x2f   :  { %s3758_s25 = scalar_lea.vmem %s81_s24, 512  ;;  %p3763_p7 = scmp.lt.s32.totalorder %s81_s24, %s81_s24 }
  0x30   :  { %p3759_p6 = scmp.ne.s32.totalorder %s81_s24, %s3758_s25  ;;  %p3764_p8 = scmp.lt.s32.totalorder %s3758_s25, %s3758_s25 }
  0x32   :  { %p3765_p9 = por %p3764_p8, %p3763_p7 }
  0x34   :  { %p3766_p10 = pnand %p3765_p9, %p3759_p6 }
  0x36   :  { %3769 = shalt.err (!%p3766_p10)
}
  0x37   :  { %86 = dma.hbm_to_vmem [thread:$0]  %s4769_s6, 512, %s81_s24, [#allocation9], %s3822_s26, %s3822_s26, %s3823_s27  }
  0x38   :  { %3810 = dma.done.wait [#allocation3], 1024  }
  0x39   :  { %3811 = vsyncadd [#allocation3], 4294966272 }
  0x3a   :  { %3812 = dma.done.wait [#allocation6], 768  }
  0x3b   :  { %3813 = vsyncadd [#allocation6], 4294966528 }
  0x3c   :  { %3814 = dma.done.wait [#allocation9], 1024  }
  0x3d   :  { %3815 = vsyncadd [#allocation9], 4294966272  ;;  %v3827_v0 = vmov 0.0   ;;  %vm3828_vm0 = vmmov 0   ;;  %vm116_vm1 = vcmask 261120   ;;  %v3935_v1 = vld [vmem:[#allocation7 + $0x18] sm:$0xff] }
  0x3e   :  { %3242 = vmatprep.subr.mxu0 %v3827_v0  ;;  %3250 = vmatprep.mubr.msk.f32.mxu0 %vm3828_vm0, %v3827_v0  ;;  %v3937_v2 = vld [vmem:[#allocation7 + $0x10] sm:$0xff]  ;;  %v3941_v4 = vld [vmem:[#allocation7 + $0x8] sm:$0xff]  ;;  %v3946_v5 = vld [vmem:[#allocation7] sm:$0xff]  ;;  %vm251_vm2 = vcmask 523264   ;;  %s3829_s2 = smov 64   ;;  %s3830_s14 = smov 96  }
  0x3f   :  { %3253 = vmatprep.subr.mxu1 %v3827_v0  ;;  %3261 = vmatprep.mubr.msk.f32.mxu1 %vm3828_vm0, %v3827_v0  ;;  %v114_v3 = vld [vmem:[#allocation5] sm:$0xff]  ;;  %v3961_v12 = vld [vmem:[#allocation10 + $0x18] sm:$0xff]  ;;  %v3967_v16 = vld [vmem:[#allocation10 + $0x8] sm:$0xff]  ;;  %s3831_s15 = smov 32  }
  0x40   :  { %3243 = vmatpush3.msra.mxu0 %v3935_v1  ;;  %117 = vst.msk [vmem:[#allocation12] sm:$0xff] %vm116_vm1, %v114_v3  ;;  %v3963_v13 = vld [vmem:[#allocation10 + $0x10] sm:$0xff]  ;;  %v115_v14 = vld [vmem:[#allocation5 + $0x8] sm:$0xff]  ;;  %v3972_v18 = vld [vmem:[#allocation10] sm:$0xff] }
  0x41   :  { %3244 = vmatprep.subr.mxu0 %v3827_v0  ;;  %118 = vst.msk [vmem:[#allocation12 + $0x8] sm:$0xff] %vm116_vm1, %v115_v14  ;;  %v3978_v20 = vld [vmem:[%s4767_s4] ss:$0 sm:$0xff]  ;;  %v4002_v41 = vld [vmem:[#allocation8 + $0x18] sm:$0xff]  ;;  %v4010_v43 = vld [vmem:[#allocation8 + $0x8] sm:$0xff] }
  0x42   :  { %3245 = vmatpush3.msra.mxu0 %v3937_v2  ;;  %v3986_v22 = vld [vmem:[%s4766_s3] ss:$0 sm:$0xff]  ;;  %3254 = vmatpush3.msra.mxu1 %v4002_v41  ;;  %v4016_v46 = vld [vmem:[#allocation8] sm:$0xff] }
  0x43   :  { %3246 = vmatprep.subr.mxu0 %v3827_v0  ;;  %v176_v30 = vld [vmem:[#allocation2] sm:$0xff]  ;;  %3255 = vmatprep.subr.mxu1 %v3827_v0 }
  0x44   :  { %3247 = vmatpush3.msra.mxu0 %v3941_v4  ;;  %v4004_v42 = vld [vmem:[#allocation8 + $0x10] sm:$0xff] }
  0x45   :  { %3248 = vmatprep.subr.mxu0 %v3827_v0  ;;  %3256 = vmatpush3.msra.mxu1 %v4004_v42  ;;  %v4062_v59 = vld [vmem:[%s4773_s10] ss:$0 sm:$0xff] }
  0x46   :  { %3249 = vmatpush3.msra.mxu0 %v3946_v5  ;;  %3257 = vmatprep.subr.mxu1 %v3827_v0  ;;  %v4070_v62 = vld [vmem:[%s4771_s8] ss:$0 sm:$0xff] }
  0x47   :  { %3264 = vmatprep.subr.mxu0 %v3827_v0  ;;  %v3952_v6 = vld [vmem:[#allocation12] sm:$0xff]  ;;  %3258 = vmatpush3.msra.mxu1 %v4010_v43 }
  0x48   :  { %3251 = vmatmul.mubr.msk.f32.vlgmr.msra.gmra.mxu0 %vm116_vm1, %v3952_v6  ;;  %v3990_v24 = vld [vmem:[#allocation12 + $0x8] sm:$0xff]  ;;  %3259 = vmatprep.subr.mxu1 %v3827_v0 }
  0x49   :  { %3272 = vmatprep.mubr.msk.f32.mxu0 %vm3828_vm0, %v3827_v0  ;;  %3265 = vmatpush3.msra.mxu0 %v3961_v12 }
  0x4a   :  { %3266 = vmatprep.subr.mxu0 %v3827_v0  ;;  %3260 = vmatpush3.msra.mxu1 %v4016_v46 }
  0x4b   :  { %3267 = vmatpush3.msra.mxu0 %v3963_v13  ;;  %3275 = vmatprep.subr.mxu1 %v3827_v0 }
  0x4c   :  { %3268 = vmatprep.subr.mxu0 %v3827_v0 }
  0x4d   :  { %3269 = vmatpush3.msra.mxu0 %v3967_v16 }
  0x4e   :  { %3270 = vmatprep.subr.mxu0 %v3827_v0 }
  0x4f   :  { %3271 = vmatpush3.msra.mxu0 %v3972_v18 }
  0x50   :  { %3286 = vmatprep.subr.mxu0 %v3827_v0  ;;  %3273 = vmatmul.mubr.msk.f32.vlgmr.msra.gmra.mxu0 %vm116_vm1, %v3990_v24 }
  0x51   :  { %3294 = vmatprep.mubr.msk.f32.mxu0 %vm3828_vm0, %v3827_v0  ;;  %3287 = vmatpush3.msra.mxu0 %v4002_v41 }
  0x52   :  { %3288 = vmatprep.subr.mxu0 %v3827_v0 }
  0x53   :  { %3289 = vmatpush3.msra.mxu0 %v4004_v42 }
  0x54   :  { %3290 = vmatprep.subr.mxu0 %v3827_v0 }
  0x55   :  { %3291 = vmatpush3.msra.mxu0 %v4010_v43 }
  0x56   :  { %3292 = vmatprep.subr.mxu0 %v3827_v0 }
  0x57   :  { %3293 = vmatpush3.msra.mxu0 %v4016_v46 }
  0x58   :  { %3308 = vmatprep.subr.mxu0 %v3827_v0 }
 0x108   :  { %v247_v7 = vpop.f32.mrf.mxu0 }
 0x109   :  { %261 = vrot.lane.b32.xlu0 %v247_v7, %s3829_s2  ;;  %v252_v8 = vsel %vm251_vm2, %v247_v7, 0.0 }
 0x10a   :  { %253 = vadd.xlane.f32.xlu1 %v252_v8  ;;  %v3252_v9 = vpop.f32.mrf.mxu0 }
 0x110   :  { %v4000_v40 = vpop.f32.mrf.mxu0 }
 0x112   :  { %v3274_v44 = vpop.f32.mrf.mxu0 }
 0x113   :  { %v4103_v44 = vld [vmem:[%s4770_s7] ss:$0 sm:$0xff] }
 0x17b   :  { %v262_v10 = vpop.permute.xlu0 %261 }
 0x17c   :  { %v264_v11 = vsel %vm116_vm1, %v262_v10, 0.0 }
 0x17d   :  { %265 = vadd.xlane.f32.xlu0 %v264_v11  ;;  %v494_v11 = vsel %vm251_vm2, %v4000_v40, 0.0 }
 0x193   :  { %v254_v25 = vpop.xlane.xlu1 %253  ;;  %502 = vrot.lane.b32.xlu0 %v4000_v40, %s3829_s2 }
 0x194   :  { %v256_v26 = vmul.f32 0.015625, %v254_v25 }
 0x196   :  { %v257_v27 = vsub.f32 %v247_v7, %v256_v26 }
 0x198   :  { %v258_v28 = vmul.f32 %v3978_v20, %v257_v27 }
 0x19a   :  { %v259_v29 = vadd.f32 %v3986_v22, %v258_v28 }
 0x19c   :  { %v272_v31 = vadd.f32 %v259_v29, %v176_v30 }
 0x19e   :  { %v3083_v32 = vmul.f32 -1.442695, %v272_v31 }
 0x1a0   :  { %3520 = vpow2.f32 %v3083_v32 }
 0x1ad   :  { %v3521_v33 = vpop.eup %3520 }
 0x1ae   :  { %v276_v34 = vadd.f32 1.0, %v3521_v33 }
 0x1b0   :  { %3522 = vrcp.f32 %v276_v34 }
 0x1bd   :  { %v3523_v35 = vpop.eup %3522 }
 0x1be   :  { %v290_v48 = vsub.f32 1.0, %v3523_v35 }
 0x206   :  { %v266_v15 = vpop.xlane.xlu0 %265 }
 0x207   :  { %v268_v17 = vmul.f32 0.03125, %v266_v15 }
 0x209   :  { %v269_v19 = vsub.f32 %v247_v7, %v268_v17 }
 0x20a   :  { %v503_v50 = vpop.permute.xlu0 %502 }
 0x20b   :  { %v270_v21 = vmul.f32 %v3978_v20, %v269_v19  ;;  %v505_v53 = vsel %vm116_vm1, %v503_v50, 0.0 }
 0x20c   :  { %506 = vadd.xlane.f32.xlu0 %v505_v53 }
 0x20d   :  { %v271_v23 = vadd.f32 %v3986_v22, %v270_v21 }
 0x20f   :  { %280 = vrot.lane.b32.xlu1 %v271_v23, %s3829_s2 }
 0x281   :  { %v281_v36 = vpop.permute.xlu1 %280 }
 0x282   :  { %v283_v37 = vmul.f32 %v3523_v35, %v281_v36 }
 0x284   :  { %285 = vrot.lane.b32.xlu1 %v283_v37, %s3829_s2  ;;  %v4097_v37 = vld [vmem:[%s4772_s9] ss:$0 sm:$0xff] }
 0x295   :  { %v507_v56 = vpop.xlane.xlu0 %506 }
 0x296   :  { %v508_v57 = vmul.f32 0.03125, %v507_v56 }
 0x298   :  { %v509_v58 = vsub.f32 %v4000_v40, %v508_v57 }
 0x29a   :  { %v510_v60 = vmul.f32 %v4062_v59, %v509_v58 }
 0x29c   :  { %v511_v3 = vadd.f32 %v4070_v62, %v510_v60 }
 0x2f6   :  { %v286_v38 = vpop.permute.xlu1 %285 }
 0x2f7   :  { %v288_v39 = vadd.f32 %v286_v38, %v176_v30 }
 0x2f9   :  { %3524 = vtanh.f32 %v288_v39 }
 0x306   :  { %v3525_v45 = vpop.eup %3524 }
 0x307   :  { %292 = vrot.lane.b32.xlu1 %v3525_v45, %s3830_s14 }
 0x30b   :  { %296 = vrot.lane.b32.xlu1 %v3952_v6, %s3831_s15 }
 0x379   :  { %v293_v47 = vpop.permute.xlu1 %292 }
 0x37a   :  { %v295_v51 = vmul.f32 %v293_v47, %v290_v48 }
 0x37d   :  { %v297_v49 = vpop.permute.xlu1 %296 }
 0x37e   :  { %v299_v52 = vmul.f32 %v3523_v35, %v297_v49 }
 0x380   :  { %v4032_v54 = vadd.f32 %v299_v52, %v295_v51 }
 0x382   :  { %302 = vrot.lane.b32.xlu1 %v4032_v54, %s3830_s14 }
 0x3f4   :  { %v303_v55 = vpop.permute.xlu1 %302 }
 0x3f5   :  { %3262 = vmatmul.mubr.msk.f32.vlgmr.msra.gmra.mxu1 %vm116_vm1, %v303_v55 }
 0x3f6   :  { %3276 = vmatpush3.msra.mxu1 %v3935_v1  ;;  %3283 = vmatprep.mubr.msk.f32.mxu1 %vm3828_vm0, %v3827_v0 }
 0x3f7   :  { %3277 = vmatprep.subr.mxu1 %v3827_v0 }
 0x3f8   :  { %3278 = vmatpush3.msra.mxu1 %v3937_v2 }
 0x3f9   :  { %3279 = vmatprep.subr.mxu1 %v3827_v0 }
 0x3fa   :  { %3280 = vmatpush3.msra.mxu1 %v3941_v4 }
 0x3fb   :  { %3281 = vmatprep.subr.mxu1 %v3827_v0 }
 0x3fc   :  { %3282 = vmatpush3.msra.mxu1 %v3946_v5 }
 0x3fd   :  { %3284 = vmatmul.mubr.msk.f32.vlgmr.msra.gmra.mxu1 %vm116_vm1, %v303_v55  ;;  %3297 = vmatprep.subr.mxu1 %v3827_v0 }
 0x3fe   :  { %3298 = vmatpush3.msra.mxu1 %v3961_v12  ;;  %3305 = vmatprep.mubr.msk.f32.mxu1 %vm3828_vm0, %v3827_v0 }
 0x3ff   :  { %3299 = vmatprep.subr.mxu1 %v3827_v0 }
 0x400   :  { %3300 = vmatpush3.msra.mxu1 %v3963_v13 }
 0x401   :  { %3301 = vmatprep.subr.mxu1 %v3827_v0 }
 0x402   :  { %3302 = vmatpush3.msra.mxu1 %v3967_v16 }
 0x403   :  { %3303 = vmatprep.subr.mxu1 %v3827_v0 }
 0x404   :  { %3304 = vmatpush3.msra.mxu1 %v3972_v18 }
 0x405   :  { %3319 = vmatprep.subr.mxu1 %v3827_v0 }
 0x4b5   :  { %v4065_v61 = vpop.f32.mrf.mxu1 }
 0x4b6   :  { %396 = vrot.lane.b32.xlu0 %v4065_v61, %s3829_s2  ;;  %v376_v8 = vsel %vm251_vm2, %v4065_v61, 0.0  ;;  %v380_v9 = vmul.f32 %v4065_v61, %v4065_v61 }
 0x4b7   :  { %v3263_v63 = vpop.f32.mrf.mxu1 }
 0x4b8   :  { %v381_v10 = vsel %vm251_vm2, %v380_v9, 0.0 }
 0x4ba   :  { %520 = vrot.lane.b32.xlu0 %v511_v3, %s3829_s2 }
 0x4bd   :  { %v4076_v6 = vpop.f32.mrf.mxu1 }
 0x4be   :  { %626 = vrot.lane.b32.xlu1 %v4076_v6, %s3829_s2  ;;  %v618_v14 = vsel %vm251_vm2, %v4076_v6, 0.0 }
 0x4bf   :  { %v3285_v7 = vpop.f32.mrf.mxu1 }
 0x4e2   :  { %377 = vadd.xlane.f32.xlu1 %v376_v8 }
 0x4e6   :  { %382 = vadd.xlane.f32.xlu1 %v381_v10 }
 0x4ea   :  { %495 = vadd.xlane.f32.xlu1 %v494_v11 }
 0x4ee   :  { %619 = vadd.xlane.f32.xlu1 %v618_v14 }
 0x528   :  { %v397_v19 = vpop.permute.xlu0 %396 }
 0x529   :  { %v399_v21 = vsel %vm116_vm1, %v397_v19, 0.0 }
 0x52c   :  { %v521_v53 = vpop.permute.xlu0 %520 }
 0x530   :  { %v627_v15 = vpop.permute.xlu1 %626 }
 0x531   :  { %v629_v17 = vsel %vm116_vm1, %v627_v15, 0.0  ;;  %v547_v15 = vld [vmem:[#allocation2 + $0x8] sm:$0xff] }
 0x532   :  { %630 = vadd.xlane.f32.xlu1 %v629_v17 }
 0x543   :  { %404 = vrot.lane.b32.xlu1 %v380_v9, %s3829_s2 }
 0x567   :  { %400 = vadd.xlane.f32.xlu1 %v399_v21 }
 0x56b   :  { %v378_v23 = vpop.xlane.xlu1 %377 }
 0x56c   :  { %v379_v25 = vmul.f32 0.015625, %v378_v23 }
 0x56e   :  { %v384_v26 = vmul.f32 64.0, %v379_v25  ;;  %v390_v35 = vsub.f32 %v4065_v61, %v379_v25 }
 0x56f   :  { %v383_v28 = vpop.xlane.xlu1 %382 }
 0x570   :  { %v385_v27 = vmul.f32 %v384_v26, %v379_v25 }
 0x572   :  { %v386_v29 = vsub.f32 %v383_v28, %v385_v27 }
 0x573   :  { %v496_v32 = vpop.xlane.xlu1 %495 }
 0x574   :  { %v387_v30 = vmax.f32 %v386_v29, 0.0  ;;  %v497_v33 = vmul.f32 0.015625, %v496_v32 }
 0x576   :  { %v389_v31 = vmul.f32 0.015873017, %v387_v30  ;;  %v498_v34 = vsub.f32 %v4000_v40, %v497_v33 }
 0x577   :  { %v620_v56 = vpop.xlane.xlu1 %619 }
 0x578   :  { %3526 = vrsqrt.f32 %v389_v31  ;;  %v499_v39 = vmul.f32 %v4062_v59, %v498_v34  ;;  %v621_v9 = vmul.f32 0.015625, %v620_v56 }
 0x57a   :  { %v500_v47 = vadd.f32 %v4070_v62, %v499_v39  ;;  %v622_v10 = vsub.f32 %v4076_v6, %v621_v9 }
 0x57c   :  { %v623_v11 = vmul.f32 %v3978_v20, %v622_v10 }
 0x57e   :  { %v624_v14 = vadd.f32 %v3986_v22, %v623_v11 }
 0x580   :  { %v636_v17 = vadd.f32 %v624_v14, %v547_v15 }
 0x582   :  { %v3088_v19 = vmul.f32 -1.442695, %v636_v17 }
 0x585   :  { %v3527_v36 = vpop.eup %3526 }
 0x586   :  { %v392_v38 = vmul.f32 %v3527_v36, %v390_v35 }
 0x588   :  { %v393_v45 = vmul.f32 %v4097_v37, %v392_v38 }
 0x58a   :  { %v394_v40 = vadd.f32 %v4103_v44, %v393_v45 }
 0x58c   :  { %v512_v48 = vadd.f32 %v500_v47, %v394_v40 }
 0x58e   :  { %v3086_v49 = vmul.f32 -1.442695, %v512_v48 }
 0x590   :  { %3528 = vpow2.f32 %v3086_v49 }
 0x59d   :  { %v3529_v50 = vpop.eup %3528 }
 0x59e   :  { %v516_v51 = vadd.f32 1.0, %v3529_v50 }
 0x5a0   :  { %3530 = vrcp.f32 %v516_v51 }
 0x5a1   :  { %3532 = vpow2.f32 %v3088_v19 }
 0x5ad   :  { %v3531_v52 = vpop.eup %3530 }
 0x5ae   :  { %v523_v55 = vmul.f32 %v3531_v52, %v521_v53  ;;  %v3533_v21 = vpop.eup %3532  ;;  %v530_v53 = vsub.f32 1.0, %v3531_v52 }
 0x5af   :  { %v640_v23 = vadd.f32 1.0, %v3533_v21 }
 0x5b0   :  { %525 = vrot.lane.b32.xlu1 %v523_v55, %s3829_s2 }
 0x5b1   :  { %3534 = vrcp.f32 %v640_v23 }
 0x5bb   :  { %v631_v57 = vpop.xlane.xlu1 %630 }
 0x5bc   :  { %v632_v58 = vmul.f32 0.03125, %v631_v57 }
 0x5be   :  { %v633_v60 = vsub.f32 %v4076_v6, %v632_v58  ;;  %v3535_v25 = vpop.eup %3534 }
 0x5bf   :  { %v405_v7 = vpop.permute.xlu1 %404 }
 0x5c0   :  { %v634_v63 = vmul.f32 %v3978_v20, %v633_v60  ;;  %v407_v8 = vsel %vm116_vm1, %v405_v7, 0.0  ;;  %v654_v60 = vsub.f32 1.0, %v3535_v25 }
 0x5c2   :  { %v635_v3 = vadd.f32 %v3986_v22, %v634_v63 }
 0x5c4   :  { %644 = vrot.lane.b32.xlu0 %v635_v3, %s3829_s2 }
 0x5e3   :  { %408 = vadd.xlane.f32.xlu0 %v407_v8 }
 0x5f0   :  { %v401_v28 = vpop.xlane.xlu1 %400 }
 0x5f1   :  { %v402_v29 = vmul.f32 0.03125, %v401_v28 }
 0x5f3   :  { %v410_v30 = vmul.f32 32.0, %v402_v29  ;;  %v416_v35 = vsub.f32 %v4065_v61, %v402_v29 }
 0x5f5   :  { %v411_v6 = vmul.f32 %v410_v30, %v402_v29 }
 0x622   :  { %v526_v40 = vpop.permute.xlu1 %525 }
 0x636   :  { %v645_v26 = vpop.permute.xlu0 %644 }
 0x637   :  { %v647_v27 = vmul.f32 %v3535_v25, %v645_v26 }
 0x639   :  { %649 = vrot.lane.b32.xlu0 %v647_v27, %s3829_s2 }
 0x66c   :  { %v409_v31 = vpop.xlane.xlu0 %408 }
 0x66d   :  { %v412_v32 = vsub.f32 %v409_v31, %v411_v6 }
 0x66f   :  { %v413_v33 = vmax.f32 %v412_v32, 0.0 }
 0x671   :  { %v415_v34 = vmul.f32 0.032258064, %v413_v33 }
 0x673   :  { %3536 = vrsqrt.f32 %v415_v34 }
 0x680   :  { %v3537_v36 = vpop.eup %3536 }
 0x681   :  { %v418_v38 = vmul.f32 %v3537_v36, %v416_v35 }
 0x683   :  { %v419_v39 = vmul.f32 %v4097_v37, %v418_v38 }
 0x685   :  { %v420_v45 = vadd.f32 %v4103_v44, %v419_v39 }
 0x687   :  { %v528_v47 = vadd.f32 %v526_v40, %v420_v45 }
 0x689   :  { %3538 = vtanh.f32 %v528_v47 }
 0x696   :  { %v3539_v48 = vpop.eup %3538 }
 0x697   :  { %532 = vrot.lane.b32.xlu1 %v3539_v48, %s3830_s14 }
 0x69b   :  { %536 = vrot.lane.b32.xlu1 %v3990_v24, %s3831_s15  ;;  %v660_v24 = vmul.f32 %v3535_v25, %v4032_v54 }
 0x6ab   :  { %v650_v49 = vpop.permute.xlu0 %649 }
 0x6ac   :  { %v652_v50 = vadd.f32 %v650_v49, %v547_v15 }
 0x6ae   :  { %3540 = vtanh.f32 %v652_v50 }
 0x6bb   :  { %v3541_v51 = vpop.eup %3540 }
 0x6bc   :  { %656 = vrot.lane.b32.xlu0 %v3541_v51, %s3830_s14 }
 0x709   :  { %v533_v61 = vpop.permute.xlu1 %532 }
 0x70a   :  { %v535_v56 = vmul.f32 %v533_v61, %v530_v53 }
 0x70d   :  { %v537_v55 = vpop.permute.xlu1 %536 }
 0x70e   :  { %v539_v57 = vmul.f32 %v3531_v52, %v537_v55 }
 0x710   :  { %v4125_v58 = vadd.f32 %v539_v57, %v535_v56 }
 0x712   :  { %542 = vrot.lane.b32.xlu1 %v4125_v58, %s3830_s14 }
 0x72e   :  { %v657_v63 = vpop.permute.xlu0 %656 }
 0x72f   :  { %v659_v3 = vmul.f32 %v657_v63, %v654_v60 }
 0x731   :  { %v4130_v7 = vadd.f32 %v660_v24, %v659_v3 }
 0x733   :  { %663 = vrot.lane.b32.xlu0 %v4130_v7, %s3830_s14 }
 0x784   :  { %v543_v8 = vpop.permute.xlu1 %542 }
 0x785   :  { %545 = vst.msk [vmem:[#allocation11] sm:$0xff] %vm116_vm1, %v543_v8  ;;  %3306 = vmatmul.mubr.msk.f32.vlgmr.msra.gmra.mxu1 %vm116_vm1, %v543_v8 }
 0x786   :  { %3320 = vmatpush3.msra.mxu1 %v4002_v41  ;;  %3327 = vmatprep.mubr.msk.f32.mxu1 %vm3828_vm0, %v3827_v0 }
 0x787   :  { %3321 = vmatprep.subr.mxu1 %v3827_v0 }
 0x788   :  { %3322 = vmatpush3.msra.mxu1 %v4004_v42 }
 0x789   :  { %3323 = vmatprep.subr.mxu1 %v3827_v0 }
 0x78a   :  { %3324 = vmatpush3.msra.mxu1 %v4010_v43 }
 0x78b   :  { %3325 = vmatprep.subr.mxu1 %v3827_v0 }
 0x78c   :  { %3326 = vmatpush3.msra.mxu1 %v4016_v46 }
 0x78d   :  { %3341 = vmatprep.subr.mxu1 %v3827_v0 }
 0x7a5   :  { %v664_v54 = vpop.permute.xlu0 %663 }
 0x7a6   :  { %3295 = vmatmul.mubr.msk.f32.vlgmr.msra.gmra.mxu0 %vm116_vm1, %v664_v54 }
 0x7a7   :  { %3309 = vmatpush3.msra.mxu0 %v3935_v1  ;;  %3316 = vmatprep.mubr.msk.f32.mxu0 %vm3828_vm0, %v3827_v0 }
 0x7a8   :  { %3310 = vmatprep.subr.mxu0 %v3827_v0 }
 0x7a9   :  { %3311 = vmatpush3.msra.mxu0 %v3937_v2 }
 0x7aa   :  { %3312 = vmatprep.subr.mxu0 %v3827_v0 }
 0x7ab   :  { %3313 = vmatpush3.msra.mxu0 %v3941_v4 }
 0x7ac   :  { %3314 = vmatprep.subr.mxu0 %v3827_v0 }
 0x7ad   :  { %3315 = vmatpush3.msra.mxu0 %v3946_v5 }
 0x7ae   :  { %3317 = vmatmul.mubr.msk.f32.vlgmr.msra.gmra.mxu0 %vm116_vm1, %v664_v54  ;;  %3330 = vmatprep.subr.mxu0 %v3827_v0 }
 0x7af   :  { %3331 = vmatpush3.msra.mxu0 %v3961_v12  ;;  %3338 = vmatprep.mubr.msk.f32.mxu0 %vm3828_vm0, %v3827_v0 }
 0x7b0   :  { %3332 = vmatprep.subr.mxu0 %v3827_v0 }
 0x7b1   :  { %3333 = vmatpush3.msra.mxu0 %v3963_v13 }
 0x7b2   :  { %3334 = vmatprep.subr.mxu0 %v3827_v0 }
 0x7b3   :  { %3335 = vmatpush3.msra.mxu0 %v3967_v16 }
 0x7b4   :  { %3336 = vmatprep.subr.mxu0 %v3827_v0 }
 0x7b5   :  { %3337 = vmatpush3.msra.mxu0 %v3972_v18 }
 0x7b6   :  { %3352 = vmatprep.subr.mxu0 %v3827_v0 }
 0x845   :  { %v848_v52 = vpop.f32.mrf.mxu1 }
 0x846   :  { %860 = vrot.lane.b32.xlu1 %v848_v52, %s3829_s2  ;;  %v852_v26 = vsel %vm251_vm2, %v848_v52, 0.0 }
 0x847   :  { %v3307_v9 = vpop.f32.mrf.mxu1 }
 0x866   :  { %v4169_v10 = vpop.f32.mrf.mxu0 }
 0x867   :  { %v737_v14 = vsel %vm251_vm2, %v4169_v10, 0.0  ;;  %v741_v23 = vmul.f32 %v4169_v10, %v4169_v10 }
 0x868   :  { %v3296_v11 = vpop.f32.mrf.mxu0 }
 0x869   :  { %v742_v25 = vsel %vm251_vm2, %v741_v23, 0.0 }
 0x86a   :  { %738 = vadd.xlane.f32.xlu1 %v737_v14 }
 0x86e   :  { %v4173_v15 = vpop.f32.mrf.mxu0 }
 0x86f   :  { %982 = vrot.lane.b32.xlu0 %v4173_v15, %s3829_s2  ;;  %v974_v29 = vsel %vm251_vm2, %v4173_v15, 0.0 }
 0x870   :  { %v3318_v17 = vpop.f32.mrf.mxu0 }
 0x8b8   :  { %v861_v19 = vpop.permute.xlu1 %860 }
 0x8b9   :  { %v863_v21 = vsel %vm116_vm1, %v861_v19, 0.0 }
 0x8ba   :  { %864 = vadd.xlane.f32.xlu0 %v863_v21 }
 0x8be   :  { %743 = vadd.xlane.f32.xlu0 %v742_v25 }
 0x8c2   :  { %853 = vadd.xlane.f32.xlu0 %v852_v26 }
 0x8d8   :  { %764 = vrot.lane.b32.xlu0 %v741_v23, %s3829_s2 }
 0x8e1   :  { %v983_v27 = vpop.permute.xlu0 %982 }
 0x8e2   :  { %v985_v28 = vsel %vm116_vm1, %v983_v27, 0.0 }
 0x8e3   :  { %986 = vadd.xlane.f32.xlu1 %v985_v28 }
 0x8f3   :  { %v739_v39 = vpop.xlane.xlu1 %738 }
 0x8f4   :  { %756 = vrot.lane.b32.xlu1 %v4169_v10, %s3829_s2  ;;  %v740_v45 = vmul.f32 0.015625, %v739_v39 }
 0x8f6   :  { %v745_v40 = vmul.f32 64.0, %v740_v45  ;;  %v750_v24 = vsub.f32 %v4169_v10, %v740_v45 }
 0x8f8   :  { %v746_v47 = vmul.f32 %v745_v40, %v740_v45 }
 0x918   :  { %975 = vadd.xlane.f32.xlu1 %v974_v29 }
 0x943   :  { %v865_v30 = vpop.xlane.xlu0 %864 }
 0x944   :  { %v866_v6 = vmul.f32 0.03125, %v865_v30  ;;  %v903_v30 = vld [vmem:[#allocation2 + $0x10] sm:$0xff] }
 0x946   :  { %v867_v31 = vsub.f32 %v848_v52, %v866_v6 }
 0x947   :  { %v744_v32 = vpop.xlane.xlu0 %743 }
 0x948   :  { %v868_v33 = vmul.f32 %v4062_v59, %v867_v31  ;;  %v747_v49 = vsub.f32 %v744_v32, %v746_v47 }
 0x94a   :  { %v869_v34 = vadd.f32 %v4070_v62, %v868_v33  ;;  %v748_v53 = vmax.f32 %v747_v49, 0.0 }
 0x94b   :  { %v854_v35 = vpop.xlane.xlu0 %853 }
 0x94c   :  { %878 = vrot.lane.b32.xlu0 %v869_v34, %s3829_s2  ;;  %v749_v60 = vmul.f32 0.015873017, %v748_v53  ;;  %v855_v3 = vmul.f32 0.015625, %v854_v35 }
 0x94e   :  { %3542 = vrsqrt.f32 %v749_v60  ;;  %v856_v54 = vsub.f32 %v848_v52, %v855_v3 }
 0x94f   :  { %v765_v36 = vpop.permute.xlu0 %764 }
 0x950   :  { %v767_v38 = vsel %vm116_vm1, %v765_v36, 0.0  ;;  %v857_v11 = vmul.f32 %v4062_v59, %v856_v54 }
 0x951   :  { %768 = vadd.xlane.f32.xlu1 %v767_v38 }
 0x952   :  { %v858_v17 = vadd.f32 %v4070_v62, %v857_v11 }
 0x95b   :  { %v3543_v63 = vpop.eup %3542 }
 0x95c   :  { %v752_v8 = vmul.f32 %v3543_v63, %v750_v24 }
 0x95e   :  { %v753_v9 = vmul.f32 %v4097_v37, %v752_v8 }
 0x960   :  { %v754_v14 = vadd.f32 %v4103_v44, %v753_v9 }
 0x962   :  { %v870_v19 = vadd.f32 %v858_v17, %v754_v14 }
 0x964   :  { %v3091_v21 = vmul.f32 -1.442695, %v870_v19 }
 0x966   :  { %3544 = vpow2.f32 %v3091_v21 }
 0x96c   :  { %v987_v48 = vpop.xlane.xlu1 %986 }
 0x96d   :  { %v988_v50 = vmul.f32 0.03125, %v987_v48 }
 0x96f   :  { %v989_v51 = vsub.f32 %v4173_v15, %v988_v50 }
 0x970   :  { %v757_v61 = vpop.permute.xlu1 %756 }
 0x971   :  { %v990_v55 = vmul.f32 %v3978_v20, %v989_v51  ;;  %v759_v56 = vsel %vm116_vm1, %v757_v61, 0.0 }
 0x972   :  { %760 = vadd.xlane.f32.xlu0 %v759_v56 }
 0x973   :  { %v991_v57 = vadd.f32 %v3986_v22, %v990_v55  ;;  %v3545_v23 = vpop.eup %3544 }
 0x974   :  { %v874_v26 = vadd.f32 1.0, %v3545_v23 }
 0x975   :  { %1000 = vrot.lane.b32.xlu1 %v991_v57, %s3829_s2 }
 0x976   :  { %3546 = vrcp.f32 %v874_v26 }
 0x983   :  { %v3547_v6 = vpop.eup %3546 }
 0x984   :  { %v888_v11 = vsub.f32 1.0, %v3547_v6 }
 0x9a1   :  { %v976_v25 = vpop.xlane.xlu1 %975 }
 0x9a2   :  { %v977_v27 = vmul.f32 0.015625, %v976_v25 }
 0x9a4   :  { %v978_v28 = vsub.f32 %v4173_v15, %v977_v27 }
 0x9a6   :  { %v979_v52 = vmul.f32 %v3978_v20, %v978_v28 }
 0x9a8   :  { %v980_v29 = vadd.f32 %v3986_v22, %v979_v52 }
 0x9aa   :  { %v992_v31 = vadd.f32 %v980_v29, %v903_v30 }
 0x9ac   :  { %v3093_v34 = vmul.f32 -1.442695, %v992_v31 }
 0x9ae   :  { %3548 = vpow2.f32 %v3093_v34 }
 0x9bb   :  { %v3549_v35 = vpop.eup %3548 }
 0x9bc   :  { %v996_v36 = vadd.f32 1.0, %v3549_v35 }
 0x9be   :  { %v879_v32 = vpop.permute.xlu0 %878  ;;  %3550 = vrcp.f32 %v996_v36 }
 0x9bf   :  { %v881_v33 = vmul.f32 %v3547_v6, %v879_v32 }
 0x9c1   :  { %883 = vrot.lane.b32.xlu0 %v881_v33, %s3829_s2 }
 0x9cb   :  { %v3551_v39 = vpop.eup %3550 }
 0x9cc   :  { %v1010_v21 = vsub.f32 1.0, %v3551_v39  ;;  %v1016_v25 = vmul.f32 %v3551_v39, %v4130_v7 }
 0x9da   :  { %v769_v38 = vpop.xlane.xlu1 %768 }
 0x9e7   :  { %v1001_v45 = vpop.permute.xlu1 %1000 }
 0x9e8   :  { %v1003_v15 = vmul.f32 %v3551_v39, %v1001_v45 }
 0x9ea   :  { %1005 = vrot.lane.b32.xlu1 %v1003_v15, %s3829_s2 }
 0x9fb   :  { %v761_v40 = vpop.xlane.xlu0 %760 }
 0x9fc   :  { %v762_v47 = vmul.f32 0.03125, %v761_v40 }
 0x9fe   :  { %v770_v48 = vmul.f32 32.0, %v762_v47  ;;  %v775_v55 = vsub.f32 %v4169_v10, %v762_v47  ;;  %v894_v10 = vmul.f32 %v3547_v6, %v4125_v58 }
 0xa00   :  { %v771_v49 = vmul.f32 %v770_v48, %v762_v47 }
 0xa02   :  { %v772_v50 = vsub.f32 %v769_v38, %v771_v49 }
 0xa04   :  { %v773_v51 = vmax.f32 %v772_v50, 0.0 }
 0xa06   :  { %v774_v61 = vmul.f32 0.032258064, %v773_v51 }
 0xa08   :  { %3552 = vrsqrt.f32 %v774_v61 }
 0xa15   :  { %v3553_v53 = vpop.eup %3552 }
 0xa16   :  { %v777_v56 = vmul.f32 %v3553_v53, %v775_v55 }
 0xa18   :  { %v778_v57 = vmul.f32 %v4097_v37, %v777_v56 }
 0xa1a   :  { %v779_v60 = vadd.f32 %v4103_v44, %v778_v57 }
 0xa33   :  { %v884_v63 = vpop.permute.xlu0 %883 }
 0xa34   :  { %v886_v24 = vadd.f32 %v884_v63, %v779_v60 }
 0xa36   :  { %3554 = vtanh.f32 %v886_v24 }
 0xa43   :  { %v3555_v3 = vpop.eup %3554 }
 0xa44   :  { %890 = vrot.lane.b32.xlu1 %v3555_v3, %s3830_s14 }
 0xa5c   :  { %v1006_v8 = vpop.permute.xlu1 %1005 }
 0xa5d   :  { %v1008_v54 = vadd.f32 %v1006_v8, %v903_v30 }
 0xa5f   :  { %3556 = vtanh.f32 %v1008_v54 }
 0xa6c   :  { %v3557_v9 = vpop.eup %3556 }
 0xa6d   :  { %1012 = vrot.lane.b32.xlu0 %v3557_v9, %s3830_s14 }
 0xab6   :  { %v891_v14 = vpop.permute.xlu1 %890 }
 0xab7   :  { %v893_v17 = vmul.f32 %v891_v14, %v888_v11 }
 0xab9   :  { %v4213_v19 = vadd.f32 %v894_v10, %v893_v17 }
 0xabb   :  { %897 = vrot.lane.b32.xlu1 %v4213_v19, %s3830_s14 }
 0xadf   :  { %v1013_v23 = vpop.permute.xlu0 %1012 }
 0xae0   :  { %v1015_v26 = vmul.f32 %v1013_v23, %v1010_v21 }
 0xae2   :  { %v4218_v27 = vadd.f32 %v1016_v25, %v1015_v26 }
 0xae4   :  { %1019 = vrot.lane.b32.xlu0 %v4218_v27, %s3830_s14 }
 0xb2d   :  { %v898_v28 = vpop.permute.xlu1 %897 }
 0xb2e   :  { %901 = vst.msk [vmem:[#allocation11 + $0x8] sm:$0xff] %vm116_vm1, %v898_v28  ;;  %3339 = vmatmul.mubr.msk.f32.vlgmr.msra.gmra.mxu0 %vm116_vm1, %v898_v28 }
 0xb2f   :  { %3353 = vmatpush3.msra.mxu0 %v4002_v41  ;;  %3360 = vmatprep.mubr.msk.f32.mxu0 %vm3828_vm0, %v3827_v0 }
 0xb30   :  { %3354 = vmatprep.subr.mxu0 %v3827_v0 }
 0xb31   :  { %3355 = vmatpush3.msra.mxu0 %v4004_v42 }
 0xb32   :  { %3356 = vmatprep.subr.mxu0 %v3827_v0 }
 0xb33   :  { %3357 = vmatpush3.msra.mxu0 %v4010_v43 }
 0xb34   :  { %3358 = vmatprep.subr.mxu0 %v3827_v0 }
 0xb35   :  { %3359 = vmatpush3.msra.mxu0 %v4016_v46 }
 0xb36   :  { %3374 = vmatprep.subr.mxu0 %v3827_v0 }
 0xb56   :  { %v1020_v58 = vpop.permute.xlu0 %1019 }
 0xb57   :  { %3328 = vmatmul.mubr.msk.f32.vlgmr.msra.gmra.mxu1 %vm116_vm1, %v1020_v58 }
 0xb58   :  { %3342 = vmatpush3.msra.mxu1 %v3935_v1  ;;  %3349 = vmatprep.mubr.msk.f32.mxu1 %vm3828_vm0, %v3827_v0 }
 0xb59   :  { %3343 = vmatprep.subr.mxu1 %v3827_v0 }
 0xb5a   :  { %3344 = vmatpush3.msra.mxu1 %v3937_v2 }
 0xb5b   :  { %3345 = vmatprep.subr.mxu1 %v3827_v0 }
 0xb5c   :  { %3346 = vmatpush3.msra.mxu1 %v3941_v4 }
 0xb5d   :  { %3347 = vmatprep.subr.mxu1 %v3827_v0 }
 0xb5e   :  { %3348 = vmatpush3.msra.mxu1 %v3946_v5 }
 0xb5f   :  { %3350 = vmatmul.mubr.msk.f32.vlgmr.msra.gmra.mxu1 %vm116_vm1, %v1020_v58  ;;  %3363 = vmatprep.subr.mxu1 %v3827_v0 }
 0xb60   :  { %3364 = vmatpush3.msra.mxu1 %v3961_v12  ;;  %3371 = vmatprep.mubr.msk.f32.mxu1 %vm3828_vm0, %v3827_v0 }
 0xb61   :  { %3365 = vmatprep.subr.mxu1 %v3827_v0 }
 0xb62   :  { %3366 = vmatpush3.msra.mxu1 %v3963_v13 }
 0xb63   :  { %3367 = vmatprep.subr.mxu1 %v3827_v0 }
 0xb64   :  { %3368 = vmatpush3.msra.mxu1 %v3967_v16 }
 0xb65   :  { %3369 = vmatprep.subr.mxu1 %v3827_v0 }
 0xb66   :  { %3370 = vmatpush3.msra.mxu1 %v3972_v18 }
 0xb67   :  { %3385 = vmatprep.subr.mxu1 %v3827_v0 }
 0xbee   :  { %v1204_v1 = vpop.f32.mrf.mxu0 }
 0xbef   :  { %1216 = vrot.lane.b32.xlu1 %v1204_v1, %s3829_s2  ;;  %v1208_v13 = vsel %vm251_vm2, %v1204_v1, 0.0 }
 0xbf0   :  { %v3340_v2 = vpop.f32.mrf.mxu0 }
 0xc17   :  { %v4257_v4 = vpop.f32.mrf.mxu1 }
 0xc18   :  { %v1093_v5 = vsel %vm251_vm2, %v4257_v4, 0.0  ;;  %v1097_v30 = vmul.f32 %v4257_v4, %v4257_v4 }
 0xc19   :  { %v3329_v12 = vpop.f32.mrf.mxu1  ;;  %1094 = vadd.xlane.f32.xlu1 %v1093_v5 }
 0xc1a   :  { %v1098_v6 = vsel %vm251_vm2, %v1097_v30, 0.0 }
 0xc1d   :  { %1209 = vadd.xlane.f32.xlu1 %v1208_v13 }
 0xc1f   :  { %v4262_v16 = vpop.f32.mrf.mxu1 }
 0xc20   :  { %1338 = vrot.lane.b32.xlu0 %v4262_v16, %s3829_s2  ;;  %v1330_v7 = vsel %vm251_vm2, %v4262_v16, 0.0 }
 0xc21   :  { %v3351_v18 = vpop.f32.mrf.mxu1 }
 0xc2e   :  { %1112 = vrot.lane.b32.xlu1 %v4257_v4, %s3829_s2 }
 0xc52   :  { %1331 = vadd.xlane.f32.xlu1 %v1330_v7 }
 0xc61   :  { %v1217_v52 = vpop.permute.xlu1 %1216 }
 0xc62   :  { %v1219_v29 = vsel %vm116_vm1, %v1217_v52, 0.0 }
 0xc63   :  { %1220 = vadd.xlane.f32.xlu0 %v1219_v29  ;;  %v1259_v29 = vld [vmem:[#allocation2 + $0x18] sm:$0xff] }
 0xc67   :  { %1099 = vadd.xlane.f32.xlu0 %v1098_v6 }
 0xc92   :  { %v1339_v31 = vpop.permute.xlu0 %1338 }
 0xc93   :  { %v1341_v32 = vsel %vm116_vm1, %v1339_v31, 0.0 }
 0xc94   :  { %1342 = vadd.xlane.f32.xlu0 %v1341_v32 }
 0xca2   :  { %v1095_v39 = vpop.xlane.xlu1 %1094 }
 0xca3   :  { %v1096_v15 = vmul.f32 0.015625, %v1095_v39 }
 0xca5   :  { %v1101_v47 = vmul.f32 64.0, %v1096_v15  ;;  %v1106_v8 = vsub.f32 %v4257_v4, %v1096_v15 }
 0xca6   :  { %v1210_v45 = vpop.xlane.xlu1 %1209 }
 0xca7   :  { %v1102_v50 = vmul.f32 %v1101_v47, %v1096_v15  ;;  %v1211_v54 = vmul.f32 0.015625, %v1210_v45 }
 0xca9   :  { %v1212_v14 = vsub.f32 %v1204_v1, %v1211_v54 }
 0xcaa   :  { %1120 = vrot.lane.b32.xlu0 %v1097_v30, %s3829_s2  ;;  %v1113_v40 = vpop.permute.xlu1 %1112 }
 0xcab   :  { %v1115_v49 = vsel %vm116_vm1, %v1113_v40, 0.0  ;;  %v1213_v17 = vmul.f32 %v4062_v59, %v1212_v14 }
 0xcad   :  { %v1214_v23 = vadd.f32 %v4070_v62, %v1213_v17  ;;  %v4348_v17 = vld [vmem:[#allocation10 + $0x10] sm:$0xff] }
 0xcec   :  { %v1221_v33 = vpop.xlane.xlu0 %1220 }
 0xced   :  { %v1222_v34 = vmul.f32 0.03125, %v1221_v33 }
 0xcef   :  { %v1223_v35 = vsub.f32 %v1204_v1, %v1222_v34  ;;  %v1332_v1 = vpop.xlane.xlu1 %1331 }
 0xcf0   :  { %v1100_v48 = vpop.xlane.xlu0 %1099  ;;  %v1333_v13 = vmul.f32 0.015625, %v1332_v1 }
 0xcf1   :  { %v1224_v36 = vmul.f32 %v4062_v59, %v1223_v35  ;;  %v1103_v51 = vsub.f32 %v1100_v48, %v1102_v50 }
 0xcf2   :  { %v1334_v18 = vsub.f32 %v4262_v16, %v1333_v13 }
 0xcf3   :  { %v1225_v38 = vadd.f32 %v4070_v62, %v1224_v36  ;;  %v1104_v61 = vmax.f32 %v1103_v51, 0.0 }
 0xcf4   :  { %v1335_v7 = vmul.f32 %v3978_v20, %v1334_v18 }
 0xcf5   :  { %1234 = vrot.lane.b32.xlu0 %v1225_v38, %s3829_s2  ;;  %v1105_v55 = vmul.f32 0.015873017, %v1104_v61 }
 0xcf6   :  { %v1336_v52 = vadd.f32 %v3986_v22, %v1335_v7 }
 0xcf7   :  { %3558 = vrsqrt.f32 %v1105_v55 }
 0xcf8   :  { %v1348_v30 = vadd.f32 %v1336_v52, %v1259_v29 }
 0xcfa   :  { %v3098_v6 = vmul.f32 -1.442695, %v1348_v30 }
 0xd04   :  { %v3559_v3 = vpop.eup %3558 }
 0xd05   :  { %v1108_v9 = vmul.f32 %v3559_v3, %v1106_v8 }
 0xd07   :  { %v1109_v10 = vmul.f32 %v4097_v37, %v1108_v9 }
 0xd09   :  { %v1110_v21 = vadd.f32 %v4103_v44, %v1109_v10 }
 0xd0b   :  { %v1226_v25 = vadd.f32 %v1214_v23, %v1110_v21  ;;  %v4352_v21 = vld [vmem:[#allocation10 + $0x8] sm:$0xff]  ;;  %v4356_v23 = vld [vmem:[#allocation10] sm:$0xff] }
 0xd0d   :  { %v3096_v26 = vmul.f32 -1.442695, %v1226_v25 }
 0xd0f   :  { %3560 = vpow2.f32 %v3096_v26 }
 0xd14   :  { %1116 = vadd.xlane.f32.xlu0 %v1115_v49 }
 0xd1c   :  { %v3561_v28 = vpop.eup %3560 }
 0xd1d   :  { %v1343_v53 = vpop.xlane.xlu0 %1342  ;;  %v1230_v58 = vadd.f32 1.0, %v3561_v28 }
 0xd1e   :  { %v1344_v60 = vmul.f32 0.03125, %v1343_v53 }
 0xd1f   :  { %3562 = vrcp.f32 %v1230_v58 }
 0xd20   :  { %v1345_v63 = vsub.f32 %v4262_v16, %v1344_v60  ;;  %3564 = vpow2.f32 %v3098_v6 }
 0xd21   :  { %v1121_v56 = vpop.permute.xlu0 %1120 }
 0xd22   :  { %v1123_v57 = vsel %vm116_vm1, %v1121_v56, 0.0  ;;  %v1346_v24 = vmul.f32 %v3978_v20, %v1345_v63 }
 0xd23   :  { %1124 = vadd.xlane.f32.xlu1 %v1123_v57 }
 0xd24   :  { %v1347_v11 = vadd.f32 %v3986_v22, %v1346_v24 }
 0xd2c   :  { %v3563_v2 = vpop.eup %3562 }
 0xd2d   :  { %v3565_v31 = vpop.eup %3564  ;;  %v1244_v60 = vsub.f32 1.0, %v3563_v2 }
 0xd2e   :  { %v1352_v32 = vadd.f32 1.0, %v3565_v31 }
 0xd30   :  { %3566 = vrcp.f32 %v1352_v32 }
 0xd34   :  { %1356 = vrot.lane.b32.xlu1 %v1347_v11, %s3829_s2 }
 0xd3d   :  { %v3567_v36 = vpop.eup %3566 }
 0xd3e   :  { %v1366_v8 = vsub.f32 1.0, %v3567_v36  ;;  %v1372_v9 = vmul.f32 %v3567_v36, %v4218_v27  ;;  %v4342_v27 = vld [vmem:[#allocation10 + $0x18] sm:$0xff] }
 0xd67   :  { %v1235_v5 = vpop.permute.xlu0 %1234 }
 0xd68   :  { %v1237_v12 = vmul.f32 %v3563_v2, %v1235_v5 }
 0xd6a   :  { %1239 = vrot.lane.b32.xlu0 %v1237_v12, %s3829_s2 }
 0xd9d   :  { %v1117_v33 = vpop.xlane.xlu0 %1116 }
 0xd9e   :  { %v1118_v35 = vmul.f32 0.03125, %v1117_v33 }
 0xda0   :  { %v1126_v39 = vmul.f32 32.0, %v1118_v35  ;;  %v1131_v47 = vsub.f32 %v4257_v4, %v1118_v35  ;;  %v1250_v4 = vmul.f32 %v3563_v2, %v4213_v19 }
 0xda2   :  { %v1127_v16 = vmul.f32 %v1126_v39, %v1118_v35 }
 0xdac   :  { %v1125_v34 = vpop.xlane.xlu1 %1124 }
 0xdad   :  { %v1128_v20 = vsub.f32 %v1125_v34, %v1127_v16 }
 0xdaf   :  { %v1129_v15 = vmax.f32 %v1128_v20, 0.0 }
 0xdb0   :  { %v1357_v38 = vpop.permute.xlu1 %1356 }
 0xdb1   :  { %v1359_v45 = vmul.f32 %v3567_v36, %v1357_v38  ;;  %v1130_v22 = vmul.f32 0.032258064, %v1129_v15 }
 0xdb3   :  { %1361 = vrot.lane.b32.xlu1 %v1359_v45, %s3829_s2  ;;  %3568 = vrsqrt.f32 %v1130_v22 }
 0xdc0   :  { %v3569_v40 = vpop.eup %3568 }
 0xdc1   :  { %v1133_v48 = vmul.f32 %v3569_v40, %v1131_v47 }
 0xdc3   :  { %v1134_v49 = vmul.f32 %v4097_v37, %v1133_v48 }
 0xdc5   :  { %v1135_v50 = vadd.f32 %v4103_v44, %v1134_v49 }
 0xddc   :  { %v1240_v51 = vpop.permute.xlu0 %1239 }
 0xddd   :  { %v1242_v61 = vadd.f32 %v1240_v51, %v1135_v50 }
 0xddf   :  { %3570 = vtanh.f32 %v1242_v61 }
 0xdec   :  { %v3571_v53 = vpop.eup %3570 }
 0xded   :  { %1246 = vrot.lane.b32.xlu1 %v3571_v53, %s3830_s14  ;;  %v4389_v53 = vld [vmem:[%s4773_s10] ss:$0 sm:$0xff] }
 0xe25   :  { %v1362_v55 = vpop.permute.xlu1 %1361 }
 0xe26   :  { %v1364_v56 = vadd.f32 %v1362_v55, %v1259_v29 }
 0xe28   :  { %3572 = vtanh.f32 %v1364_v56 }
 0xe35   :  { %v3573_v57 = vpop.eup %3572 }
 0xe36   :  { %1368 = vrot.lane.b32.xlu0 %v3573_v57, %s3830_s14  ;;  %v4396_v57 = vld [vmem:[%s4771_s8] ss:$0 sm:$0xff] }
 0xe5f   :  { %v1247_v63 = vpop.permute.xlu1 %1246 }
 0xe60   :  { %v1249_v24 = vmul.f32 %v1247_v63, %v1244_v60 }
 0xe62   :  { %v4301_v3 = vadd.f32 %v1250_v4, %v1249_v24 }
 0xe64   :  { %1253 = vrot.lane.b32.xlu1 %v4301_v3, %s3830_s14 }
 0xea8   :  { %v1369_v54 = vpop.permute.xlu0 %1368 }
 0xea9   :  { %v1371_v11 = vmul.f32 %v1369_v54, %v1366_v8 }
 0xeab   :  { %v4306_v14 = vadd.f32 %v1372_v9, %v1371_v11 }
 0xead   :  { %1375 = vrot.lane.b32.xlu0 %v4306_v14, %s3830_s14 }
 0xed6   :  { %v1254_v10 = vpop.permute.xlu1 %1253 }
 0xed7   :  { %1257 = vst.msk [vmem:[#allocation11 + $0x10] sm:$0xff] %vm116_vm1, %v1254_v10  ;;  %3372 = vmatmul.mubr.msk.f32.vlgmr.msra.gmra.mxu1 %vm116_vm1, %v1254_v10 }
 0xed8   :  { %3386 = vmatpush3.msra.mxu1 %v4002_v41  ;;  %3393 = vmatprep.mubr.msk.f32.mxu1 %vm3828_vm0, %v3827_v0  ;;  %v4323_v41 = vld [vmem:[#allocation7 + $0x18] sm:$0xff] }
 0xed9   :  { %3387 = vmatprep.subr.mxu1 %v3827_v0 }
 0xeda   :  { %3388 = vmatpush3.msra.mxu1 %v4004_v42  ;;  %v4329_v42 = vld [vmem:[#allocation7 + $0x10] sm:$0xff] }
 0xedb   :  { %3389 = vmatprep.subr.mxu1 %v3827_v0 }
 0xedc   :  { %3390 = vmatpush3.msra.mxu1 %v4010_v43  ;;  %v4333_v43 = vld [vmem:[#allocation7 + $0x8] sm:$0xff] }
 0xedd   :  { %3391 = vmatprep.subr.mxu1 %v3827_v0 }
 0xede   :  { %3392 = vmatpush3.msra.mxu1 %v4016_v46  ;;  %v4337_v46 = vld [vmem:[#allocation7] sm:$0xff] }
 0xedf   :  { %3407 = vmatprep.subr.mxu1 %v3827_v0 }
 0xf1f   :  { %v1376_v19 = vpop.permute.xlu0 %1375 }
 0xf20   :  { %3361 = vmatmul.mubr.msk.f32.vlgmr.msra.gmra.mxu0 %vm116_vm1, %v1376_v19 }
 0xf21   :  { %3375 = vmatpush3.msra.mxu0 %v4323_v41  ;;  %3382 = vmatprep.mubr.msk.f32.mxu0 %vm3828_vm0, %v3827_v0 }
 0xf22   :  { %3376 = vmatprep.subr.mxu0 %v3827_v0 }
 0xf23   :  { %3377 = vmatpush3.msra.mxu0 %v4329_v42 }
 0xf24   :  { %3378 = vmatprep.subr.mxu0 %v3827_v0 }
 0xf25   :  { %3379 = vmatpush3.msra.mxu0 %v4333_v43 }
 0xf26   :  { %3380 = vmatprep.subr.mxu0 %v3827_v0 }
 0xf27   :  { %3381 = vmatpush3.msra.mxu0 %v4337_v46 }
 0xf28   :  { %3383 = vmatmul.mubr.msk.f32.vlgmr.msra.gmra.mxu0 %vm116_vm1, %v1376_v19  ;;  %3396 = vmatprep.subr.mxu0 %v3827_v0 }
 0xf29   :  { %3397 = vmatpush3.msra.mxu0 %v4342_v27  ;;  %3404 = vmatprep.mubr.msk.f32.mxu0 %vm3828_vm0, %v3827_v0 }
 0xf2a   :  { %3398 = vmatprep.subr.mxu0 %v3827_v0 }
 0xf2b   :  { %3399 = vmatpush3.msra.mxu0 %v4348_v17 }
 0xf2c   :  { %3400 = vmatprep.subr.mxu0 %v3827_v0 }
 0xf2d   :  { %3401 = vmatpush3.msra.mxu0 %v4352_v21 }
 0xf2e   :  { %3402 = vmatprep.subr.mxu0 %v3827_v0 }
 0xf2f   :  { %3403 = vmatpush3.msra.mxu0 %v4356_v23 }
 0xf30   :  { %3418 = vmatprep.subr.mxu0 %v3827_v0 }
 0xf97   :  { %v1560_v25 = vpop.f32.mrf.mxu1 }
 0xf98   :  { %1572 = vrot.lane.b32.xlu1 %v1560_v25, %s3829_s2  ;;  %v1564_v5 = vsel %vm251_vm2, %v1560_v25, 0.0 }
 0xf99   :  { %v3373_v26 = vpop.f32.mrf.mxu1 }
 0xfe0   :  { %v4361_v28 = vpop.f32.mrf.mxu0 }
 0xfe1   :  { %v1449_v58 = vsel %vm251_vm2, %v4361_v28, 0.0  ;;  %v1453_v7 = vmul.f32 %v4361_v28, %v4361_v28 }
 0xfe2   :  { %1450 = vadd.xlane.f32.xlu1 %v1449_v58  ;;  %v3362_v2 = vpop.f32.mrf.mxu0 }
 0xfe3   :  { %v1454_v52 = vsel %vm251_vm2, %v1453_v7, 0.0 }
 0xfe6   :  { %1565 = vadd.xlane.f32.xlu1 %v1564_v5 }
 0xfe8   :  { %v4366_v12 = vpop.f32.mrf.mxu0 }
 0xfe9   :  { %1694 = vrot.lane.b32.xlu0 %v4366_v12, %s3829_s2  ;;  %v1686_v29 = vsel %vm251_vm2, %v4366_v12, 0.0 }
 0xfea   :  { %v3384_v1 = vpop.f32.mrf.mxu0 }
0x100a   :  { %v1573_v13 = vpop.permute.xlu1 %1572 }
0x100b   :  { %v1575_v18 = vsel %vm116_vm1, %v1573_v13, 0.0 }
0x100c   :  { %1576 = vadd.xlane.f32.xlu0 %v1575_v18 }
0x1010   :  { %1455 = vadd.xlane.f32.xlu0 %v1454_v52 }
0x1026   :  { %1468 = vrot.lane.b32.xlu0 %v4361_v28, %s3829_s2 }
0x1045   :  { %1687 = vadd.xlane.f32.xlu0 %v1686_v29  ;;  %v1615_v29 = vld [vmem:[#allocation2 + $0x20] sm:$0xff] }
0x105b   :  { %v1695_v30 = vpop.permute.xlu0 %1694 }
0x105c   :  { %v1697_v6 = vsel %vm116_vm1, %v1695_v30, 0.0 }
0x105d   :  { %1698 = vadd.xlane.f32.xlu1 %v1697_v6 }
0x106b   :  { %v1451_v36 = vpop.xlane.xlu1 %1450 }
0x106c   :  { %v1452_v38 = vmul.f32 0.015625, %v1451_v36 }
0x106e   :  { %1476 = vrot.lane.b32.xlu1 %v1453_v7, %s3829_s2  ;;  %v1457_v45 = vmul.f32 64.0, %v1452_v38 }
0x106f   :  { %v1566_v48 = vpop.xlane.xlu1 %1565 }
0x1070   :  { %v1458_v16 = vmul.f32 %v1457_v45, %v1452_v38 }
0x1095   :  { %v1577_v31 = vpop.xlane.xlu0 %1576 }
0x1096   :  { %v1578_v32 = vmul.f32 0.03125, %v1577_v31 }
0x1098   :  { %v1579_v33 = vsub.f32 %v1560_v25, %v1578_v32 }
0x1099   :  { %v1456_v39 = vpop.xlane.xlu0 %1455 }
0x109a   :  { %v1580_v34 = vmul.f32 %v4062_v59, %v1579_v33  ;;  %v1459_v15 = vsub.f32 %v1456_v39, %v1458_v16  ;;  %v1462_v59 = vsub.f32 %v4361_v28, %v1452_v38 }
0x109c   :  { %v1581_v35 = vadd.f32 %v4070_v62, %v1580_v34  ;;  %v1460_v40 = vmax.f32 %v1459_v15, 0.0  ;;  %v1567_v62 = vmul.f32 0.015625, %v1566_v48  ;;  %v4423_v48 = vld [vmem:[%s4772_s9] ss:$0 sm:$0xff] }
0x109d   :  { %v1469_v20 = vpop.permute.xlu0 %1468 }
0x109e   :  { %1590 = vrot.lane.b32.xlu1 %v1581_v35, %s3829_s2  ;;  %v1471_v22 = vsel %vm116_vm1, %v1469_v20, 0.0  ;;  %v1461_v47 = vmul.f32 0.015873017, %v1460_v40  ;;  %v1568_v51 = vsub.f32 %v1560_v25, %v1567_v62  ;;  %v4410_v25 = vld [vmem:[%s4766_s3] ss:$0 sm:$0xff] }
0x10a0   :  { %3574 = vrsqrt.f32 %v1461_v47  ;;  %v1569_v55 = vmul.f32 %v4389_v53, %v1568_v51 }
0x10a2   :  { %v1570_v60 = vadd.f32 %v4396_v57, %v1569_v55 }
0x10ad   :  { %v3575_v49 = vpop.eup %3574 }
0x10ae   :  { %v1464_v50 = vmul.f32 %v3575_v49, %v1462_v59  ;;  %v4429_v59 = vld [vmem:[%s4770_s7] ss:$0 sm:$0xff] }
0x10b0   :  { %v1465_v61 = vmul.f32 %v4097_v37, %v1464_v50 }
0x10b2   :  { %v1466_v56 = vadd.f32 %v4103_v44, %v1465_v61  ;;  %v4404_v44 = vld [vmem:[%s4767_s4] ss:$0 sm:$0xff] }
0x10b4   :  { %v1582_v4 = vadd.f32 %v1570_v60, %v1466_v56 }
0x10b6   :  { %v3101_v37 = vmul.f32 -1.442695, %v1582_v4 }
0x10b8   :  { %3576 = vpow2.f32 %v3101_v37 }
0x10c2   :  { %1472 = vadd.xlane.f32.xlu1 %v1471_v22 }
0x10c5   :  { %v3577_v11 = vpop.eup %3576 }
0x10c6   :  { %v1586_v19 = vadd.f32 1.0, %v3577_v11 }
0x10c8   :  { %3578 = vrcp.f32 %v1586_v19 }
0x10ce   :  { %v1688_v1 = vpop.xlane.xlu0 %1687 }
0x10cf   :  { %v1689_v13 = vmul.f32 0.015625, %v1688_v1 }
0x10d1   :  { %v1690_v18 = vsub.f32 %v4366_v12, %v1689_v13 }
0x10d3   :  { %v1691_v7 = vmul.f32 %v4404_v44, %v1690_v18 }
0x10d5   :  { %v3579_v58 = vpop.eup %3578  ;;  %v1692_v52 = vadd.f32 %v4410_v25, %v1691_v7 }
0x10d6   :  { %v1600_v60 = vsub.f32 1.0, %v3579_v58  ;;  %v1606_v4 = vmul.f32 %v3579_v58, %v4301_v3  ;;  %v4446_v3 = vld [vmem:[#allocation8 + $0x18] sm:$0xff] }
0x10d7   :  { %v1704_v30 = vadd.f32 %v1692_v52, %v1615_v29 }
0x10d9   :  { %v3103_v6 = vmul.f32 -1.442695, %v1704_v30 }
0x10db   :  { %3580 = vpow2.f32 %v3103_v6 }
0x10e6   :  { %v1699_v63 = vpop.xlane.xlu1 %1698 }
0x10e7   :  { %v1700_v54 = vmul.f32 0.03125, %v1699_v63 }
0x10e8   :  { %v3581_v31 = vpop.eup %3580 }
0x10e9   :  { %v1701_v9 = vsub.f32 %v4366_v12, %v1700_v54  ;;  %v1708_v32 = vadd.f32 1.0, %v3581_v31 }
0x10ea   :  { %v1477_v24 = vpop.permute.xlu1 %1476 }
0x10eb   :  { %v1479_v8 = vsel %vm116_vm1, %v1477_v24, 0.0  ;;  %v1702_v10 = vmul.f32 %v4404_v44, %v1701_v9  ;;  %3582 = vrcp.f32 %v1708_v32 }
0x10ec   :  { %1480 = vadd.xlane.f32.xlu0 %v1479_v8 }
0x10ed   :  { %v1703_v26 = vadd.f32 %v4410_v25, %v1702_v10 }
0x10f8   :  { %v3583_v16 = vpop.eup %3582 }
0x10f9   :  { %v1722_v8 = vsub.f32 1.0, %v3583_v16  ;;  %v1728_v9 = vmul.f32 %v3583_v16, %v4306_v14  ;;  %v4452_v14 = vld [vmem:[#allocation8 + $0x10] sm:$0xff] }
0x1102   :  { %1712 = vrot.lane.b32.xlu0 %v1703_v26, %s3829_s2  ;;  %v4456_v26 = vld [vmem:[#allocation8 + $0x8] sm:$0xff] }
0x1110   :  { %v1591_v2 = vpop.permute.xlu1 %1590 }
0x1111   :  { %v1593_v5 = vmul.f32 %v3579_v58, %v1591_v2  ;;  %v4460_v58 = vld [vmem:[#allocation8] sm:$0xff] }
0x1113   :  { %1595 = vrot.lane.b32.xlu1 %v1593_v5, %s3829_s2 }
0x114b   :  { %v1473_v33 = vpop.xlane.xlu1 %1472 }
0x114c   :  { %v1474_v34 = vmul.f32 0.03125, %v1473_v33 }
0x114e   :  { %v1482_v35 = vmul.f32 32.0, %v1474_v34  ;;  %v1487_v22 = vsub.f32 %v4361_v28, %v1474_v34 }
0x1150   :  { %v1483_v36 = vmul.f32 %v1482_v35, %v1474_v34 }
0x1175   :  { %v1481_v38 = vpop.xlane.xlu0 %1480 }
0x1176   :  { %v1484_v39 = vsub.f32 %v1481_v38, %v1483_v36 }
0x1178   :  { %v1485_v45 = vmax.f32 %v1484_v39, 0.0 }
0x1179   :  { %v1713_v12 = vpop.permute.xlu0 %1712 }
0x117a   :  { %v1486_v20 = vmul.f32 0.032258064, %v1485_v45  ;;  %v1715_v15 = vmul.f32 %v3583_v16, %v1713_v12 }
0x117c   :  { %3584 = vrsqrt.f32 %v1486_v20  ;;  %1717 = vrot.lane.b32.xlu0 %v1715_v15, %s3829_s2 }
0x1185   :  { %v1596_v50 = vpop.permute.xlu1 %1595 }
0x1189   :  { %v3585_v40 = vpop.eup %3584 }
0x118a   :  { %v1489_v47 = vmul.f32 %v3585_v40, %v1487_v22 }
0x118c   :  { %v1490_v49 = vmul.f32 %v4423_v48, %v1489_v47 }
0x118e   :  { %v1491_v62 = vadd.f32 %v4429_v59, %v1490_v49 }
0x1190   :  { %v1598_v51 = vadd.f32 %v1596_v50, %v1491_v62 }
0x1192   :  { %3586 = vtanh.f32 %v1598_v51 }
0x119f   :  { %v3587_v28 = vpop.eup %3586 }
0x11a0   :  { %1602 = vrot.lane.b32.xlu1 %v3587_v28, %s3830_s14 }
0x11ee   :  { %v1718_v61 = vpop.permute.xlu0 %1717 }
0x11ef   :  { %v1720_v55 = vadd.f32 %v1718_v61, %v1615_v29 }
0x11f1   :  { %3588 = vtanh.f32 %v1720_v55 }
0x11fe   :  { %v3589_v56 = vpop.eup %3588 }
0x11ff   :  { %1724 = vrot.lane.b32.xlu0 %v3589_v56, %s3830_s14 }
0x1212   :  { %v1603_v63 = vpop.permute.xlu1 %1602 }
0x1213   :  { %v1605_v24 = vmul.f32 %v1603_v63, %v1600_v60 }
0x1215   :  { %v4435_v37 = vadd.f32 %v1606_v4, %v1605_v24 }
0x1217   :  { %1609 = vrot.lane.b32.xlu1 %v4435_v37, %s3830_s14 }
0x1271   :  { %v1725_v54 = vpop.permute.xlu0 %1724 }
0x1272   :  { %v1727_v11 = vmul.f32 %v1725_v54, %v1722_v8 }
0x1274   :  { %v4440_v10 = vadd.f32 %v1728_v9, %v1727_v11 }
0x1276   :  { %1731 = vrot.lane.b32.xlu0 %v4440_v10, %s3830_s14 }
0x1289   :  { %v1610_v19 = vpop.permute.xlu1 %1609 }
0x128a   :  { %1613 = vst.msk [vmem:[#allocation11 + $0x18] sm:$0xff] %vm116_vm1, %v1610_v19  ;;  %3405 = vmatmul.mubr.msk.f32.vlgmr.msra.gmra.mxu0 %vm116_vm1, %v1610_v19 }
0x128b   :  { %3419 = vmatpush3.msra.mxu0 %v4446_v3  ;;  %3426 = vmatprep.mubr.msk.f32.mxu0 %vm3828_vm0, %v3827_v0 }
0x128c   :  { %3420 = vmatprep.subr.mxu0 %v3827_v0 }
0x128d   :  { %3421 = vmatpush3.msra.mxu0 %v4452_v14 }
0x128e   :  { %3422 = vmatprep.subr.mxu0 %v3827_v0 }
0x128f   :  { %3423 = vmatpush3.msra.mxu0 %v4456_v26 }
0x1290   :  { %3424 = vmatprep.subr.mxu0 %v3827_v0 }
0x1291   :  { %3425 = vmatpush3.msra.mxu0 %v4460_v58 }
0x1292   :  { %3440 = vmatprep.subr.mxu0 %v3827_v0 }
0x12e8   :  { %v1732_v2 = vpop.permute.xlu0 %1731 }
0x12e9   :  { %3394 = vmatmul.mubr.msk.f32.vlgmr.msra.gmra.mxu1 %vm116_vm1, %v1732_v2 }
0x12ea   :  { %3408 = vmatpush3.msra.mxu1 %v4323_v41  ;;  %3415 = vmatprep.mubr.msk.f32.mxu1 %vm3828_vm0, %v3827_v0 }
0x12eb   :  { %3409 = vmatprep.subr.mxu1 %v3827_v0 }
0x12ec   :  { %3410 = vmatpush3.msra.mxu1 %v4329_v42 }
0x12ed   :  { %3411 = vmatprep.subr.mxu1 %v3827_v0 }
0x12ee   :  { %3412 = vmatpush3.msra.mxu1 %v4333_v43 }
0x12ef   :  { %3413 = vmatprep.subr.mxu1 %v3827_v0 }
0x12f0   :  { %3414 = vmatpush3.msra.mxu1 %v4337_v46 }
0x12f1   :  { %3416 = vmatmul.mubr.msk.f32.vlgmr.msra.gmra.mxu1 %vm116_vm1, %v1732_v2  ;;  %3429 = vmatprep.subr.mxu1 %v3827_v0 }
0x12f2   :  { %3430 = vmatpush3.msra.mxu1 %v4342_v27  ;;  %3437 = vmatprep.mubr.msk.f32.mxu1 %vm3828_vm0, %v3827_v0 }
0x12f3   :  { %3431 = vmatprep.subr.mxu1 %v3827_v0 }
0x12f4   :  { %3432 = vmatpush3.msra.mxu1 %v4348_v17 }
0x12f5   :  { %3433 = vmatprep.subr.mxu1 %v3827_v0 }
0x12f6   :  { %3434 = vmatpush3.msra.mxu1 %v4352_v21 }
0x12f7   :  { %3435 = vmatprep.subr.mxu1 %v3827_v0 }
0x12f8   :  { %3436 = vmatpush3.msra.mxu1 %v4356_v23 }
0x12f9   :  { %3451 = vmatprep.subr.mxu1 %v3827_v0 }
0x134a   :  { %v1916_v5 = vpop.f32.mrf.mxu0 }
0x134b   :  { %1928 = vrot.lane.b32.xlu1 %v1916_v5, %s3829_s2  ;;  %v1920_v52 = vsel %vm251_vm2, %v1916_v5, 0.0 }
0x134c   :  { %v3406_v1 = vpop.f32.mrf.mxu0 }
0x13a9   :  { %v4487_v13 = vpop.f32.mrf.mxu1 }
0x13aa   :  { %v1805_v18 = vsel %vm251_vm2, %v4487_v13, 0.0  ;;  %v1809_v32 = vmul.f32 %v4487_v13, %v4487_v13 }
0x13ab   :  { %v3395_v7 = vpop.f32.mrf.mxu1  ;;  %1806 = vadd.xlane.f32.xlu1 %v1805_v18 }
0x13ac   :  { %v1810_v33 = vsel %vm251_vm2, %v1809_v32, 0.0 }
0x13af   :  { %1921 = vadd.xlane.f32.xlu1 %v1920_v52 }
0x13b1   :  { %v4492_v29 = vpop.f32.mrf.mxu1 }
0x13b2   :  { %v2042_v34 = vsel %vm251_vm2, %v4492_v29, 0.0 }
0x13b3   :  { %v3417_v30 = vpop.f32.mrf.mxu1 }
0x13bd   :  { %v1929_v6 = vpop.permute.xlu1 %1928 }
0x13be   :  { %v1931_v31 = vsel %vm116_vm1, %v1929_v6, 0.0 }
0x13bf   :  { %1932 = vadd.xlane.f32.xlu0 %v1931_v31 }
0x13c0   :  { %1832 = vrot.lane.b32.xlu1 %v1809_v32, %s3829_s2 }
0x13d5   :  { %2050 = vrot.lane.b32.xlu0 %v4492_v29, %s3829_s2 }
0x13f4   :  { %1811 = vadd.xlane.f32.xlu0 %v1810_v33 }
0x140a   :  { %1824 = vrot.lane.b32.xlu0 %v4487_v13, %s3829_s2 }
0x1429   :  { %2043 = vadd.xlane.f32.xlu0 %v2042_v34 }
0x1434   :  { %v1807_v20 = vpop.xlane.xlu1 %1806 }
0x1435   :  { %v1808_v15 = vmul.f32 0.015625, %v1807_v20 }
0x1437   :  { %v1813_v22 = vmul.f32 64.0, %v1808_v15  ;;  %v1818_v63 = vsub.f32 %v4487_v13, %v1808_v15 }
0x1438   :  { %v1922_v47 = vpop.xlane.xlu1 %1921 }
0x1439   :  { %v1814_v40 = vmul.f32 %v1813_v22, %v1808_v15  ;;  %v1923_v60 = vmul.f32 0.015625, %v1922_v47 }
0x143b   :  { %v1924_v4 = vsub.f32 %v1916_v5, %v1923_v60 }
0x143c   :  { %v1833_v55 = vpop.permute.xlu1 %1832 }
0x143d   :  { %v1835_v56 = vsel %vm116_vm1, %v1833_v55, 0.0  ;;  %v1925_v54 = vmul.f32 %v4389_v53, %v1924_v4 }
0x143f   :  { %v1926_v19 = vadd.f32 %v4396_v57, %v1925_v54 }
0x1448   :  { %v1933_v35 = vpop.xlane.xlu0 %1932 }
0x1449   :  { %v1934_v36 = vmul.f32 0.03125, %v1933_v35 }
0x144b   :  { %v1935_v38 = vsub.f32 %v1916_v5, %v1934_v36 }
0x144c   :  { %v2051_v39 = vpop.permute.xlu0 %2050 }
0x144d   :  { %v1936_v45 = vmul.f32 %v4389_v53, %v1935_v38  ;;  %v2053_v16 = vsel %vm116_vm1, %v2051_v39, 0.0 }
0x144e   :  { %2054 = vadd.xlane.f32.xlu1 %v2053_v16 }
0x144f   :  { %v1937_v12 = vadd.f32 %v4396_v57, %v1936_v45 }
0x1451   :  { %1946 = vrot.lane.b32.xlu0 %v1937_v12, %s3829_s2 }
0x147d   :  { %v1812_v49 = vpop.xlane.xlu0 %1811 }
0x147e   :  { %v1815_v62 = vsub.f32 %v1812_v49, %v1814_v40 }
0x1480   :  { %v1816_v50 = vmax.f32 %v1815_v62, 0.0  ;;  %v1971_v62 = vld [vmem:[#allocation2 + $0x28] sm:$0xff] }
0x1481   :  { %v1825_v51 = vpop.permute.xlu0 %1824 }
0x1482   :  { %v1817_v28 = vmul.f32 0.015873017, %v1816_v50  ;;  %v1827_v61 = vsel %vm116_vm1, %v1825_v51, 0.0 }
0x1483   :  { %1828 = vadd.xlane.f32.xlu1 %v1827_v61 }
0x1484   :  { %3590 = vrsqrt.f32 %v1817_v28 }
0x1487   :  { %1836 = vadd.xlane.f32.xlu1 %v1835_v56 }
0x1491   :  { %v3591_v24 = vpop.eup %3590 }
0x1492   :  { %v1820_v8 = vmul.f32 %v3591_v24, %v1818_v63 }
0x1494   :  { %v1821_v9 = vmul.f32 %v4423_v48, %v1820_v8 }
0x1496   :  { %v1822_v11 = vadd.f32 %v4429_v59, %v1821_v9 }
0x1498   :  { %v1938_v2 = vadd.f32 %v1926_v19, %v1822_v11 }
0x149a   :  { %v3106_v1 = vmul.f32 -1.442695, %v1938_v2 }
0x149c   :  { %3592 = vpow2.f32 %v3106_v1 }
0x14a9   :  { %v3593_v18 = vpop.eup %3592 }
0x14aa   :  { %v1942_v7 = vadd.f32 1.0, %v3593_v18 }
0x14ac   :  { %3594 = vrcp.f32 %v1942_v7 }
0x14b2   :  { %v2044_v52 = vpop.xlane.xlu0 %2043 }
0x14b3   :  { %v2045_v15 = vmul.f32 0.015625, %v2044_v52 }
0x14b5   :  { %v2046_v40 = vsub.f32 %v4492_v29, %v2045_v15 }
0x14b7   :  { %v2047_v47 = vmul.f32 %v4404_v44, %v2046_v40 }
0x14b9   :  { %v3595_v30 = vpop.eup %3594  ;;  %v2048_v49 = vadd.f32 %v4410_v25, %v2047_v47 }
0x14ba   :  { %v1962_v2 = vmul.f32 %v3595_v30, %v4435_v37 }
0x14bb   :  { %v2060_v50 = vadd.f32 %v2048_v49, %v1971_v62 }
0x14bd   :  { %v3108_v28 = vmul.f32 -1.442695, %v2060_v50 }
0x14c3   :  { %v1947_v6 = vpop.permute.xlu0 %1946 }
0x14c4   :  { %v1949_v5 = vmul.f32 %v3595_v30, %v1947_v6 }
0x14c6   :  { %1951 = vrot.lane.b32.xlu0 %v1949_v5, %s3829_s2 }
0x14d7   :  { %v2055_v31 = vpop.xlane.xlu1 %2054 }
0x14d8   :  { %v2056_v32 = vmul.f32 0.03125, %v2055_v31 }
0x14da   :  { %v2057_v33 = vsub.f32 %v4492_v29, %v2056_v32 }
0x14dc   :  { %v2058_v34 = vmul.f32 %v4404_v44, %v2057_v33 }
0x14de   :  { %v2059_v35 = vadd.f32 %v4410_v25, %v2058_v34 }
0x14e0   :  { %2068 = vrot.lane.b32.xlu1 %v2059_v35, %s3829_s2 }
0x150c   :  { %v1829_v36 = vpop.xlane.xlu1 %1828 }
0x150d   :  { %v1830_v38 = vmul.f32 0.03125, %v1829_v36 }
0x150f   :  { %v1838_v39 = vmul.f32 32.0, %v1830_v38  ;;  %v1843_v61 = vsub.f32 %v4487_v13, %v1830_v38  ;;  %v1956_v13 = vsub.f32 1.0, %v3595_v30 }
0x1510   :  { %v1837_v16 = vpop.xlane.xlu1 %1836 }
0x1511   :  { %v1839_v45 = vmul.f32 %v1838_v39, %v1830_v38 }
0x1513   :  { %v1840_v12 = vsub.f32 %v1837_v16, %v1839_v45 }
0x1515   :  { %v1841_v20 = vmax.f32 %v1840_v12, 0.0 }
0x1517   :  { %v1842_v22 = vmul.f32 0.032258064, %v1841_v20 }
0x1519   :  { %3596 = vrsqrt.f32 %v1842_v22 }
0x151a   :  { %3598 = vpow2.f32 %v3108_v28 }
0x1526   :  { %v3597_v51 = vpop.eup %3596 }
0x1527   :  { %v1845_v55 = vmul.f32 %v3597_v51, %v1843_v61  ;;  %v3599_v29 = vpop.eup %3598 }
0x1528   :  { %v2064_v24 = vadd.f32 1.0, %v3599_v29 }
0x1529   :  { %v1846_v56 = vmul.f32 %v4423_v48, %v1845_v55 }
0x152b   :  { %v1847_v60 = vadd.f32 %v4429_v59, %v1846_v56 }
0x1538   :  { %v1952_v63 = vpop.permute.xlu0 %1951 }
0x1539   :  { %v1954_v4 = vadd.f32 %v1952_v63, %v1847_v60 }
0x153b   :  { %3600 = vtanh.f32 %v1954_v4 }
0x153c   :  { %3602 = vrcp.f32 %v2064_v24 }
0x1548   :  { %v3601_v8 = vpop.eup %3600 }
0x1549   :  { %1958 = vrot.lane.b32.xlu1 %v3601_v8, %s3830_s14  ;;  %v3603_v54 = vpop.eup %3602 }
0x154a   :  { %v2078_v37 = vsub.f32 1.0, %v3603_v54  ;;  %v2084_v31 = vmul.f32 %v3603_v54, %v4440_v10 }
0x1552   :  { %v2069_v9 = vpop.permute.xlu1 %2068 }
0x1553   :  { %v2071_v11 = vmul.f32 %v3603_v54, %v2069_v9 }
0x1555   :  { %2073 = vrot.lane.b32.xlu0 %v2071_v11, %s3829_s2 }
0x15bb   :  { %v1959_v19 = vpop.permute.xlu1 %1958 }
0x15bc   :  { %v1961_v1 = vmul.f32 %v1959_v19, %v1956_v13 }
0x15be   :  { %v4530_v18 = vadd.f32 %v1962_v2, %v1961_v1 }
0x15c0   :  { %1965 = vrot.lane.b32.xlu1 %v4530_v18, %s3830_s14 }
0x15c7   :  { %v2074_v7 = vpop.permute.xlu0 %2073 }
0x15c8   :  { %v2076_v52 = vadd.f32 %v2074_v7, %v1971_v62 }
0x15ca   :  { %3604 = vtanh.f32 %v2076_v52 }
0x15d7   :  { %v3605_v6 = vpop.eup %3604 }
0x15d8   :  { %2080 = vrot.lane.b32.xlu0 %v3605_v6, %s3830_s14 }
0x1632   :  { %v1966_v5 = vpop.permute.xlu1 %1965 }
0x1633   :  { %1969 = vst.msk [vmem:[#allocation11 + $0x20] sm:$0xff] %vm116_vm1, %v1966_v5  ;;  %3438 = vmatmul.mubr.msk.f32.vlgmr.msra.gmra.mxu1 %vm116_vm1, %v1966_v5 }
0x1634   :  { %3452 = vmatpush3.msra.mxu1 %v4446_v3  ;;  %3459 = vmatprep.mubr.msk.f32.mxu1 %vm3828_vm0, %v3827_v0 }
0x1635   :  { %3453 = vmatprep.subr.mxu1 %v3827_v0 }
0x1636   :  { %3454 = vmatpush3.msra.mxu1 %v4452_v14 }
0x1637   :  { %3455 = vmatprep.subr.mxu1 %v3827_v0 }
0x1638   :  { %3456 = vmatpush3.msra.mxu1 %v4456_v26 }
0x1639   :  { %3457 = vmatprep.subr.mxu1 %v3827_v0 }
0x163a   :  { %3458 = vmatpush3.msra.mxu1 %v4460_v58 }
0x163b   :  { %3473 = vmatprep.subr.mxu1 %v3827_v0 }
0x164a   :  { %v2081_v30 = vpop.permute.xlu0 %2080 }
0x164b   :  { %v2083_v32 = vmul.f32 %v2081_v30, %v2078_v37 }
0x164d   :  { %v4548_v33 = vadd.f32 %v2084_v31, %v2083_v32 }
0x164f   :  { %2087 = vrot.lane.b32.xlu0 %v4548_v33, %s3830_s14 }
0x16c1   :  { %v2088_v34 = vpop.permute.xlu0 %2087 }
0x16c2   :  { %3427 = vmatmul.mubr.msk.f32.vlgmr.msra.gmra.mxu0 %vm116_vm1, %v2088_v34 }
0x16c3   :  { %3441 = vmatpush3.msra.mxu0 %v4323_v41  ;;  %3448 = vmatprep.mubr.msk.f32.mxu0 %vm3828_vm0, %v3827_v0 }
0x16c4   :  { %3442 = vmatprep.subr.mxu0 %v3827_v0 }
0x16c5   :  { %3443 = vmatpush3.msra.mxu0 %v4329_v42 }
0x16c6   :  { %3444 = vmatprep.subr.mxu0 %v3827_v0 }
0x16c7   :  { %3445 = vmatpush3.msra.mxu0 %v4333_v43 }
0x16c8   :  { %3446 = vmatprep.subr.mxu0 %v3827_v0 }
0x16c9   :  { %3447 = vmatpush3.msra.mxu0 %v4337_v46 }
0x16ca   :  { %3449 = vmatmul.mubr.msk.f32.vlgmr.msra.gmra.mxu0 %vm116_vm1, %v2088_v34  ;;  %3462 = vmatprep.subr.mxu0 %v3827_v0 }
0x16cb   :  { %3463 = vmatpush3.msra.mxu0 %v4342_v27  ;;  %3470 = vmatprep.mubr.msk.f32.mxu0 %vm3828_vm0, %v3827_v0 }
0x16cc   :  { %3464 = vmatprep.subr.mxu0 %v3827_v0 }
0x16cd   :  { %3465 = vmatpush3.msra.mxu0 %v4348_v17 }
0x16ce   :  { %3466 = vmatprep.subr.mxu0 %v3827_v0 }
0x16cf   :  { %3467 = vmatpush3.msra.mxu0 %v4352_v21 }
0x16d0   :  { %3468 = vmatprep.subr.mxu0 %v3827_v0 }
0x16d1   :  { %3469 = vmatpush3.msra.mxu0 %v4356_v23 }
0x16d2   :  { %3484 = vmatprep.subr.mxu0 %v3827_v0 }
0x16f3   :  { %v2272_v10 = vpop.f32.mrf.mxu1 }
0x16f4   :  { %2284 = vrot.lane.b32.xlu1 %v2272_v10, %s3829_s2  ;;  %v2276_v12 = vsel %vm251_vm2, %v2272_v10, 0.0 }
0x16f5   :  { %v3439_v35 = vpop.f32.mrf.mxu1 }
0x1766   :  { %v2285_v36 = vpop.permute.xlu1 %2284 }
0x1767   :  { %v2287_v38 = vsel %vm116_vm1, %v2285_v36, 0.0 }
0x1768   :  { %2288 = vadd.xlane.f32.xlu0 %v2287_v38 }
0x1782   :  { %v4576_v39 = vpop.f32.mrf.mxu0 }
0x1783   :  { %v2161_v45 = vsel %vm251_vm2, %v4576_v39, 0.0  ;;  %v2165_v22 = vmul.f32 %v4576_v39, %v4576_v39 }
0x1784   :  { %2162 = vadd.xlane.f32.xlu1 %v2161_v45  ;;  %v3428_v16 = vpop.f32.mrf.mxu0 }
0x1785   :  { %v2166_v40 = vsel %vm251_vm2, %v2165_v22, 0.0 }
0x1788   :  { %2277 = vadd.xlane.f32.xlu1 %v2276_v12 }
0x178a   :  { %v4581_v20 = vpop.f32.mrf.mxu0 }
0x178b   :  { %2406 = vrot.lane.b32.xlu0 %v4581_v20, %s3829_s2  ;;  %v2398_v47 = vsel %vm251_vm2, %v4581_v20, 0.0 }
0x178c   :  { %v3450_v15 = vpop.f32.mrf.mxu0 }
0x1799   :  { %2188 = vrot.lane.b32.xlu1 %v2165_v22, %s3829_s2 }
0x17aa   :  { %2167 = vadd.xlane.f32.xlu0 %v2166_v40 }
0x17c0   :  { %2180 = vrot.lane.b32.xlu0 %v4576_v39, %s3829_s2 }
0x17df   :  { %2399 = vadd.xlane.f32.xlu0 %v2398_v47 }
0x17f1   :  { %v2289_v49 = vpop.xlane.xlu0 %2288 }
0x17f2   :  { %v2290_v62 = vmul.f32 0.03125, %v2289_v49 }
0x17f4   :  { %v2291_v50 = vsub.f32 %v2272_v10, %v2290_v62 }
0x17f6   :  { %v2292_v51 = vmul.f32 %v4389_v53, %v2291_v50 }
0x17f8   :  { %v2293_v28 = vadd.f32 %v4396_v57, %v2292_v51 }
0x17fa   :  { %2302 = vrot.lane.b32.xlu0 %v2293_v28, %s3829_s2 }
0x17fd   :  { %v2407_v61 = vpop.permute.xlu0 %2406 }
0x17fe   :  { %v2409_v55 = vsel %vm116_vm1, %v2407_v61, 0.0 }
0x17ff   :  { %2410 = vadd.xlane.f32.xlu1 %v2409_v55 }
0x180d   :  { %v2163_v56 = vpop.xlane.xlu1 %2162 }
0x180e   :  { %v2164_v60 = vmul.f32 0.015625, %v2163_v56 }
0x1810   :  { %v2169_v63 = vmul.f32 64.0, %v2164_v60  ;;  %v2174_v52 = vsub.f32 %v4576_v39, %v2164_v60 }
0x1811   :  { %v2278_v29 = vpop.xlane.xlu1 %2277 }
0x1812   :  { %v2170_v4 = vmul.f32 %v2169_v63, %v2164_v60  ;;  %v2279_v1 = vmul.f32 0.015625, %v2278_v29 }
0x1814   :  { %v2280_v7 = vsub.f32 %v2272_v10, %v2279_v1 }
0x1815   :  { %v2189_v19 = vpop.permute.xlu1 %2188 }
0x1816   :  { %v2191_v2 = vsel %vm116_vm1, %v2189_v19, 0.0  ;;  %v2281_v5 = vmul.f32 %v4389_v53, %v2280_v7 }
0x1818   :  { %v2282_v31 = vadd.f32 %v4396_v57, %v2281_v5 }
0x1833   :  { %v2168_v24 = vpop.xlane.xlu0 %2167 }
0x1834   :  { %v2171_v8 = vsub.f32 %v2168_v24, %v2170_v4 }
0x1836   :  { %v2172_v54 = vmax.f32 %v2171_v8, 0.0  ;;  %v2327_v8 = vld [vmem:[#allocation2 + $0x30] sm:$0xff] }
0x1837   :  { %v2181_v9 = vpop.permute.xlu0 %2180 }
0x1838   :  { %v2173_v11 = vmul.f32 0.015873017, %v2172_v54  ;;  %v2183_v13 = vsel %vm116_vm1, %v2181_v9, 0.0 }
0x1839   :  { %2184 = vadd.xlane.f32.xlu1 %v2183_v13 }
0x183a   :  { %3606 = vrsqrt.f32 %v2173_v11 }
0x183d   :  { %2192 = vadd.xlane.f32.xlu1 %v2191_v2 }
0x1847   :  { %v3607_v6 = vpop.eup %3606 }
0x1848   :  { %v2176_v37 = vmul.f32 %v3607_v6, %v2174_v52 }
0x184a   :  { %v2177_v30 = vmul.f32 %v4423_v48, %v2176_v37 }
0x184c   :  { %v2178_v32 = vadd.f32 %v4429_v59, %v2177_v30 }
0x184e   :  { %v2294_v34 = vadd.f32 %v2282_v31, %v2178_v32 }
0x1850   :  { %v3111_v35 = vmul.f32 -1.442695, %v2294_v34 }
0x1852   :  { %3608 = vpow2.f32 %v3111_v35 }
0x185f   :  { %v3609_v36 = vpop.eup %3608 }
0x1860   :  { %v2298_v38 = vadd.f32 1.0, %v3609_v36 }
0x1862   :  { %3610 = vrcp.f32 %v2298_v38 }
0x1868   :  { %v2400_v45 = vpop.xlane.xlu0 %2399 }
0x1869   :  { %v2401_v56 = vmul.f32 0.015625, %v2400_v45 }
0x186b   :  { %v2402_v4 = vsub.f32 %v4581_v20, %v2401_v56 }
0x186c   :  { %v2303_v16 = vpop.permute.xlu0 %2302 }
0x186d   :  { %v2403_v29 = vmul.f32 %v4404_v44, %v2402_v4 }
0x186f   :  { %v3611_v10 = vpop.eup %3610  ;;  %v2404_v24 = vadd.f32 %v4410_v25, %v2403_v29 }
0x1870   :  { %v2305_v12 = vmul.f32 %v3611_v10, %v2303_v16  ;;  %v2312_v31 = vsub.f32 1.0, %v3611_v10  ;;  %v2318_v34 = vmul.f32 %v3611_v10, %v4530_v18 }
0x1871   :  { %v2416_v54 = vadd.f32 %v2404_v24, %v2327_v8 }
0x1872   :  { %2307 = vrot.lane.b32.xlu0 %v2305_v12, %s3829_s2 }
0x1873   :  { %v3113_v19 = vmul.f32 -1.442695, %v2416_v54 }
0x1888   :  { %v2411_v15 = vpop.xlane.xlu1 %2410 }
0x1889   :  { %v2412_v22 = vmul.f32 0.03125, %v2411_v15 }
0x188b   :  { %v2413_v40 = vsub.f32 %v4581_v20, %v2412_v22 }
0x188d   :  { %v2414_v47 = vmul.f32 %v4404_v44, %v2413_v40 }
0x188f   :  { %v2415_v49 = vadd.f32 %v4410_v25, %v2414_v47 }
0x1891   :  { %2424 = vrot.lane.b32.xlu1 %v2415_v49, %s3829_s2 }
0x18c2   :  { %v2185_v62 = vpop.xlane.xlu1 %2184 }
0x18c3   :  { %v2186_v50 = vmul.f32 0.03125, %v2185_v62 }
0x18c5   :  { %v2194_v51 = vmul.f32 32.0, %v2186_v50  ;;  %v2199_v9 = vsub.f32 %v4576_v39, %v2186_v50 }
0x18c6   :  { %v2193_v61 = vpop.xlane.xlu1 %2192 }
0x18c7   :  { %v2195_v28 = vmul.f32 %v2194_v51, %v2186_v50 }
0x18c9   :  { %v2196_v55 = vsub.f32 %v2193_v61, %v2195_v28 }
0x18cb   :  { %v2197_v60 = vmax.f32 %v2196_v55, 0.0 }
0x18cd   :  { %v2198_v63 = vmul.f32 0.032258064, %v2197_v60 }
0x18cf   :  { %3612 = vrsqrt.f32 %v2198_v63 }
0x18d0   :  { %3614 = vpow2.f32 %v3113_v19 }
0x18dc   :  { %v3613_v11 = vpop.eup %3612 }
0x18dd   :  { %v2201_v13 = vmul.f32 %v3613_v11, %v2199_v9  ;;  %v3615_v20 = vpop.eup %3614 }
0x18de   :  { %v2420_v6 = vadd.f32 1.0, %v3615_v20 }
0x18df   :  { %v2202_v2 = vmul.f32 %v4423_v48, %v2201_v13 }
0x18e1   :  { %v2203_v1 = vadd.f32 %v4429_v59, %v2202_v2 }
0x18e4   :  { %v2308_v7 = vpop.permute.xlu0 %2307 }
0x18e5   :  { %v2310_v52 = vadd.f32 %v2308_v7, %v2203_v1 }
0x18e7   :  { %3616 = vtanh.f32 %v2310_v52 }
0x18e8   :  { %3618 = vrcp.f32 %v2420_v6 }
0x18f4   :  { %v3617_v5 = vpop.eup %3616 }
0x18f5   :  { %2314 = vrot.lane.b32.xlu1 %v3617_v5, %s3830_s14  ;;  %v3619_v37 = vpop.eup %3618 }
0x18f6   :  { %v2434_v18 = vsub.f32 1.0, %v3619_v37  ;;  %v2440_v15 = vmul.f32 %v3619_v37, %v4548_v33 }
0x1903   :  { %v2425_v30 = vpop.permute.xlu1 %2424 }
0x1904   :  { %v2427_v39 = vmul.f32 %v3619_v37, %v2425_v30 }
0x1906   :  { %2429 = vrot.lane.b32.xlu0 %v2427_v39, %s3829_s2 }
0x1967   :  { %v2315_v32 = vpop.permute.xlu1 %2314 }
0x1968   :  { %v2317_v35 = vmul.f32 %v2315_v32, %v2312_v31 }
0x196a   :  { %v4618_v36 = vadd.f32 %v2318_v34, %v2317_v35 }
0x196c   :  { %2321 = vrot.lane.b32.xlu1 %v4618_v36, %s3830_s14 }
0x1978   :  { %v2430_v38 = vpop.permute.xlu0 %2429 }
0x1979   :  { %v2432_v45 = vadd.f32 %v2430_v38, %v2327_v8 }
0x197b   :  { %3620 = vtanh.f32 %v2432_v45 }
0x1988   :  { %v3621_v16 = vpop.eup %3620 }
0x1989   :  { %2436 = vrot.lane.b32.xlu0 %v3621_v16, %s3830_s14 }
0x19de   :  { %v2322_v12 = vpop.permute.xlu1 %2321 }
0x19df   :  { %2325 = vst.msk [vmem:[#allocation11 + $0x28] sm:$0xff] %vm116_vm1, %v2322_v12  ;;  %3471 = vmatmul.mubr.msk.f32.vlgmr.msra.gmra.mxu0 %vm116_vm1, %v2322_v12 }
0x19e0   :  { %3485 = vmatpush3.msra.mxu0 %v4446_v3  ;;  %3492 = vmatprep.mubr.msk.f32.mxu0 %vm3828_vm0, %v3827_v0 }
0x19e1   :  { %3486 = vmatprep.subr.mxu0 %v3827_v0 }
0x19e2   :  { %3487 = vmatpush3.msra.mxu0 %v4452_v14 }
0x19e3   :  { %3488 = vmatprep.subr.mxu0 %v3827_v0 }
0x19e4   :  { %3489 = vmatpush3.msra.mxu0 %v4456_v26 }
0x19e5   :  { %3490 = vmatprep.subr.mxu0 %v3827_v0 }
0x19e6   :  { %3491 = vmatpush3.msra.mxu0 %v4460_v58 }
0x19fb   :  { %v2437_v10 = vpop.permute.xlu0 %2436 }
0x19fc   :  { %v2439_v3 = vmul.f32 %v2437_v10, %v2434_v18 }
0x19fe   :  { %v4635_v22 = vadd.f32 %v2440_v15, %v2439_v3 }
0x1a00   :  { %2443 = vrot.lane.b32.xlu0 %v4635_v22, %s3830_s14 }
0x1a72   :  { %v2444_v40 = vpop.permute.xlu0 %2443 }
0x1a73   :  { %3460 = vmatmul.mubr.msk.f32.vlgmr.msra.gmra.mxu1 %vm116_vm1, %v2444_v40 }
0x1a74   :  { %3474 = vmatpush3.msra.mxu1 %v4323_v41  ;;  %3481 = vmatprep.mubr.msk.f32.mxu1 %vm3828_vm0, %v3827_v0 }
0x1a75   :  { %3475 = vmatprep.subr.mxu1 %v3827_v0 }
0x1a76   :  { %3476 = vmatpush3.msra.mxu1 %v4329_v42 }
0x1a77   :  { %3477 = vmatprep.subr.mxu1 %v3827_v0 }
0x1a78   :  { %3478 = vmatpush3.msra.mxu1 %v4333_v43 }
0x1a79   :  { %3479 = vmatprep.subr.mxu1 %v3827_v0 }
0x1a7a   :  { %3480 = vmatpush3.msra.mxu1 %v4337_v46 }
0x1a7b   :  { %3482 = vmatmul.mubr.msk.f32.vlgmr.msra.gmra.mxu1 %vm116_vm1, %v2444_v40  ;;  %3495 = vmatprep.subr.mxu1 %v3827_v0 }
0x1a7c   :  { %3496 = vmatpush3.msra.mxu1 %v4342_v27  ;;  %3503 = vmatprep.mubr.msk.f32.mxu1 %vm3828_vm0, %v3827_v0 }
0x1a7d   :  { %3497 = vmatprep.subr.mxu1 %v3827_v0 }
0x1a7e   :  { %3498 = vmatpush3.msra.mxu1 %v4348_v17 }
0x1a7f   :  { %3499 = vmatprep.subr.mxu1 %v3827_v0 }
0x1a80   :  { %3500 = vmatpush3.msra.mxu1 %v4352_v21 }
0x1a81   :  { %3501 = vmatprep.subr.mxu1 %v3827_v0 }
0x1a82   :  { %3502 = vmatpush3.msra.mxu1 %v4356_v23 }
0x1a9f   :  { %v2628_v41 = vpop.f32.mrf.mxu0 }
0x1aa0   :  { %2640 = vrot.lane.b32.xlu1 %v2628_v41, %s3829_s2  ;;  %v2632_v21 = vsel %vm251_vm2, %v2628_v41, 0.0 }
0x1aa1   :  { %v3472_v42 = vpop.f32.mrf.mxu0 }
0x1b12   :  { %v2641_v43 = vpop.permute.xlu1 %2640 }
0x1b13   :  { %v2643_v46 = vsel %vm116_vm1, %v2641_v43, 0.0 }
0x1b14   :  { %2644 = vadd.xlane.f32.xlu0 %v2643_v46 }
0x1b33   :  { %v4662_v27 = vpop.f32.mrf.mxu1 }
0x1b34   :  { %v2517_v17 = vsel %vm251_vm2, %v4662_v27, 0.0  ;;  %v2521_v26 = vmul.f32 %v4662_v27, %v4662_v27 }
0x1b35   :  { %v3461_v14 = vpop.f32.mrf.mxu1  ;;  %2518 = vadd.xlane.f32.xlu1 %v2517_v17 }
0x1b36   :  { %v2522_v58 = vsel %vm251_vm2, %v2521_v26, 0.0 }
0x1b39   :  { %2633 = vadd.xlane.f32.xlu1 %v2632_v21 }
0x1b3b   :  { %v4667_v0 = vpop.f32.mrf.mxu1 }
0x1b3c   :  { %2762 = vrot.lane.b32.xlu0 %v4667_v0, %s3829_s2  ;;  %v2754_v56 = vsel %vm251_vm2, %v4667_v0, 0.0 }
0x1b3d   :  { %v3483_v23 = vpop.f32.mrf.mxu1 }
0x1b4a   :  { %2544 = vrot.lane.b32.xlu1 %v2521_v26, %s3829_s2  ;;  %v2683_v26 = vld [vmem:[#allocation2 + $0x38] sm:$0xff] }
0x1b5b   :  { %2523 = vadd.xlane.f32.xlu0 %v2522_v58 }
0x1b71   :  { %2536 = vrot.lane.b32.xlu0 %v4662_v27, %s3829_s2 }
0x1b9d   :  { %v2645_v33 = vpop.xlane.xlu0 %2644 }
0x1b9e   :  { %v2646_v47 = vmul.f32 0.03125, %v2645_v33 }
0x1ba0   :  { %v2647_v49 = vsub.f32 %v2628_v41, %v2646_v47 }
0x1ba2   :  { %v2648_v62 = vmul.f32 %v4389_v53, %v2647_v49 }
0x1ba4   :  { %v2649_v50 = vadd.f32 %v4396_v57, %v2648_v62 }
0x1ba6   :  { %2658 = vrot.lane.b32.xlu0 %v2649_v50, %s3829_s2 }
0x1bae   :  { %v2763_v51 = vpop.permute.xlu0 %2762 }
0x1baf   :  { %v2765_v28 = vsel %vm116_vm1, %v2763_v51, 0.0 }
0x1bb0   :  { %2766 = vadd.xlane.f32.xlu1 %v2765_v28 }
0x1bbe   :  { %v2519_v61 = vpop.xlane.xlu1 %2518 }
0x1bbf   :  { %v2520_v4 = vmul.f32 0.015625, %v2519_v61 }
0x1bc1   :  { %v2525_v29 = vmul.f32 64.0, %v2520_v4  ;;  %v2530_v7 = vsub.f32 %v4662_v27, %v2520_v4 }
0x1bc2   :  { %v2634_v55 = vpop.xlane.xlu1 %2633 }
0x1bc3   :  { %v2526_v24 = vmul.f32 %v2525_v29, %v2520_v4  ;;  %v2635_v2 = vmul.f32 0.015625, %v2634_v55 }
0x1bc5   :  { %2755 = vadd.xlane.f32.xlu0 %v2754_v56  ;;  %v2636_v1 = vsub.f32 %v2628_v41, %v2635_v2 }
0x1bc6   :  { %v2545_v60 = vpop.permute.xlu1 %2544 }
0x1bc7   :  { %v2547_v63 = vsel %vm116_vm1, %v2545_v60, 0.0  ;;  %v2637_v20 = vmul.f32 %v4389_v53, %v2636_v1 }
0x1bc9   :  { %2548 = vadd.xlane.f32.xlu0 %v2547_v63  ;;  %v2638_v37 = vadd.f32 %v4396_v57, %v2637_v20 }
0x1be4   :  { %v2524_v8 = vpop.xlane.xlu0 %2523 }
0x1be5   :  { %v2527_v54 = vsub.f32 %v2524_v8, %v2526_v24 }
0x1be7   :  { %v2528_v9 = vmax.f32 %v2527_v54, 0.0 }
0x1be8   :  { %v2537_v11 = vpop.permute.xlu0 %2536 }
0x1be9   :  { %v2529_v13 = vmul.f32 0.015873017, %v2528_v9  ;;  %v2539_v19 = vsel %vm116_vm1, %v2537_v11, 0.0 }
0x1bea   :  { %2540 = vadd.xlane.f32.xlu1 %v2539_v19 }
0x1beb   :  { %3622 = vrsqrt.f32 %v2529_v13 }
0x1bf8   :  { %v3623_v52 = vpop.eup %3622 }
0x1bf9   :  { %v2532_v6 = vmul.f32 %v3623_v52, %v2530_v7 }
0x1bfb   :  { %v2533_v5 = vmul.f32 %v4423_v48, %v2532_v6 }
0x1bfd   :  { %v2534_v30 = vadd.f32 %v4429_v59, %v2533_v5 }
0x1bff   :  { %v2650_v39 = vadd.f32 %v2638_v37, %v2534_v30 }
0x1c01   :  { %v3116_v31 = vmul.f32 -1.442695, %v2650_v39 }
0x1c03   :  { %3624 = vpow2.f32 %v3116_v31 }
0x1c10   :  { %v3625_v32 = vpop.eup %3624 }
0x1c11   :  { %v2654_v34 = vadd.f32 1.0, %v3625_v32 }
0x1c13   :  { %3626 = vrcp.f32 %v2654_v34 }
0x1c18   :  { %v2659_v38 = vpop.permute.xlu0 %2658 }
0x1c20   :  { %v3627_v35 = vpop.eup %3626 }
0x1c21   :  { %v2661_v45 = vmul.f32 %v3627_v35, %v2659_v38  ;;  %v2668_v29 = vsub.f32 1.0, %v3627_v35 }
0x1c23   :  { %2663 = vrot.lane.b32.xlu0 %v2661_v45, %s3829_s2 }
0x1c39   :  { %v2767_v16 = vpop.xlane.xlu1 %2766 }
0x1c3a   :  { %v2768_v53 = vmul.f32 0.03125, %v2767_v16 }
0x1c3c   :  { %v2769_v12 = vsub.f32 %v4667_v0, %v2768_v53 }
0x1c3e   :  { %v2770_v18 = vmul.f32 %v4404_v44, %v2769_v12 }
0x1c40   :  { %v2771_v57 = vadd.f32 %v4410_v25, %v2770_v18 }
0x1c42   :  { %2780 = vrot.lane.b32.xlu1 %v2771_v57, %s3829_s2 }
0x1c4e   :  { %v2756_v3 = vpop.xlane.xlu0 %2755 }
0x1c4f   :  { %v2757_v40 = vmul.f32 0.015625, %v2756_v3  ;;  %v3666_v3 = vld [vmem:[%s4773_s10] ss:$0 sm:$0xff] }
0x1c51   :  { %v2758_v42 = vsub.f32 %v4667_v0, %v2757_v40 }
0x1c52   :  { %v2549_v46 = vpop.xlane.xlu0 %2548 }
0x1c53   :  { %v2759_v17 = vmul.f32 %v4404_v44, %v2758_v42 }
0x1c55   :  { %v2760_v21 = vadd.f32 %v4410_v25, %v2759_v17 }
0x1c57   :  { %v2772_v58 = vadd.f32 %v2760_v21, %v2683_v26 }
0x1c59   :  { %v3118_v47 = vmul.f32 -1.442695, %v2772_v58 }
0x1c73   :  { %v2541_v10 = vpop.xlane.xlu1 %2540 }
0x1c74   :  { %v2542_v15 = vmul.f32 0.03125, %v2541_v10 }
0x1c76   :  { %v2550_v41 = vmul.f32 32.0, %v2542_v15  ;;  %v2555_v62 = vsub.f32 %v4662_v27, %v2542_v15 }
0x1c78   :  { %v2551_v43 = vmul.f32 %v2550_v41, %v2542_v15  ;;  %v3667_v41 = vld [vmem:[%s4771_s8] ss:$0 sm:$0xff] }
0x1c7a   :  { %v2552_v14 = vsub.f32 %v2549_v46, %v2551_v43 }
0x1c7c   :  { %v2553_v23 = vmax.f32 %v2552_v14, 0.0 }
0x1c7e   :  { %v2554_v33 = vmul.f32 0.032258064, %v2553_v23 }
0x1c80   :  { %3628 = vrsqrt.f32 %v2554_v33 }
0x1c81   :  { %3630 = vpow2.f32 %v3118_v47 }
0x1c8d   :  { %v3629_v49 = vpop.eup %3628 }
0x1c8e   :  { %v2557_v50 = vmul.f32 %v3629_v49, %v2555_v62  ;;  %v3631_v51 = vpop.eup %3630  ;;  %v3668_v62 = vld [vmem:[%s4772_s9] ss:$0 sm:$0xff] }
0x1c8f   :  { %v2776_v0 = vadd.f32 1.0, %v3631_v51 }
0x1c90   :  { %v2558_v28 = vmul.f32 %v4423_v48, %v2557_v50  ;;  %v2674_v48 = vmul.f32 %v3627_v35, %v4618_v36 }
0x1c91   :  { %3632 = vrcp.f32 %v2776_v0  ;;  %v3669_v0 = vld [vmem:[%s4770_s7] ss:$0 sm:$0xff]  ;;  %s3832_s7 = smov [#allocation11]  }
0x1c92   :  { %v2559_v44 = vadd.f32 %v4429_v59, %v2558_v28  ;;  %s3046_s9 = sshll.u32 %s3832_s7, 4  ;;  %s3047_s9 = int_to_ptr.vmem [resolvable:$true] %s3046_s9 }
0x1c93   :  { %s3770_s5 = scalar_lea.vmem %s3047_s9, 1024  ;;  %p3775_p12 = scmp.lt.s32.totalorder %s3047_s9, %s3047_s9 }
0x1c94   :  { %p3771_p11 = scmp.ne.s32.totalorder %s3047_s9, %s3770_s5  ;;  %p3776_p13 = scmp.lt.s32.totalorder %s3770_s5, %s3770_s5 }
0x1c95   :  { %v2664_v61 = vpop.permute.xlu0 %2663 }
0x1c96   :  { %v2666_v25 = vadd.f32 %v2664_v61, %v2559_v44  ;;  %p3777_p0 = por %p3776_p13, %p3775_p12 }
0x1c98   :  { %3634 = vtanh.f32 %v2666_v25  ;;  %p3778_p1 = pnand %p3777_p0, %p3771_p11 }
0x1c9e   :  { %v3633_v55 = vpop.eup %3632 }
0x1c9f   :  { %v2790_v11 = vsub.f32 1.0, %v3633_v55  ;;  %v2796_v19 = vmul.f32 %v3633_v55, %v4635_v22 }
0x1ca5   :  { %v3635_v63 = vpop.eup %3634 }
0x1cb4   :  { %v2781_v56 = vpop.permute.xlu1 %2780 }
0x1cb5   :  { %v2783_v60 = vmul.f32 %v3633_v55, %v2781_v56 }
0x1cb7   :  { %2785 = vrot.lane.b32.xlu1 %v2783_v60, %s3829_s2 }
0x1cbb   :  { %2670 = vrot.lane.b32.xlu1 %v3635_v63, %s3830_s14 }
0x1d29   :  { %v2786_v27 = vpop.permute.xlu1 %2785 }
0x1d2a   :  { %v2788_v4 = vadd.f32 %v2786_v27, %v2683_v26 }
0x1d2c   :  { %3636 = vtanh.f32 %v2788_v4 }
0x1d2d   :  { %v2671_v24 = vpop.permute.xlu1 %2670 }
0x1d2e   :  { %v2673_v8 = vmul.f32 %v2671_v24, %v2668_v29 }
0x1d30   :  { %v4704_v54 = vadd.f32 %v2674_v48, %v2673_v8 }
0x1d32   :  { %2677 = vrot.lane.b32.xlu1 %v4704_v54, %s3830_s14 }
0x1d39   :  { %v3637_v59 = vpop.eup %3636 }
0x1d3a   :  { %2792 = vrot.lane.b32.xlu0 %v3637_v59, %s3830_s14 }
0x1da4   :  { %v2678_v9 = vpop.permute.xlu1 %2677 }
0x1da5   :  { %2681 = vst.msk [vmem:[#allocation11 + $0x30] sm:$0xff] %vm116_vm1, %v2678_v9  ;;  %3504 = vmatmul.mubr.msk.f32.vlgmr.msra.gmra.mxu1 %vm116_vm1, %v2678_v9 }
0x1dac   :  { %v2793_v13 = vpop.permute.xlu0 %2792 }
0x1dad   :  { %v2795_v2 = vmul.f32 %v2793_v13, %v2790_v11 }
0x1daf   :  { %v2797_v36 = vadd.f32 %v2796_v19, %v2795_v2 }
0x1db1   :  { %2799 = vrot.lane.b32.xlu0 %v2797_v36, %s3830_s14 }
0x1e23   :  { %v2800_v1 = vpop.permute.xlu0 %2799 }
0x1e24   :  { %3039 = vst.msk [vmem:[#allocation12] sm:$0xff] %vm116_vm1, %v2800_v1  ;;  %3493 = vmatmul.mubr.msk.f32.vlgmr.msra.gmra.mxu0 %vm116_vm1, %v2800_v1 }
0x1e65   :  { %v2984_v7 = vpop.f32.mrf.mxu1 }
0x1e66   :  { %v2988_v52 = vsel %vm251_vm2, %v2984_v7, 0.0 }
0x1e67   :  { %2989 = vadd.xlane.f32.xlu1 %v2988_v52  ;;  %v3505_v20 = vpop.f32.mrf.mxu1 }
0x1ee4   :  { %v4716_v6 = vpop.f32.mrf.mxu0 }
0x1ee5   :  { %2892 = vrot.lane.b32.xlu0 %v4716_v6, %s3829_s2  ;;  %v2873_v22 = vsel %vm251_vm2, %v4716_v6, 0.0  ;;  %v2877_v37 = vmul.f32 %v4716_v6, %v4716_v6 }
0x1ee6   :  { %2874 = vadd.xlane.f32.xlu1 %v2873_v22  ;;  %v3494_v5 = vpop.f32.mrf.mxu0 }
0x1ee7   :  { %v2878_v30 = vsel %vm251_vm2, %v2877_v37, 0.0 }
0x1ef0   :  { %v2990_v32 = vpop.xlane.xlu1 %2989 }
0x1ef1   :  { %v2991_v58 = vmul.f32 0.015625, %v2990_v32 }
0x1ef3   :  { %v2992_v49 = vsub.f32 %v2984_v7, %v2991_v58 }
0x1ef5   :  { %v2993_v51 = vmul.f32 %v3666_v3, %v2992_v49 }
0x1ef7   :  { %2900 = vrot.lane.b32.xlu1 %v2877_v37, %s3829_s2  ;;  %v2994_v61 = vadd.f32 %v3667_v41, %v2993_v51 }
0x1f04   :  { %2879 = vadd.xlane.f32.xlu0 %v2878_v30 }
0x1f57   :  { %v2893_v39 = vpop.permute.xlu0 %2892 }
0x1f58   :  { %v2895_v31 = vsel %vm116_vm1, %v2893_v39, 0.0 }
0x1f59   :  { %2896 = vadd.xlane.f32.xlu1 %v2895_v31 }
0x1f6f   :  { %v2875_v34 = vpop.xlane.xlu1 %2874 }
0x1f70   :  { %v2876_v43 = vmul.f32 0.015625, %v2875_v34 }
0x1f72   :  { %v2881_v46 = vmul.f32 64.0, %v2876_v43  ;;  %v2886_v33 = vsub.f32 %v4716_v6, %v2876_v43 }
0x1f73   :  { %v2901_v35 = vpop.permute.xlu1 %2900 }
0x1f74   :  { %v2903_v38 = vsel %vm116_vm1, %v2901_v35, 0.0  ;;  %v2882_v17 = vmul.f32 %v2881_v46, %v2876_v43 }
0x1f75   :  { %2904 = vadd.xlane.f32.xlu0 %v2903_v38 }
0x1f8b   :  { %2996 = vrot.lane.b32.xlu0 %v2984_v7, %s3829_s2 }
0x1f8d   :  { %v2880_v45 = vpop.xlane.xlu0 %2879 }
0x1f8e   :  { %v2883_v14 = vsub.f32 %v2880_v45, %v2882_v17 }
0x1f90   :  { %v2884_v21 = vmax.f32 %v2883_v14, 0.0 }
0x1f92   :  { %v2885_v23 = vmul.f32 0.015873017, %v2884_v21 }
0x1f94   :  { %3638 = vrsqrt.f32 %v2885_v23 }
0x1fa1   :  { %v3639_v26 = vpop.eup %3638 }
0x1fa2   :  { %v2888_v47 = vmul.f32 %v3639_v26, %v2886_v33 }
0x1fa4   :  { %v2889_v50 = vmul.f32 %v3668_v62, %v2888_v47 }
0x1fa6   :  { %v2890_v28 = vadd.f32 %v3669_v0, %v2889_v50 }
0x1fa8   :  { %v3006_v44 = vadd.f32 %v2994_v61, %v2890_v28 }
0x1faa   :  { %v3121_v25 = vmul.f32 -1.442695, %v3006_v44 }
0x1fac   :  { %3640 = vpow2.f32 %v3121_v25 }
0x1fb9   :  { %v3641_v55 = vpop.eup %3640 }
0x1fba   :  { %v3010_v56 = vadd.f32 1.0, %v3641_v55 }
0x1fbc   :  { %3642 = vrcp.f32 %v3010_v56 }
0x1fc9   :  { %v3643_v60 = vpop.eup %3642 }
0x1fca   :  { %v3024_v52 = vsub.f32 1.0, %v3643_v60  ;;  %v3030_v22 = vmul.f32 %v3643_v60, %v4704_v54 }
0x1fe2   :  { %v2897_v18 = vpop.xlane.xlu1 %2896 }
0x1fe3   :  { %v2898_v4 = vmul.f32 0.03125, %v2897_v18 }
0x1fe5   :  { %v2906_v29 = vmul.f32 32.0, %v2898_v4  ;;  %v2911_v11 = vsub.f32 %v4716_v6, %v2898_v4 }
0x1fe7   :  { %v2907_v24 = vmul.f32 %v2906_v29, %v2898_v4 }
0x1ffe   :  { %v2905_v16 = vpop.xlane.xlu0 %2904 }
0x1fff   :  { %v2908_v48 = vsub.f32 %v2905_v16, %v2907_v24 }
0x2001   :  { %v2909_v8 = vmax.f32 %v2908_v48, 0.0 }
0x2002   :  { %v2997_v53 = vpop.permute.xlu0 %2996 }
0x2003   :  { %v2999_v12 = vsel %vm116_vm1, %v2997_v53, 0.0  ;;  %v2910_v59 = vmul.f32 0.032258064, %v2909_v8 }
0x2004   :  { %3000 = vadd.xlane.f32.xlu1 %v2999_v12 }
0x2005   :  { %3644 = vrsqrt.f32 %v2910_v59 }
0x2012   :  { %v3645_v9 = vpop.eup %3644 }
0x2013   :  { %v2913_v13 = vmul.f32 %v3645_v9, %v2911_v11 }
0x2015   :  { %v2914_v19 = vmul.f32 %v3668_v62, %v2913_v13 }
0x2017   :  { %v2915_v2 = vadd.f32 %v3669_v0, %v2914_v19 }
0x208d   :  { %v3001_v57 = vpop.xlane.xlu1 %3000 }
0x208e   :  { %v3002_v10 = vmul.f32 0.03125, %v3001_v57 }
0x2090   :  { %v3003_v15 = vsub.f32 %v2984_v7, %v3002_v10 }
0x2092   :  { %v3004_v40 = vmul.f32 %v3666_v3, %v3003_v15 }
0x2094   :  { %v3005_v42 = vadd.f32 %v3667_v41, %v3004_v40 }
0x2096   :  { %3014 = vrot.lane.b32.xlu1 %v3005_v42, %s3829_s2 }
0x2108   :  { %v3015_v63 = vpop.permute.xlu1 %3014 }
0x2109   :  { %v3017_v27 = vmul.f32 %v3643_v60, %v3015_v63 }
0x210b   :  { %3019 = vrot.lane.b32.xlu0 %v3017_v27, %s3829_s2  ;;  %s3833_s2 = smov [#allocation12]  }
0x210c   :  { %s3058_s20 = sshll.u32 %s3833_s2, 4  ;;  %s3059_s20 = int_to_ptr.vmem [resolvable:$true] %s3058_s20 }
0x217d   :  { %v3020_v36 = vpop.permute.xlu0 %3019 }
0x217e   :  { %v3022_v1 = vadd.f32 %v3020_v36, %v2915_v2 }
0x2180   :  { %3646 = vtanh.f32 %v3022_v1 }
0x218d   :  { %v3647_v7 = vpop.eup %3646 }
0x218e   :  { %3026 = vrot.lane.b32.xlu0 %v3647_v7, %s3830_s14 }
0x2200   :  { %v3027_v20 = vpop.permute.xlu0 %3026 }
0x2201   :  { %v3029_v5 = vmul.f32 %v3027_v20, %v3024_v52 }
0x2203   :  { %v3031_v37 = vadd.f32 %v3030_v22, %v3029_v5 }
0x2205   :  { %3033 = vrot.lane.b32.xlu1 %v3031_v37, %s3830_s14 }
0x2277   :  { %v3034_v6 = vpop.permute.xlu1 %3033 }
0x2278   :  { %3037 = vst.msk [vmem:[#allocation11 + $0x38] sm:$0xff] %vm116_vm1, %v3034_v6  ;;  %3040 = vst.msk [vmem:[#allocation12 + $0x8] sm:$0xff] %vm116_vm1, %v3034_v6 }
0x2279   :  { %3781 = shalt.err (!%p3778_p1)
}
0x227a   :  { %3052 = dma.vmem_to_hbm [thread:$0]  %s3047_s9, 1024, %s4774_s11, [#allocation4], %s3822_s26, %s3822_s26, %s3823_s27  }
0x227b   :  { %s3790_s22 = scalar_lea.vmem %s3059_s20, 256  ;;  %p3795_p3 = scmp.lt.s32.totalorder %s3059_s20, %s3059_s20 }
0x227c   :  { %p3791_p2 = scmp.ne.s32.totalorder %s3059_s20, %s3790_s22  ;;  %p3796_p4 = scmp.lt.s32.totalorder %s3790_s22, %s3790_s22 }
0x227e   :  { %p3797_p5 = por %p3796_p4, %p3795_p3 }
0x2280   :  { %p3798_p6 = pnand %p3797_p5, %p3791_p2 }
0x2282   :  { %3801 = shalt.err (!%p3798_p6)
}
0x2283   :  { %3064 = dma.vmem_to_hbm [thread:$0]  %s3059_s20, 256, %s4775_s12, [#allocation13], %s3822_s26, %s3822_s26, %s3823_s27  }
0x2284   :  { %3816 = dma.done.wait [#allocation4], 1024  }
0x2285   :  { %3817 = vsyncadd [#allocation4], 4294966272 }
0x2286   :  { %3818 = dma.done.wait [#allocation13], 256  }
0x2287   :  { %3819 = vsyncadd [#allocation13], 4294967040 }
0x2288   :  { %3071 = vsyncpa [#allocation3], 1 }
0x2289   :  { %3072 = vsyncpa [#allocation6], 1 }
0x228a   :  { %3073 = vsyncpa [#allocation9], 1 }
0x228b   :  { %3074 = vsyncpa [#allocation4], 1 }
0x228c   :  { %3075 = vsyncpa [#allocation13], 1 }

</bundles_post_ra>
